<compile_context>
chip_gen: v7x
topology: tpu7x:2x2x1
jax: 0.10.0
libtpu: 0.0.40
codegen_flags: <defaults>
</compile_context>

<pallas_src>
import jax
import jax.numpy as jnp
from jax.experimental import pallas as pl
from jax.experimental.pallas import tpu as pltpu

# ---- problem sizes (synthetic, consistent with the module's forward) ----
LONGEST_SENT = 8
INPUT_DIM = 32
D = LONGEST_SENT * INPUT_DIM             # 256 = encoder input / decoder output

# True module layer dims (8 linears): [D, 512, 256, 128, 64, 128, 256, 512, D]
TRUE_DIMS = [D, 512, 256, 128, 64, 128, 256, 512, D]
TRUE_RELU = (True, True, True, False, True, True, True, False)   # Tanh after last

# Folded kernel dims (7 linears): layers 3 & 4 merged into one 128->128 map.
FOLDED_DIMS = [D, 512, 256, 128, 128, 256, 512, D]
N_LAYERS = 7                             # ReLU after layers 0..5, none after layer 6

BATCH_TILE = 256                         # M per grid step (fills the MXU)
MAX_WIDTH = 512                          # lane width of the packed bias slab
BIAS_ROWS = 8                            # 8 sublanes (7 used, 1 zero row)
BATCH = 512                              # 2 batch tiles -> exercises grid + megacore


def autoencoder_kernel(x_ref,
                       w0, w1, w2, w3, w4, w5, w6,   # bf16 weights, resident in VMEM
                       b_ref,                        # (8, 512) f32 packed biases
                       o_ref):
    w_refs = (w0, w1, w2, w3, w4, w5, w6)
    h = x_ref[...]                                   # bf16 (BATCH_TILE, D)
    for i in range(N_LAYERS):
        w = w_refs[i]
        out_dim = w.shape[1]
        # MXU: bf16 x bf16, f32 accumulation
        y = jnp.dot(h, w[...], preferred_element_type=jnp.float32)
        y = y + b_ref[i:i + 1, :out_dim]             # f32 bias add (VPU)
        if i < N_LAYERS - 1:
            # ReLU, then cast on the producer side: next-dot input lives in bf16.
            h = jnp.maximum(y, 0.0).astype(jnp.bfloat16)
        else:
            h = y                                    # final layer stays f32 for tanh
    o_ref[...] = jnp.tanh(h).astype(o_ref.dtype)     # final Tanh (EUP)


def init_params(key):
    """Deterministic PyTorch-style init: U(-1/sqrt(fan_in), 1/sqrt(fan_in)), f32."""
    ws, bs = [], []
    for i in range(len(TRUE_DIMS) - 1):
        fan_in, fan_out = TRUE_DIMS[i], TRUE_DIMS[i + 1]
        key, kw, kb = jax.random.split(key, 3)
        bound = 1.0 / jnp.sqrt(fan_in)
        # stored as (in, out) == W_pt.T, so each layer is y = x @ W + b
        ws.append(jax.random.uniform(kw, (fan_in, fan_out), jnp.float32, -bound, bound))
        bs.append(jax.random.uniform(kb, (fan_out,), jnp.float32, -bound, bound))
    return ws, bs


def pack_params(ws, bs):
    """Fold layers 3&4 into one linear map, cast weights to bf16, pack biases."""
    # Exact fold (no ReLU between layers 3 and 4):
    #   h @ W3 @ W4 + (b3 @ W4 + b4)  ==  h @ W34 + b34
    w34 = ws[3] @ ws[4]                               # (128, 128), f32
    b34 = bs[3] @ ws[4] + bs[4]                       # (128,),     f32

    folded_ws = [ws[0], ws[1], ws[2], w34, ws[5], ws[6], ws[7]]
    folded_bs = [bs[0], bs[1], bs[2], b34, bs[5], bs[6], bs[7]]

    w_bf16 = [w.astype(jnp.bfloat16) for w in folded_ws]
    bpack = jnp.zeros((BIAS_ROWS, MAX_WIDTH), jnp.float32)
    for i, b in enumerate(folded_bs):
        bpack = bpack.at[i, : b.shape[0]].set(b)
    return w_bf16, bpack


@jax.jit
def autoencoder_forward(x_bf16, w_list, bpack):
    batch = x_bf16.shape[0]
    assert batch % BATCH_TILE == 0, "batch must be a multiple of BATCH_TILE"
    grid = (batch // BATCH_TILE,)

    # weights / biases: constant block index -> DMA'd once, resident across grid steps
    w_specs = [pl.BlockSpec(w.shape, lambda i: (0, 0)) for w in w_list]
    b_spec = pl.BlockSpec((BIAS_ROWS, MAX_WIDTH), lambda i: (0, 0))
    x_spec = pl.BlockSpec((BATCH_TILE, D), lambda i: (i, 0))
    o_spec = pl.BlockSpec((BATCH_TILE, D), lambda i: (i, 0))

    flops = 2 * batch * sum(int(w.shape[0]) * int(w.shape[1]) for w in w_list)
    bytes_accessed = (sum(w.size * 2 for w in w_list)     # bf16 weights
                      + bpack.size * 4                    # f32 biases
                      + x_bf16.size * 2                   # bf16 input
                      + x_bf16.size * 2)                  # bf16 output
    cost = pl.CostEstimate(flops=flops,
                           transcendentals=batch * D,     # final tanh
                           bytes_accessed=bytes_accessed)

    return pl.pallas_call(
        autoencoder_kernel,
        out_shape=jax.ShapeDtypeStruct(x_bf16.shape, jnp.bfloat16),
        grid=grid,
        in_specs=[x_spec] + w_specs + [b_spec],
        out_specs=o_spec,
        compiler_params=pltpu.CompilerParams(
            dimension_semantics=("parallel",)),            # shard batch tiles across TCs
        cost_estimate=cost,
    )(x_bf16, *w_list, bpack)


def reference_forward(x, ws, bs):
    """Pure-JAX f32 reference with the original (unfolded, f32) module weights."""
    h = x
    for i in range(len(ws)):
        h = h @ ws[i] + bs[i]
        if TRUE_RELU[i]:
            h = jnp.maximum(h, 0.0)
    return jnp.tanh(h)


if __name__ == "__main__":
    key = jax.random.PRNGKey(0)
    key, kx = jax.random.split(key)
    x = jax.random.normal(kx, (BATCH, D), jnp.float32)

    ws, bs = init_params(key)
    w_bf16, bpack = pack_params(ws, bs)

    out = autoencoder_forward(x.astype(jnp.bfloat16), w_bf16, bpack)
    out = jax.block_until_ready(out)

    ref = reference_forward(x, ws, bs)
    assert out.shape == (BATCH, D)
    # bf16 activations/weights on the MXU (f32 accumulation) -> relaxed tolerance
    assert jnp.allclose(out.astype(jnp.float32), ref, atol=4e-2, rtol=4e-2), \
        "mismatch vs reference"

    print("KERNEL_OK")
</pallas_src>

<mosaic_0001>
module attributes {stable_mosaic.version = 11 : i64} {
  func.func @autoencoder_kernel(%arg0: i32, %arg1: memref<256x256xbf16, #tpu.memory_space<vmem>>, %arg2: memref<256x512xbf16, #tpu.memory_space<vmem>>, %arg3: memref<512x256xbf16, #tpu.memory_space<vmem>>, %arg4: memref<256x128xbf16, #tpu.memory_space<vmem>>, %arg5: memref<128x128xbf16, #tpu.memory_space<vmem>>, %arg6: memref<128x256xbf16, #tpu.memory_space<vmem>>, %arg7: memref<256x512xbf16, #tpu.memory_space<vmem>>, %arg8: memref<512x256xbf16, #tpu.memory_space<vmem>>, %arg9: memref<8x512xf32, #tpu.memory_space<vmem>>, %arg10: memref<256x256xbf16, #tpu.memory_space<vmem>>) attributes {dimension_semantics = [#tpu.dimension_semantics<parallel>], iteration_bounds = array<i64: 2>, scalar_prefetch = 0 : i64, scratch_operands = 0 : i64, tpu.core_type = #tpu.core_type<tc>, window_params = [{transform_indices = @transform_0, window_bounds = array<i64: 256, 256>}, {pipeline_mode = #tpu.pipeline_mode<synchronous>, transform_indices = @transform_1, window_bounds = array<i64: 256, 512>}, {pipeline_mode = #tpu.pipeline_mode<synchronous>, transform_indices = @transform_2, window_bounds = array<i64: 512, 256>}, {pipeline_mode = #tpu.pipeline_mode<synchronous>, transform_indices = @transform_3, window_bounds = array<i64: 256, 128>}, {pipeline_mode = #tpu.pipeline_mode<synchronous>, transform_indices = @transform_4, window_bounds = array<i64: 128, 128>}, {pipeline_mode = #tpu.pipeline_mode<synchronous>, transform_indices = @transform_5, window_bounds = array<i64: 128, 256>}, {pipeline_mode = #tpu.pipeline_mode<synchronous>, transform_indices = @transform_6, window_bounds = array<i64: 256, 512>}, {pipeline_mode = #tpu.pipeline_mode<synchronous>, transform_indices = @transform_7, window_bounds = array<i64: 512, 256>}, {pipeline_mode = #tpu.pipeline_mode<synchronous>, transform_indices = @transform_8, window_bounds = array<i64: 8, 512>}, {transform_indices = @transform_9, window_bounds = array<i64: 256, 256>}]} {
    %c0 = arith.constant 0 : index
    %c0_0 = arith.constant 0 : index
    %0 = vector.load %arg1[%c0, %c0_0] : memref<256x256xbf16, #tpu.memory_space<vmem>>, vector<256x256xbf16>
    %c0_1 = arith.constant 0 : index
    %c0_2 = arith.constant 0 : index
    %1 = vector.load %arg2[%c0_1, %c0_2] : memref<256x512xbf16, #tpu.memory_space<vmem>>, vector<256x512xbf16>
    %cst = arith.constant dense<0.000000e+00> : vector<256x512xf32>
    %2 = tpu.matmul %0, %1, %cst {dimension_numbers = #tpu.dot_dimension_numbers<[1], [0], [0], [1], [0, 0, 1, 1], [], []>} : vector<256x256xbf16>, vector<256x512xbf16>, vector<256x512xf32> -> vector<256x512xf32>
    %c0_3 = arith.constant 0 : index
    %c0_4 = arith.constant 0 : index
    %3 = vector.load %arg9[%c0_3, %c0_4] : memref<8x512xf32, #tpu.memory_space<vmem>>, vector<1x512xf32>
    %4 = vector.broadcast %3 : vector<1x512xf32> to vector<256x512xf32>
    %5 = arith.addf %2, %4 : vector<256x512xf32>
    %cst_5 = arith.constant 0.000000e+00 : f32
    %6 = vector.broadcast %cst_5 : f32 to vector<256x512xf32>
    %7 = arith.maximumf %5, %6 : vector<256x512xf32>
    %8 = arith.truncf %7 : vector<256x512xf32> to vector<256x512xbf16>
    %c0_6 = arith.constant 0 : index
    %c0_7 = arith.constant 0 : index
    %9 = vector.load %arg3[%c0_6, %c0_7] : memref<512x256xbf16, #tpu.memory_space<vmem>>, vector<512x256xbf16>
    %cst_8 = arith.constant dense<0.000000e+00> : vector<256x256xf32>
    %10 = tpu.matmul %8, %9, %cst_8 {dimension_numbers = #tpu.dot_dimension_numbers<[1], [0], [0], [1], [0, 0, 1, 1], [], []>} : vector<256x512xbf16>, vector<512x256xbf16>, vector<256x256xf32> -> vector<256x256xf32>
    %c1 = arith.constant 1 : index
    %c0_9 = arith.constant 0 : index
    %11 = vector.load %arg9[%c1, %c0_9] : memref<8x512xf32, #tpu.memory_space<vmem>>, vector<1x256xf32>
    %12 = vector.broadcast %11 : vector<1x256xf32> to vector<256x256xf32>
    %13 = arith.addf %10, %12 : vector<256x256xf32>
    %cst_10 = arith.constant 0.000000e+00 : f32
    %14 = vector.broadcast %cst_10 : f32 to vector<256x256xf32>
    %15 = arith.maximumf %13, %14 : vector<256x256xf32>
    %16 = arith.truncf %15 : vector<256x256xf32> to vector<256x256xbf16>
    %c0_11 = arith.constant 0 : index
    %c0_12 = arith.constant 0 : index
    %17 = vector.load %arg4[%c0_11, %c0_12] : memref<256x128xbf16, #tpu.memory_space<vmem>>, vector<256x128xbf16>
    %cst_13 = arith.constant dense<0.000000e+00> : vector<256x128xf32>
    %18 = tpu.matmul %16, %17, %cst_13 {dimension_numbers = #tpu.dot_dimension_numbers<[1], [0], [0], [1], [0, 0, 1, 1], [], []>} : vector<256x256xbf16>, vector<256x128xbf16>, vector<256x128xf32> -> vector<256x128xf32>
    %c2 = arith.constant 2 : index
    %c0_14 = arith.constant 0 : index
    %19 = vector.load %arg9[%c2, %c0_14] : memref<8x512xf32, #tpu.memory_space<vmem>>, vector<1x128xf32>
    %20 = vector.broadcast %19 : vector<1x128xf32> to vector<256x128xf32>
    %21 = arith.addf %18, %20 : vector<256x128xf32>
    %cst_15 = arith.constant 0.000000e+00 : f32
    %22 = vector.broadcast %cst_15 : f32 to vector<256x128xf32>
    %23 = arith.maximumf %21, %22 : vector<256x128xf32>
    %24 = arith.truncf %23 : vector<256x128xf32> to vector<256x128xbf16>
    %c0_16 = arith.constant 0 : index
    %c0_17 = arith.constant 0 : index
    %25 = vector.load %arg5[%c0_16, %c0_17] : memref<128x128xbf16, #tpu.memory_space<vmem>>, vector<128x128xbf16>
    %cst_18 = arith.constant dense<0.000000e+00> : vector<256x128xf32>
    %26 = tpu.matmul %24, %25, %cst_18 {dimension_numbers = #tpu.dot_dimension_numbers<[1], [0], [0], [1], [0, 0, 1, 1], [], []>} : vector<256x128xbf16>, vector<128x128xbf16>, vector<256x128xf32> -> vector<256x128xf32>
    %c3 = arith.constant 3 : index
    %c0_19 = arith.constant 0 : index
    %27 = vector.load %arg9[%c3, %c0_19] : memref<8x512xf32, #tpu.memory_space<vmem>>, vector<1x128xf32>
    %28 = vector.broadcast %27 : vector<1x128xf32> to vector<256x128xf32>
    %29 = arith.addf %26, %28 : vector<256x128xf32>
    %cst_20 = arith.constant 0.000000e+00 : f32
    %30 = vector.broadcast %cst_20 : f32 to vector<256x128xf32>
    %31 = arith.maximumf %29, %30 : vector<256x128xf32>
    %32 = arith.truncf %31 : vector<256x128xf32> to vector<256x128xbf16>
    %c0_21 = arith.constant 0 : index
    %c0_22 = arith.constant 0 : index
    %33 = vector.load %arg6[%c0_21, %c0_22] : memref<128x256xbf16, #tpu.memory_space<vmem>>, vector<128x256xbf16>
    %cst_23 = arith.constant dense<0.000000e+00> : vector<256x256xf32>
    %34 = tpu.matmul %32, %33, %cst_23 {dimension_numbers = #tpu.dot_dimension_numbers<[1], [0], [0], [1], [0, 0, 1, 1], [], []>} : vector<256x128xbf16>, vector<128x256xbf16>, vector<256x256xf32> -> vector<256x256xf32>
    %c4 = arith.constant 4 : index
    %c0_24 = arith.constant 0 : index
    %35 = vector.load %arg9[%c4, %c0_24] : memref<8x512xf32, #tpu.memory_space<vmem>>, vector<1x256xf32>
    %36 = vector.broadcast %35 : vector<1x256xf32> to vector<256x256xf32>
    %37 = arith.addf %34, %36 : vector<256x256xf32>
    %cst_25 = arith.constant 0.000000e+00 : f32
    %38 = vector.broadcast %cst_25 : f32 to vector<256x256xf32>
    %39 = arith.maximumf %37, %38 : vector<256x256xf32>
    %40 = arith.truncf %39 : vector<256x256xf32> to vector<256x256xbf16>
    %c0_26 = arith.constant 0 : index
    %c0_27 = arith.constant 0 : index
    %41 = vector.load %arg7[%c0_26, %c0_27] : memref<256x512xbf16, #tpu.memory_space<vmem>>, vector<256x512xbf16>
    %cst_28 = arith.constant dense<0.000000e+00> : vector<256x512xf32>
    %42 = tpu.matmul %40, %41, %cst_28 {dimension_numbers = #tpu.dot_dimension_numbers<[1], [0], [0], [1], [0, 0, 1, 1], [], []>} : vector<256x256xbf16>, vector<256x512xbf16>, vector<256x512xf32> -> vector<256x512xf32>
    %c5 = arith.constant 5 : index
    %c0_29 = arith.constant 0 : index
    %43 = vector.load %arg9[%c5, %c0_29] : memref<8x512xf32, #tpu.memory_space<vmem>>, vector<1x512xf32>
    %44 = vector.broadcast %43 : vector<1x512xf32> to vector<256x512xf32>
    %45 = arith.addf %42, %44 : vector<256x512xf32>
    %cst_30 = arith.constant 0.000000e+00 : f32
    %46 = vector.broadcast %cst_30 : f32 to vector<256x512xf32>
    %47 = arith.maximumf %45, %46 : vector<256x512xf32>
    %48 = arith.truncf %47 : vector<256x512xf32> to vector<256x512xbf16>
    %c0_31 = arith.constant 0 : index
    %c0_32 = arith.constant 0 : index
    %49 = vector.load %arg8[%c0_31, %c0_32] : memref<512x256xbf16, #tpu.memory_space<vmem>>, vector<512x256xbf16>
    %cst_33 = arith.constant dense<0.000000e+00> : vector<256x256xf32>
    %50 = tpu.matmul %48, %49, %cst_33 {dimension_numbers = #tpu.dot_dimension_numbers<[1], [0], [0], [1], [0, 0, 1, 1], [], []>} : vector<256x512xbf16>, vector<512x256xbf16>, vector<256x256xf32> -> vector<256x256xf32>
    %c6 = arith.constant 6 : index
    %c0_34 = arith.constant 0 : index
    %51 = vector.load %arg9[%c6, %c0_34] : memref<8x512xf32, #tpu.memory_space<vmem>>, vector<1x256xf32>
    %52 = vector.broadcast %51 : vector<1x256xf32> to vector<256x256xf32>
    %53 = arith.addf %50, %52 : vector<256x256xf32>
    %54 = math.tanh %53 : vector<256x256xf32>
    %55 = arith.truncf %54 : vector<256x256xf32> to vector<256x256xbf16>
    %c0_35 = arith.constant 0 : index
    %c0_36 = arith.constant 0 : index
    %56 = vector.load %arg10[%c0_35, %c0_36] : memref<256x256xbf16, #tpu.memory_space<vmem>>, vector<256x256xbf16>
    tpu.vector_store %arg10[%c0_35, %c0_36], %55 {strides = array<i32>} : memref<256x256xbf16, #tpu.memory_space<vmem>>, vector<256x256xbf16>,
    return
  }
  func.func @transform_0(%arg0: i32) -> (i32, i32) {
    %c0_i32 = arith.constant 0 : i32
    %c0_i32_0 = arith.constant 0 : i32
    return %arg0, %c0_i32 : i32, i32
  }
  func.func @transform_1(%arg0: i32) -> (i32, i32) {
    %c0_i32 = arith.constant 0 : i32
    %c0_i32_0 = arith.constant 0 : i32
    %c0_i32_1 = arith.constant 0 : i32
    return %c0_i32, %c0_i32_0 : i32, i32
  }
  func.func @transform_2(%arg0: i32) -> (i32, i32) {
    %c0_i32 = arith.constant 0 : i32
    %c0_i32_0 = arith.constant 0 : i32
    %c0_i32_1 = arith.constant 0 : i32
    return %c0_i32, %c0_i32_0 : i32, i32
  }
  func.func @transform_3(%arg0: i32) -> (i32, i32) {
    %c0_i32 = arith.constant 0 : i32
    %c0_i32_0 = arith.constant 0 : i32
    %c0_i32_1 = arith.constant 0 : i32
    return %c0_i32, %c0_i32_0 : i32, i32
  }
  func.func @transform_4(%arg0: i32) -> (i32, i32) {
    %c0_i32 = arith.constant 0 : i32
    %c0_i32_0 = arith.constant 0 : i32
    %c0_i32_1 = arith.constant 0 : i32
    return %c0_i32, %c0_i32_0 : i32, i32
  }
  func.func @transform_5(%arg0: i32) -> (i32, i32) {
    %c0_i32 = arith.constant 0 : i32
    %c0_i32_0 = arith.constant 0 : i32
    %c0_i32_1 = arith.constant 0 : i32
    return %c0_i32, %c0_i32_0 : i32, i32
  }
  func.func @transform_6(%arg0: i32) -> (i32, i32) {
    %c0_i32 = arith.constant 0 : i32
    %c0_i32_0 = arith.constant 0 : i32
    %c0_i32_1 = arith.constant 0 : i32
    return %c0_i32, %c0_i32_0 : i32, i32
  }
  func.func @transform_7(%arg0: i32) -> (i32, i32) {
    %c0_i32 = arith.constant 0 : i32
    %c0_i32_0 = arith.constant 0 : i32
    %c0_i32_1 = arith.constant 0 : i32
    return %c0_i32, %c0_i32_0 : i32, i32
  }
  func.func @transform_8(%arg0: i32) -> (i32, i32) {
    %c0_i32 = arith.constant 0 : i32
    %c0_i32_0 = arith.constant 0 : i32
    %c0_i32_1 = arith.constant 0 : i32
    return %c0_i32, %c0_i32_0 : i32, i32
  }
  func.func @transform_9(%arg0: i32) -> (i32, i32) {
    %c0_i32 = arith.constant 0 : i32
    %c0_i32_0 = arith.constant 0 : i32
    return %arg0, %c0_i32 : i32, i32
  }
}

</mosaic_0001>

<bundles_post_ra>
// kernel: autoencoder_forward.1
= control target key start
LH: loop header
LB: loop body
LE: loop exit
PB: predicated region body
PF: predicated region fallthrough
CT: control target
= control target key end

     0   :  { %s9140_s0 = inlined_call_operand.hbm [shape: bf16[512,256], index: 0, kind: input, shape index: {}]   ;;  %s9141_s1 = inlined_call_operand.hbm [shape: bf16[256,512], index: 1, kind: input, shape index: {}]   ;;  %s9142_s2 = inlined_call_operand.hbm [shape: bf16[512,256], index: 2, kind: input, shape index: {}]   ;;  %s9143_s3 = inlined_call_operand.hbm [shape: bf16[256,128], index: 3, kind: input, shape index: {}]   ;;  %s9144_s4 = inlined_call_operand.hbm [shape: bf16[128,128], index: 4, kind: input, shape index: {}]   ;;  %s9145_s5 = inlined_call_operand.hbm [shape: bf16[128,256], index: 5, kind: input, shape index: {}]   ;;  %s9146_s6 = inlined_call_operand.hbm [shape: bf16[256,512], index: 6, kind: input, shape index: {}]   ;;  %s9147_s7 = inlined_call_operand.hbm [shape: bf16[512,256], index: 7, kind: input, shape index: {}]   ;;  %s9148_s8 = inlined_call_operand.hbm [shape: f32[8,512], index: 8, kind: input, shape index: {}]   ;;  %s9149_s9 = inlined_call_operand.hbm [shape: bf16[512,256], index: 9, kind: output, shape index: {}]  }
   0x1   :  { %9159 = sst [smem:[#allocation24_spill]] %s9141_s1 }
   0x2   :  { %14 = vsyncpa [#allocation3], 0 }
   0x3   :  { %16 = vsyncpa [#allocation3 + $0x1], 0 }
   0x4   :  { %17 = vsyncpa [#allocation6], 0 }
   0x5   :  { %18 = vsyncpa [#allocation9], 0 }
   0x6   :  { %19 = vsyncpa [#allocation12], 0 }
   0x7   :  { %20 = vsyncpa [#allocation15], 0 }
   0x8   :  { %21 = vsyncpa [#allocation4], 0 }
   0x9   :  { %23 = vsyncpa [#allocation4 + $0x1], 0  ;;  %s7805_s30 = smov 0   ;;  %s7807_s10 = smov 0  }
   0xa   :  { %s7809_s11 = smov 0   ;;  %s7811_s12 = smov 0  }
   0xb LB: > { %s7736_s13 = smov [#allocation5]   ;;  %s7826_s15 = sadd.s32 4294967295, %s7734_s12   ;;  %s7734_s12 = sphi %s7811_s12, %s9191_s12   ;;  %s7730_s11 = sphi %s7809_s11, %s9190_s11   ;;  %s7726_s10 = sphi %s7807_s10, %s9189_s10   ;;  %s7722_s30 = sphi %s7805_s30, %s9188_s30  }
   0xc   : > { %s266_s14 = sshll.u32 %s7736_s13, 4  ;;  %p5755_p0 = scmp.ge.s32.totalorder %s7734_s12, 1  ;;  %s7831_s14 = int_to_ptr.vmem [resolvable:$true] %s266_s14 }
   0xd   : > { %p9152_p1 = scmp.eq.s32.totalorder %s7826_s15, 0  ;;  %p254_p2 = scmp.lt.s32.totalorder %s7734_s12, 3 }
   0xe   : > { %s7737_s17 = smov [#allocation8]   ;;  %s9162_s1 = sld [smem:[#allocation24_spill]] }
   0xf   : > { %p7833_p3 = pnand %p5755_p0, %p254_p2  ;;  %s292_s18 = sshll.u32 %s7737_s17, 4  ;;  %s7846_s18 = int_to_ptr.vmem [resolvable:$true] %s292_s18 }
  0x11   : > { %s9160_s16 = scalar_select %p7833_p3, 1, 0 }
  0x12   : > { %p6690_p5 = pneg %p7833_p3 }
  0x14   : > { %p7842_p6 = pnand %p6690_p5, %p9152_p1  ;;  %s7398_s22 = scalar_lea.hbm %s9162_s1, 8192 }
  0x15   : > { %p7399_p7 = scmp.ne.s32.totalorder %s9162_s1, %s7398_s22  ;;  %p7405_p11 = scmp.lt.u32.totalorder %s7398_s22, %s9162_s1 }
  0x16   : > { %p7856_p8 = pneg %p7842_p6 }
  0x18   : > { %p7401_p9 = pnand %p7856_p8, %p7399_p7 }
  0x1a   : > { %p7402_p10 = pneg %p7401_p9 }
  0x1c   : > { %p7407_p12 = pnand %p7405_p11, %p7402_p10 }
  0x1e   : > { %7410 = shalt.err (!%p7407_p12)
}
  0x1f   : > { %s7411_s28 = scalar_lea.vmem %s7831_s14, 8192  ;;  %p7419_p5 = scmp.lt.s32.totalorder %s7831_s14, %s7831_s14 }
  0x20   : > { %p7412_p13 = scmp.ne.s32.totalorder %s7831_s14, %s7411_s28  ;;  %p7420_p4 = scmp.lt.s32.totalorder %s7411_s28, %s7411_s28 }
  0x22   : > { %p7414_p0 = pnand %p7412_p13, %p7856_p8  ;;  %p7421_p7 = por %p7420_p4, %p7419_p5 }
  0x24   : > { %p7415_p2 = pneg %p7414_p0 }
  0x26   : > { %p7422_p9 = pnand %p7421_p7, %p7415_p2 }
  0x28   : > { %7425 = shalt.err (!%p7422_p9)
}
  0x29   : > { %s9150_s29 = smov 256   ;;  %s9151_s13 = smov 16  }
  0x2a   : > { %6693 = dma.hbm_to_vmem [thread:$0]  (!%p7842_p6), %s9162_s1, 8192, %s7831_s14, [#allocation6], %s9150_s29, %s9150_s29, %s9151_s13  }
  0x2b   : > { %s7426_s23 = scalar_lea.hbm %s9143_s3, 2048 }
  0x2c   : > { %p7427_p4 = scmp.ne.s32.totalorder %s9143_s3, %s7426_s23  ;;  %p7433_p12 = scmp.lt.u32.totalorder %s7426_s23, %s9143_s3 }
  0x2e   : > { %p7429_p10 = pnand %p7427_p4, %p7856_p8 }
  0x30   : > { %p7430_p11 = pneg %p7429_p10 }
  0x32   : > { %p7435_p13 = pnand %p7433_p12, %p7430_p11 }
  0x34   : > { %7438 = shalt.err (!%p7435_p13)
}
  0x35   : > { %s7439_s14 = scalar_lea.vmem %s7846_s18, 2048  ;;  %p7447_p7 = scmp.lt.s32.totalorder %s7846_s18, %s7846_s18 }
  0x36   : > { %p7440_p0 = scmp.ne.s32.totalorder %s7846_s18, %s7439_s14  ;;  %p7448_p9 = scmp.lt.s32.totalorder %s7439_s14, %s7439_s14 }
  0x38   : > { %p7442_p2 = pnand %p7440_p0, %p7856_p8  ;;  %p7449_p4 = por %p7448_p9, %p7447_p7 }
  0x3a   : > { %p7443_p5 = pneg %p7442_p2 }
  0x3c   : > { %p7450_p10 = pnand %p7449_p4, %p7443_p5 }
  0x3e   : > { %7453 = shalt.err (!%p7450_p10)
}
  0x3f   : > { %s9154_s17 = smov 64   ;;  %s9155_s20 = smov 4  }
  0x40   : > { %6699 = dma.hbm_to_vmem [thread:$0]  (!%p7842_p6), %s9143_s3, 2048, %s7846_s18, [#allocation9], %s9154_s17, %s9154_s17, %s9155_s20  }
  0x41   : > { %s7742_s23 = smov [#allocation11]   ;;  %s7743_s26 = smov [#allocation14]  }
  0x42   : > { %s318_s24 = sshll.u32 %s7742_s23, 4  ;;  %s344_s27 = sshll.u32 %s7743_s26, 4  ;;  %s319_s24 = int_to_ptr.vmem [resolvable:$true] %s318_s24  ;;  %s7906_s27 = int_to_ptr.vmem [resolvable:$true] %s344_s27 }
  0x43   : > { %s7454_s29 = scalar_lea.hbm %s9145_s5, 2048 }
  0x44   : > { %p7455_p11 = scmp.ne.s32.totalorder %s9145_s5, %s7454_s29  ;;  %p7461_p0 = scmp.lt.u32.totalorder %s7454_s29, %s9145_s5 }
  0x46   : > { %p7457_p12 = pnand %p7455_p11, %p7856_p8 }
  0x48   : > { %p7458_p13 = pneg %p7457_p12 }
  0x4a   : > { %p7463_p2 = pnand %p7461_p0, %p7458_p13 }
  0x4c   : > { %7466 = shalt.err (!%p7463_p2)
}
  0x4d   : > { %s7467_s22 = scalar_lea.vmem %s319_s24, 2048  ;;  %p7475_p4 = scmp.lt.s32.totalorder %s319_s24, %s319_s24 }
  0x4e   : > { %p7468_p5 = scmp.ne.s32.totalorder %s319_s24, %s7467_s22  ;;  %p7476_p10 = scmp.lt.s32.totalorder %s7467_s22, %s7467_s22 }
  0x50   : > { %p7470_p7 = pnand %p7468_p5, %p7856_p8  ;;  %p7477_p1 = por %p7476_p10, %p7475_p4 }
  0x52   : > { %p7471_p9 = pneg %p7470_p7 }
  0x54   : > { %p7478_p3 = pnand %p7477_p1, %p7471_p9 }
  0x56   : > { %7481 = shalt.err (!%p7478_p3)
}
  0x57   : > { %s9156_s1 = smov 128   ;;  %s9157_s13 = smov 8  }
  0x58   : > { %6705 = dma.hbm_to_vmem [thread:$0]  (!%p7842_p6), %s9145_s5, 2048, %s319_s24, [#allocation12], %s9156_s1, %s9156_s1, %s9157_s13  }
  0x59   : > { %s7482_s14 = scalar_lea.hbm %s9147_s7, 8192 }
  0x5a   : > { %p7483_p1 = scmp.ne.s32.totalorder %s9147_s7, %s7482_s14  ;;  %p7489_p12 = scmp.lt.u32.totalorder %s7482_s14, %s9147_s7 }
  0x5c   : > { %p7485_p3 = pnand %p7483_p1, %p7856_p8 }
  0x5e   : > { %p7486_p11 = pneg %p7485_p3 }
  0x60   : > { %p7491_p13 = pnand %p7489_p12, %p7486_p11 }
  0x62   : > { %7494 = shalt.err (!%p7491_p13)
}
  0x63   : > { %s7495_s24 = scalar_lea.vmem %s7906_s27, 8192  ;;  %p7503_p7 = scmp.lt.s32.totalorder %s7906_s27, %s7906_s27 }
  0x64   : > { %p7496_p0 = scmp.ne.s32.totalorder %s7906_s27, %s7495_s24  ;;  %p7504_p9 = scmp.lt.s32.totalorder %s7495_s24, %s7495_s24 }
  0x66   : > { %p7498_p2 = pnand %p7496_p0, %p7856_p8  ;;  %p7505_p4 = por %p7504_p9, %p7503_p7 }
  0x68   : > { %p7499_p5 = pneg %p7498_p2 }
  0x6a   : > { %p7506_p10 = pnand %p7505_p4, %p7499_p5 }
  0x6c   : > { %7509 = shalt.err (!%p7506_p10)
}
  0x6d   : > { %6711 = dma.hbm_to_vmem [thread:$0]  (!%p7842_p6), %s9147_s7, 8192, %s7906_s27, [#allocation15], %s9156_s1, %s9156_s1, %s9157_s13  }
  0x6e   : > { %s7746_s23 = smov [#allocation7]   ;;  %s7747_s28 = smov [#allocation10]  }
  0x6f   : > { %s279_s26 = sshll.u32 %s7746_s23, 4  ;;  %s305_s14 = sshll.u32 %s7747_s28, 4  ;;  %s280_s26 = int_to_ptr.vmem [resolvable:$true] %s279_s26  ;;  %s7955_s14 = int_to_ptr.vmem [resolvable:$true] %s305_s14 }
  0x70   : > { %s7510_s22 = scalar_lea.hbm %s9142_s2, 8192 }
  0x71   : > { %p7511_p1 = scmp.ne.s32.totalorder %s9142_s2, %s7510_s22  ;;  %p7517_p12 = scmp.lt.u32.totalorder %s7510_s22, %s9142_s2 }
  0x73   : > { %p7513_p3 = pnand %p7511_p1, %p7856_p8 }
  0x75   : > { %p7514_p11 = pneg %p7513_p3 }
  0x77   : > { %p7519_p13 = pnand %p7517_p12, %p7514_p11 }
  0x79   : > { %7522 = shalt.err (!%p7519_p13)
}
  0x7a   : > { %s7523_s29 = scalar_lea.vmem %s280_s26, 8192  ;;  %p7531_p7 = scmp.lt.s32.totalorder %s280_s26, %s280_s26 }
  0x7b   : > { %p7524_p0 = scmp.ne.s32.totalorder %s280_s26, %s7523_s29  ;;  %p7532_p9 = scmp.lt.s32.totalorder %s7523_s29, %s7523_s29 }
  0x7d   : > { %p7526_p2 = pnand %p7524_p0, %p7856_p8  ;;  %p7533_p4 = por %p7532_p9, %p7531_p7 }
  0x7f   : > { %p7527_p5 = pneg %p7526_p2 }
  0x81   : > { %p7534_p10 = pnand %p7533_p4, %p7527_p5 }
  0x83   : > { %7537 = shalt.err (!%p7534_p10)
}
  0x84   : > { %6696 = dma.hbm_to_vmem [thread:$0]  (!%p7842_p6), %s9142_s2, 8192, %s280_s26, [#allocation6], %s9156_s1, %s9156_s1, %s9157_s13  }
  0x85   : > { %s7538_s18 = scalar_lea.hbm %s9144_s4, 1024 }
  0x86   : > { %p7539_p1 = scmp.ne.s32.totalorder %s9144_s4, %s7538_s18  ;;  %p7545_p12 = scmp.lt.u32.totalorder %s7538_s18, %s9144_s4 }
  0x88   : > { %p7541_p3 = pnand %p7539_p1, %p7856_p8 }
  0x8a   : > { %p7542_p11 = pneg %p7541_p3 }
  0x8c   : > { %p7547_p13 = pnand %p7545_p12, %p7542_p11 }
  0x8e   : > { %7550 = shalt.err (!%p7547_p13)
}
  0x8f   : > { %s7551_s26 = scalar_lea.vmem %s7955_s14, 1024  ;;  %p7559_p7 = scmp.lt.s32.totalorder %s7955_s14, %s7955_s14 }
  0x90   : > { %p7552_p0 = scmp.ne.s32.totalorder %s7955_s14, %s7551_s26  ;;  %p7560_p9 = scmp.lt.s32.totalorder %s7551_s26, %s7551_s26 }
  0x92   : > { %p7554_p2 = pnand %p7552_p0, %p7856_p8  ;;  %p7561_p4 = por %p7560_p9, %p7559_p7 }
  0x94   : > { %p7555_p5 = pneg %p7554_p2 }
  0x96   : > { %p7562_p10 = pnand %p7561_p4, %p7555_p5 }
  0x98   : > { %7565 = shalt.err (!%p7562_p10)
}
  0x99   : > { %s9164_s29 = smov 4   ;;  %s9165_s20 = smov 64  }
  0x9a   : > { %6702 = dma.hbm_to_vmem [thread:$0]  (!%p7842_p6), %s9144_s4, 1024, %s7955_s14, [#allocation9], %s9165_s20, %s9165_s20, %s9164_s29  }
  0x9b   : > { %s7748_s21 = smov [#allocation13]   ;;  %s7749_s22 = smov [#allocation16]  }
  0x9c   : > { %s331_s18 = sshll.u32 %s7748_s21, 4  ;;  %s358_s24 = sshll.u32 %s7749_s22, 4  ;;  %s332_s18 = int_to_ptr.vmem [resolvable:$true] %s331_s18  ;;  %s8004_s24 = int_to_ptr.vmem [resolvable:$true] %s358_s24 }
  0x9d   : > { %s7566_s26 = scalar_lea.hbm %s9146_s6, 8192 }
  0x9e   : > { %p7567_p1 = scmp.ne.s32.totalorder %s9146_s6, %s7566_s26  ;;  %p7573_p12 = scmp.lt.u32.totalorder %s7566_s26, %s9146_s6 }
  0xa0   : > { %p7569_p3 = pnand %p7567_p1, %p7856_p8 }
  0xa2   : > { %p7570_p11 = pneg %p7569_p3 }
  0xa4   : > { %p7575_p13 = pnand %p7573_p12, %p7570_p11 }
  0xa6   : > { %7578 = shalt.err (!%p7575_p13)
}
  0xa7   : > { %s7579_s29 = scalar_lea.vmem %s332_s18, 8192  ;;  %p7587_p7 = scmp.lt.s32.totalorder %s332_s18, %s332_s18 }
  0xa8   : > { %p7580_p0 = scmp.ne.s32.totalorder %s332_s18, %s7579_s29  ;;  %p7588_p9 = scmp.lt.s32.totalorder %s7579_s29, %s7579_s29 }
  0xaa   : > { %p7582_p2 = pnand %p7580_p0, %p7856_p8  ;;  %p7589_p4 = por %p7588_p9, %p7587_p7 }
  0xac   : > { %p7583_p5 = pneg %p7582_p2 }
  0xae   : > { %p7590_p10 = pnand %p7589_p4, %p7583_p5 }
  0xb0   : > { %7593 = shalt.err (!%p7590_p10)
}
  0xb1   : > { %s9166_s1 = smov 16   ;;  %s9167_s13 = smov 256  }
  0xb2   : > { %6708 = dma.hbm_to_vmem [thread:$0]  (!%p7842_p6), %s9146_s6, 8192, %s332_s18, [#allocation12], %s9167_s13, %s9167_s13, %s9166_s1  }
  0xb3   : > { %s7594_s17 = scalar_lea.hbm %s9148_s8, 512 }
  0xb4   : > { %p7595_p1 = scmp.ne.s32.totalorder %s9148_s8, %s7594_s17  ;;  %p7601_p12 = scmp.lt.u32.totalorder %s7594_s17, %s9148_s8 }
  0xb6   : > { %p7597_p3 = pnand %p7595_p1, %p7856_p8 }
  0xb8   : > { %p7598_p11 = pneg %p7597_p3 }
  0xba   : > { %p7603_p13 = pnand %p7601_p12, %p7598_p11 }
  0xbc   : > { %7606 = shalt.err (!%p7603_p13)
}
  0xbd   : > { %s7607_s18 = scalar_lea.vmem %s8004_s24, 512  ;;  %p7615_p7 = scmp.lt.s32.totalorder %s8004_s24, %s8004_s24 }
  0xbe   : > { %p7608_p0 = scmp.ne.s32.totalorder %s8004_s24, %s7607_s18  ;;  %p7616_p9 = scmp.lt.s32.totalorder %s7607_s18, %s7607_s18 }
  0xc0   : > { %p7610_p2 = pnand %p7608_p0, %p7856_p8  ;;  %p7617_p4 = por %p7616_p9, %p7615_p7 }
  0xc2   : > { %p7611_p5 = pneg %p7610_p2 }
  0xc4   : > { %p7618_p10 = pnand %p7617_p4, %p7611_p5 }
  0xc6   : > { %7621 = shalt.err (!%p7618_p10)
}
  0xc7   : > { %6714 = dma.hbm_to_vmem [thread:$0]  (!%p7842_p6), %s9148_s8, 512, %s8004_s24, [#allocation15]  }
  0xc8   : > { %s5754_s19 = sadd.s32 4294967294, %s7734_s12   ;;  %s8052_s25 = sadd.s32 1, %s7734_s12  }
  0xc9   : > { %s33_s13 = ssub.s32 %s7734_s12, %s8052_s25  ;;  %s36_s20 = sadd.s32 1, %s7730_s11 }
  0xca   : > { %p34_p8 = scmp.eq.s32.totalorder %s33_s13, 0  ;;  %p43_p1 = scmp.ne.s32.totalorder %s7730_s11, %s7726_s10 }
  0xcb   : > { %p44_p3 = scmp.eq.s32.totalorder %s7734_s12, 0  ;;  %p49_p11 = scmp.ne.s32.totalorder %s7726_s10, %s7722_s30 }
  0xcc   : > { %s8063_s28 = scalar_select %p34_p8, %s7730_s11, %s36_s20  }
  0xcd   : > { %p8065_p12 = por %p44_p3, %p43_p1  ;;  %p9169_p13 = scmp.eq.s32.totalorder %s7826_s15, 0 }
  0xce   : > { %p241_p0 = scmp.eq.s32.totalorder %s7826_s15, 1  ;;  %p247_p2 = scmp.eq.s32.totalorder %s5754_s19, 1 }
  0xcf   : > { %p8071_p6 = por %p9169_p13, %p49_p11  ;;  %p6731_p5 = scmp.lt.s32.totalorder %s7734_s12, 2 }
  0xd0   : > { %s369_s22 = sand.u32 1, %s7730_s11   ;;  %p8078_p7 = por %p241_p0, %p43_p1 }
  0xd1   : > { %p8082_p9 = por %p247_p2, %p49_p11  ;;  %s5765_s26 = sshll.u32 %s369_s22, 8 }
  0xd2   : > { %s9171_s17 = scalar_select %p8078_p7, 1, 0 }
  0xd3   : > { %s9172_s27 = scalar_select %p8082_p9, 1, 0 }
  0xd4   : > { %s6147_s23 = sshll.u32 %s7734_s12, 12  ;;  %s373_s1 = scalar_lea.vmem [#allocation2], %s5765_s26 }
  0xd5   : > { %s8090_s29 = scalar_lea.hbm %s9140_s0, %s6147_s23  ;;  %s381_s19 = sshll.u32 %s373_s1, 4  ;;  %s8092_s19 = int_to_ptr.vmem [resolvable:$true] %s381_s19 }
  0xd6   : > { %p8096_p4 = pnand %p6731_p5, %p8065_p12  ;;  %s8100_s20 = scalar_lea.sflag [#allocation3], %s369_s22 }
  0xd7   : > { %s7622_s14 = scalar_lea.hbm %s8090_s29, 4096  ;;  %s7627_s21 = scalar_lea.hbm %s9140_s0, 8192 }
  0xd8   : > { %p7623_p10 = scmp.ne.s32.totalorder %s8090_s29, %s7622_s14  ;;  %p7624_p8 = pneg %p8096_p4 }
  0xd9   : > { %p7628_p11 = scmp.lt.u32.totalorder %s8090_s29, %s9140_s0  ;;  %p7629_p12 = scmp.lt.u32.totalorder %s7627_s21, %s7622_s14 }
  0xda   : > { %p7625_p1 = pnand %p7624_p8, %p7623_p10  ;;  %p7631_p0 = scmp.lt.u32.totalorder %s7622_s14, %s8090_s29 }
  0xdb   : > { %p7630_p13 = por %p7629_p12, %p7628_p11 }
  0xdc   : > { %p7626_p3 = pneg %p7625_p1 }
  0xdd   : > { %p7632_p2 = por %p7631_p0, %p7630_p13 }
  0xdf   : > { %p7633_p5 = pnand %p7632_p2, %p7626_p3 }
  0xe1   : > { %7636 = shalt.err (!%p7633_p5)
}
  0xe2   : > { %s7637_s22 = scalar_lea.vmem %s8092_s19, 4096  ;;  %s7750_s26 = smov [#allocation2]  }
  0xe3   : > { %p7638_p10 = scmp.ne.s32.totalorder %s8092_s19, %s7637_s22  ;;  %s7642_s23 = sshll.u32 %s7750_s26, 4  ;;  %s7643_s23 = int_to_ptr.vmem [resolvable:$false] %s7642_s23 }
  0xe4   : > { %s7644_s18 = scalar_lea.vmem %s7643_s23, 8192  ;;  %p7645_p7 = scmp.lt.s32.totalorder %s8092_s19, %s7643_s23 }
  0xe5   : > { %p7640_p1 = pnand %p7638_p10, %p7624_p8  ;;  %p7646_p11 = scmp.lt.s32.totalorder %s7644_s18, %s7637_s22 }
  0xe7   : > { %p7641_p9 = pneg %p7640_p1  ;;  %p7647_p12 = por %p7646_p11, %p7645_p7 }
  0xe9   : > { %p7648_p13 = pnand %p7647_p12, %p7641_p9 }
  0xeb   : > { %7651 = shalt.err (!%p7648_p13)
}
  0xec   : > { %s9174_s14 = smov 8   ;;  %s9175_s21 = smov 128  }
  0xed   : > { %6718 = dma.hbm_to_vmem [thread:$0]  (!%p8096_p4), %s8090_s29, 4096, %s8092_s19, %s8100_s20, %s9175_s21, %s9175_s21, %s9174_s14  }
  0xee   : > { %p9176_p8 = scmp.ne.s32.totalorder %s9160_s16, 0 }
  0xef   : > { %s8134_s1 = sand.u32 (!%p9176_p8), 1, %s7726_s10  }
  0xf0   : > { %393 = sbr.rel (%p9176_p8) target bundleno = 2191 (0x88f), region = 56  ;;  %s5770_s22 = sshll.u32 (!%p9176_p8), %s8134_s1, 8 }
  0xf1   : > { %s396_s26 = scalar_lea.sflag (!%p9176_p8), [#allocation3], %s8134_s1  ;;  %s8140_s13 = scalar_lea.vmem (!%p9176_p8), [#allocation2], %s5770_s22 }
  0xf7   : > { %7697 = dma.done.wait (%p8071_p6), %s396_s26, 4096  }
  0xf8   : > { %7699 = vsyncadd (%p8071_p6), %s396_s26, 4294963200  ;;  %p9177_p7 = scmp.eq.s32.totalorder %s7826_s15, 0 }
  0xfa   : > { %7701 = dma.done.wait (%p9177_p7), [#allocation6], 16384   ;;  %p9178_p9 = pmov %p9177_p7 }
  0xfb   : > { %p9179_p4 = pmov %p9177_p7 }
  0xfc   : > { %7703 = vsyncadd (%p9178_p9), [#allocation6], 4294950912 }
  0xfd   : > { %7705 = dma.done.wait (%p9179_p4), [#allocation9], 3072   ;;  %p9180_p3 = pmov %p9179_p4 }
  0xff   : > { %7707 = vsyncadd (%p9180_p3), [#allocation9], 4294964224  ;;  %p9181_p0 = pmov %p9180_p3 }
 0x101   : > { %7709 = dma.done.wait (%p9181_p0), [#allocation12], 10240   ;;  %p9182_p2 = pmov %p9181_p0 }
 0x102   : > { %p9183_p6 = pmov %p9181_p0 }
 0x103   : > { %7711 = vsyncadd (%p9182_p2), [#allocation12], 4294957056 }
 0x104   : > { %7713 = dma.done.wait (%p9183_p6), [#allocation15], 8704   ;;  %p9184_p5 = pmov %p9181_p0 }
 0x105   : > { %v6790_v0 = vld [vmem:[#allocation5 + $0x4] ss:$16 sps:$4 sm:$0xff]   ;;  %v6792_v1 = vld [vmem:[#allocation5] ss:$16 sps:$4 sm:$0xff]   ;;  %v6862_v20 = vld [vmem:[#allocation5 + $0xc] ss:$16 sps:$4 sm:$0xff]  }
 0x106   : > { %7715 = vsyncadd (%p9184_p5), [#allocation15], 4294958592  ;;  %1067 = vmatprep.subr.bf16.mxu0 %v6790_v0  ;;  %v6793_v2 = vld [vmem:[#allocation5 + $0x24] ss:$16 sps:$4 sm:$0xff]   ;;  %v6795_v3 = vld [vmem:[#allocation5 + $0x20] ss:$16 sps:$4 sm:$0xff]   ;;  %1260 = vmatprep.subr.bf16.mxu1 %v6862_v20 }
 0x107   : > { %1068 = vmatpush1.bf16.msra.mxu0 %v6792_v1  ;;  %v6796_v4 = vld [vmem:[#allocation5 + $0x44] ss:$16 sps:$4 sm:$0xff]   ;;  %v6798_v5 = vld [vmem:[#allocation5 + $0x40] ss:$16 sps:$4 sm:$0xff]   ;;  %v6864_v21 = vld [vmem:[#allocation5 + $0x8] ss:$16 sps:$4 sm:$0xff]  }
 0x108   : > { %1069 = vmatprep.subr.bf16.mxu0 %v6793_v2  ;;  %v6799_v6 = vld [vmem:[#allocation5 + $0x64] ss:$16 sps:$4 sm:$0xff]   ;;  %v6801_v7 = vld [vmem:[#allocation5 + $0x60] ss:$16 sps:$4 sm:$0xff]   ;;  %1261 = vmatpush1.bf16.msra.mxu1 %v6864_v21  ;;  %v6868_v24 = vld [vmem:[#allocation5 + $0x2c] ss:$16 sps:$4 sm:$0xff]  }
 0x109   : > { %v6802_v8 = vld [vmem:[#allocation5 + $0x84] ss:$16 sps:$4 sm:$0xff]   ;;  %v6804_v9 = vld [vmem:[#allocation5 + $0x80] ss:$16 sps:$4 sm:$0xff]   ;;  %v6870_v25 = vld [vmem:[#allocation5 + $0x28] ss:$16 sps:$4 sm:$0xff]   ;;  %1262 = vmatprep.subr.bf16.mxu1 %v6868_v24 }
 0x10a   : > { %v6805_v10 = vld [vmem:[#allocation5 + $0xa4] ss:$16 sps:$4 sm:$0xff]   ;;  %v6807_v11 = vld [vmem:[#allocation5 + $0xa0] ss:$16 sps:$4 sm:$0xff]   ;;  %v6871_v26 = vld [vmem:[#allocation5 + $0x4c] ss:$16 sps:$4 sm:$0xff]  }
 0x10b   : > { %1070 = vmatpush1.bf16.msra.mxu0 %v6795_v3  ;;  %v6808_v12 = vld [vmem:[#allocation5 + $0xc4] ss:$16 sps:$4 sm:$0xff]   ;;  %v6810_v14 = vld [vmem:[#allocation5 + $0xc0] ss:$16 sps:$4 sm:$0xff]   ;;  %v6873_v29 = vld [vmem:[#allocation5 + $0x48] ss:$16 sps:$4 sm:$0xff]  }
 0x10c   : > { %1071 = vmatprep.subr.bf16.mxu0 %v6796_v4  ;;  %v6840_v13 = vld [vmem:[%s8140_s13 + $0x4] ss:$8 sps:$4 sm:$0xff]   ;;  %v6813_v16 = vld [vmem:[#allocation5 + $0xe0] ss:$16 sps:$4 sm:$0xff]   ;;  %1263 = vmatpush1.bf16.msra.mxu1 %v6870_v25  ;;  %v6879_v33 = vld [vmem:[#allocation5 + $0x68] ss:$16 sps:$4 sm:$0xff]  }
 0x10d   : > { %v6811_v15 = vld [vmem:[#allocation5 + $0xe4] ss:$16 sps:$4 sm:$0xff]   ;;  %1099 = vmatprep.mubr.bf16.mxu0 %v6840_v13  ;;  %1292 = vmatprep.mubr.bf16.mxu1 %v6840_v13  ;;  %v6816_v18 = vld [vmem:[#allocation5 + $0x100] ss:$16 sps:$4 sm:$0xff]   ;;  %v6877_v30 = vld [vmem:[#allocation5 + $0x6c] ss:$16 sps:$4 sm:$0xff]  }
 0x10e   : > { %v6814_v17 = vld [vmem:[#allocation5 + $0x104] ss:$16 sps:$4 sm:$0xff]   ;;  %v6819_v22 = vld [vmem:[#allocation5 + $0x120] ss:$16 sps:$4 sm:$0xff]   ;;  %1264 = vmatprep.subr.bf16.mxu1 %v6871_v26  ;;  %v6880_v34 = vld [vmem:[#allocation5 + $0x8c] ss:$16 sps:$4 sm:$0xff]  }
 0x10f   : > { %1072 = vmatpush1.bf16.msra.mxu0 %v6798_v5  ;;  %v6817_v19 = vld [vmem:[#allocation5 + $0x124] ss:$16 sps:$4 sm:$0xff]   ;;  %v6822_v27 = vld [vmem:[#allocation5 + $0x140] ss:$16 sps:$4 sm:$0xff]   ;;  %v6882_v37 = vld [vmem:[#allocation5 + $0x88] ss:$16 sps:$4 sm:$0xff]  }
 0x110   : > { %1073 = vmatprep.subr.bf16.mxu0 %v6799_v6  ;;  %v6820_v23 = vld [vmem:[#allocation5 + $0x144] ss:$16 sps:$4 sm:$0xff]   ;;  %v6825_v31 = vld [vmem:[#allocation5 + $0x160] ss:$16 sps:$4 sm:$0xff]   ;;  %1265 = vmatpush1.bf16.msra.mxu1 %v6873_v29  ;;  %v6886_v38 = vld [vmem:[#allocation5 + $0xac] ss:$16 sps:$4 sm:$0xff]  }
 0x111   : > { %v6823_v28 = vld [vmem:[#allocation5 + $0x164] ss:$16 sps:$4 sm:$0xff]   ;;  %1266 = vmatprep.subr.bf16.mxu1 %v6877_v30  ;;  %v6828_v35 = vld [vmem:[#allocation5 + $0x180] ss:$16 sps:$4 sm:$0xff]   ;;  %v6888_v41 = vld [vmem:[#allocation5 + $0xa8] ss:$16 sps:$4 sm:$0xff]  }
 0x112   : > { %v6826_v32 = vld [vmem:[#allocation5 + $0x184] ss:$16 sps:$4 sm:$0xff]   ;;  %v6831_v39 = vld [vmem:[#allocation5 + $0x1a0] ss:$16 sps:$4 sm:$0xff]   ;;  %v6889_v42 = vld [vmem:[#allocation5 + $0xcc] ss:$16 sps:$4 sm:$0xff]  }
 0x113   : > { %1074 = vmatpush1.bf16.msra.mxu0 %v6801_v7  ;;  %v6829_v36 = vld [vmem:[#allocation5 + $0x1a4] ss:$16 sps:$4 sm:$0xff]   ;;  %v6834_v43 = vld [vmem:[#allocation5 + $0x1c0] ss:$16 sps:$4 sm:$0xff]   ;;  %v6891_v45 = vld [vmem:[#allocation5 + $0xc8] ss:$16 sps:$4 sm:$0xff]  }
 0x114   : > { %1075 = vmatprep.subr.bf16.mxu0 %v6802_v8  ;;  %1267 = vmatpush1.bf16.msra.mxu1 %v6879_v33  ;;  %v6832_v40 = vld [vmem:[#allocation5 + $0x1c4] ss:$16 sps:$4 sm:$0xff]   ;;  %v6895_v46 = vld [vmem:[#allocation5 + $0xec] ss:$16 sps:$4 sm:$0xff]   ;;  %v6837_v47 = vld [vmem:[#allocation5 + $0x1e0] ss:$16 sps:$4 sm:$0xff]  }
 0x115   : > { %1268 = vmatprep.subr.bf16.mxu1 %v6880_v34  ;;  %v6835_v44 = vld [vmem:[#allocation5 + $0x1e4] ss:$16 sps:$4 sm:$0xff]   ;;  %v6897_v48 = vld [vmem:[#allocation5 + $0xe8] ss:$16 sps:$4 sm:$0xff]   ;;  %v6898_v49 = vld [vmem:[#allocation5 + $0x10c] ss:$16 sps:$4 sm:$0xff]  }
 0x116   : > { %v6902_v50 = vld [vmem:[#allocation7 + $0x4] ss:$8 sps:$4 sm:$0xff]   ;;  %v8164_v51 = vld [vmem:[%s8140_s13] ss:$8 sps:$4 sm:$0xff]   ;;  %v8167_v52 = vld [vmem:[%s8140_s13 + $0x14] ss:$8 sps:$4 sm:$0xff]  }
 0x117   : > { %1076 = vmatpush1.bf16.msra.mxu0 %v6804_v9  ;;  %v6900_v53 = vld [vmem:[#allocation7] ss:$8 sps:$4 sm:$0xff]   ;;  %v6907_v55 = vld [vmem:[#allocation5 + $0x12c] ss:$16 sps:$4 sm:$0xff]   ;;  %v6912_v59 = vld [vmem:[#allocation7 + $0x10] ss:$8 sps:$4 sm:$0xff]  }
 0x118   : > { %1077 = vmatprep.subr.bf16.mxu0 %v6805_v10  ;;  %1269 = vmatpush1.bf16.msra.mxu1 %v6882_v37  ;;  %v6903_v54 = vld [vmem:[#allocation5 + $0x108] ss:$16 sps:$4 sm:$0xff]   ;;  %v6914_v56 = vld [vmem:[#allocation7 + $0x14] ss:$8 sps:$4 sm:$0xff]   ;;  %v6926_v60 = vld [vmem:[#allocation7 + $0x24] ss:$8 sps:$4 sm:$0xff]  }
 0x119   : > { %1270 = vmatprep.subr.bf16.mxu1 %v6886_v38  ;;  %v6909_v57 = vld [vmem:[#allocation5 + $0x128] ss:$16 sps:$4 sm:$0xff]   ;;  %v6910_v58 = vld [vmem:[#allocation5 + $0x14c] ss:$16 sps:$4 sm:$0xff]   ;;  %s9001_s16 = scalar_lea.vmem [#allocation17], %s5770_s22  ;;  %s6181_s24 = sshll.u32 %s7826_s15, 12 }
 0x11a   : > { %v8172_v61 = vld [vmem:[%s8140_s13 + $0x10] ss:$8 sps:$4 sm:$0xff]   ;;  %v8175_v62 = vld [vmem:[%s8140_s13 + $0x24] ss:$8 sps:$4 sm:$0xff]   ;;  %v6924_v1 = vld [vmem:[#allocation7 + $0x20] ss:$8 sps:$4 sm:$0xff]   ;;  %s9092_s23 = scalar_lea.hbm %s9149_s9, %s6181_s24 }
 0x11b   : > { %1078 = vmatpush1.bf16.msra.mxu0 %v6807_v11  ;;  %v6915_v63 = vld [vmem:[#allocation5 + $0x148] ss:$16 sps:$4 sm:$0xff]   ;;  %v6919_v0 = vld [vmem:[#allocation5 + $0x16c] ss:$16 sps:$4 sm:$0xff]   ;;  %s5605_s29 = sshll.u32 %s9001_s16, 4  ;;  %s5591_s18 = scalar_lea.sflag [#allocation4], %s8134_s1  ;;  %s9094_s29 = int_to_ptr.vmem [resolvable:$true] %s5605_s29 }
 0x11c   : > { %1079 = vmatprep.subr.bf16.mxu0 %v6808_v12  ;;  %1271 = vmatpush1.bf16.msra.mxu1 %v6888_v41  ;;  %v6938_v2 = vld [vmem:[#allocation7 + $0x34] ss:$8 sps:$4 sm:$0xff]   ;;  %v6921_v3 = vld [vmem:[#allocation5 + $0x168] ss:$16 sps:$4 sm:$0xff]   ;;  %v6948_v6 = vld [vmem:[#allocation7 + $0x44] ss:$8 sps:$4 sm:$0xff]  }
 0x11d   : > { %1272 = vmatprep.subr.bf16.mxu1 %v6889_v42  ;;  %v6922_v4 = vld [vmem:[#allocation5 + $0x18c] ss:$16 sps:$4 sm:$0xff]   ;;  %v6936_v5 = vld [vmem:[#allocation7 + $0x30] ss:$8 sps:$4 sm:$0xff]   ;;  %v8180_v7 = vld [vmem:[%s8140_s13 + $0x20] ss:$8 sps:$4 sm:$0xff]  }
 0x11e   : > { %v8183_v8 = vld [vmem:[%s8140_s13 + $0x34] ss:$8 sps:$4 sm:$0xff]   ;;  %v6927_v9 = vld [vmem:[#allocation5 + $0x188] ss:$16 sps:$4 sm:$0xff]   ;;  %v6960_v25 = vld [vmem:[#allocation7 + $0x84] ss:$8 sps:$4 sm:$0xff]  }
 0x11f   : > { %1080 = vmatpush1.bf16.msra.mxu0 %v6810_v14  ;;  %v6931_v10 = vld [vmem:[#allocation5 + $0x1ac] ss:$16 sps:$4 sm:$0xff]   ;;  %v6946_v11 = vld [vmem:[#allocation7 + $0x40] ss:$8 sps:$4 sm:$0xff]   ;;  %v6955_v24 = vld [vmem:[#allocation7 + $0x70] ss:$8 sps:$4 sm:$0xff]  }
 0x120   : > { %1081 = vmatprep.subr.bf16.mxu0 %v6811_v15  ;;  %1273 = vmatpush1.bf16.msra.mxu1 %v6891_v45  ;;  %v6951_v12 = vld [vmem:[#allocation7 + $0x54] ss:$8 sps:$4 sm:$0xff]   ;;  %v6933_v13 = vld [vmem:[#allocation5 + $0x1a8] ss:$16 sps:$4 sm:$0xff]   ;;  %v6856_v33 = vld [vmem:[%s8140_s13 + $0x64] ss:$8 sps:$4 sm:$0xff]  }
 0x121   : > { %1274 = vmatprep.subr.bf16.mxu1 %v6895_v46  ;;  %v6934_v14 = vld [vmem:[#allocation5 + $0x1cc] ss:$16 sps:$4 sm:$0xff]   ;;  %v6949_v15 = vld [vmem:[#allocation7 + $0x50] ss:$8 sps:$4 sm:$0xff]   ;;  %v6952_v21 = vld [vmem:[#allocation7 + $0x60] ss:$8 sps:$4 sm:$0xff]  }
 0x122   : > { %v6943_v20 = vld [vmem:[#allocation5 + $0x1ec] ss:$16 sps:$4 sm:$0xff]   ;;  %v6852_v26 = vld [vmem:[%s8140_s13 + $0x40] ss:$8 sps:$4 sm:$0xff]   ;;  %v6961_v30 = vld [vmem:[#allocation7 + $0x90] ss:$8 sps:$4 sm:$0xff]  }
 0x123   : > { %1082 = vmatpush1.bf16.msra.mxu0 %v6813_v16  ;;  %v8188_v16 = vld [vmem:[%s8140_s13 + $0x30] ss:$8 sps:$4 sm:$0xff]   ;;  %v6963_v29 = vld [vmem:[#allocation7 + $0x94] ss:$8 sps:$4 sm:$0xff]   ;;  %v6964_v34 = vld [vmem:[#allocation7 + $0xa0] ss:$8 sps:$4 sm:$0xff]  }
 0x124   : > { %1083 = vmatprep.subr.bf16.mxu0 %v6814_v17  ;;  %1275 = vmatpush1.bf16.msra.mxu1 %v6897_v48  ;;  %v6954_v17 = vld [vmem:[#allocation7 + $0x64] ss:$8 sps:$4 sm:$0xff]   ;;  %v6858_v38 = vld [vmem:[%s8140_s13 + $0x60] ss:$8 sps:$4 sm:$0xff]   ;;  %v6975_v41 = vld [vmem:[#allocation7 + $0xd4] ss:$8 sps:$4 sm:$0xff]  }
 0x125   : > { %1276 = vmatprep.subr.bf16.mxu1 %v6898_v49  ;;  %v6972_v37 = vld [vmem:[#allocation7 + $0xc4] ss:$8 sps:$4 sm:$0xff]   ;;  %v6973_v42 = vld [vmem:[#allocation7 + $0xd0] ss:$8 sps:$4 sm:$0xff]   ;;  %v6976_v46 = vld [vmem:[#allocation7 + $0xe0] ss:$8 sps:$4 sm:$0xff]  }
 0x126   : > { %v6865_v45 = vld [vmem:[%s8140_s13 + $0x84] ss:$8 sps:$4 sm:$0xff]   ;;  %v6874_v48 = vld [vmem:[%s8140_s13 + $0x94] ss:$8 sps:$4 sm:$0xff]   ;;  %v6876_v49 = vld [vmem:[%s8140_s13 + $0x90] ss:$8 sps:$4 sm:$0xff]  }
 0x127   : > { %1084 = vmatpush1.bf16.msra.mxu0 %v6816_v18  ;;  %v8191_v18 = vld [vmem:[%s8140_s13 + $0x44] ss:$8 sps:$4 sm:$0xff]   ;;  %s7652_s15 = scalar_lea.vmem %s9094_s29, 4096  ;;  %p9185_p1 = scmp.ne.s32.totalorder %s9171_s17, 0 }
 0x128   : > { %1085 = vmatprep.subr.bf16.mxu0 %v6817_v19  ;;  %1277 = vmatpush1.bf16.msra.mxu1 %v6903_v54  ;;  %v6939_v19 = vld [vmem:[#allocation5 + $0x1c8] ss:$16 sps:$4 sm:$0xff]   ;;  %v6904_v54 = vld [vmem:[%s8140_s13 + $0xc4] ss:$8 sps:$4 sm:$0xff]   ;;  %p7653_p10 = scmp.ne.s32.totalorder %s9094_s29, %s7652_s15  ;;  %s7752_s14 = smov [#allocation17]  }
 0x129   : > { %1278 = vmatprep.subr.bf16.mxu1 %v6907_v55  ;;  %v6981_v55 = vld [vmem:[#allocation7 + $0xf4] ss:$8 sps:$4 sm:$0xff]   ;;  %s7656_s21 = sshll.u32 %s7752_s14, 4  ;;  %s7657_s21 = int_to_ptr.vmem [resolvable:$false] %s7656_s21 }
 0x12a   : > { %p7654_p11 = pnand %p7653_p10, %p9185_p1  ;;  %s7658_s22 = scalar_lea.vmem %s7657_s21, 8192 }
 0x12b   : > { %1086 = vmatpush1.bf16.msra.mxu0 %v6819_v22  ;;  %v6957_v22 = vld [vmem:[#allocation7 + $0x74] ss:$8 sps:$4 sm:$0xff]   ;;  %p7659_p13 = scmp.lt.s32.totalorder %s9094_s29, %s7657_s21  ;;  %p7660_p8 = scmp.lt.s32.totalorder %s7658_s22, %s7652_s15 }
 0x12c   : > { %1087 = vmatprep.subr.bf16.mxu0 %v6820_v23  ;;  %1279 = vmatpush1.bf16.msra.mxu1 %v6909_v57  ;;  %v6945_v23 = vld [vmem:[#allocation5 + $0x1e8] ss:$16 sps:$4 sm:$0xff]   ;;  %p7655_p12 = pneg %p7654_p11 }
 0x12d   : > { %1280 = vmatprep.subr.bf16.mxu1 %v6910_v58  ;;  %v6906_v57 = vld [vmem:[%s8140_s13 + $0xc0] ss:$8 sps:$4 sm:$0xff]   ;;  %v6916_v58 = vld [vmem:[%s8140_s13 + $0xd4] ss:$8 sps:$4 sm:$0xff]   ;;  %p7661_p7 = por %p7660_p8, %p7659_p13 }
 0x12f   : > { %1088 = vmatpush1.bf16.msra.mxu0 %v6822_v27  ;;  %v6853_v27 = vld [vmem:[%s8140_s13 + $0x54] ss:$8 sps:$4 sm:$0xff]   ;;  %p7662_p9 = pnand %p7661_p7, %p7655_p12 }
 0x130   : > { %1089 = vmatprep.subr.bf16.mxu0 %v6823_v28  ;;  %1281 = vmatpush1.bf16.msra.mxu1 %v6915_v63  ;;  %v6958_v28 = vld [vmem:[#allocation7 + $0x80] ss:$8 sps:$4 sm:$0xff]   ;;  %v6940_v63 = vld [vmem:[%s8140_s13 + $0xf4] ss:$8 sps:$4 sm:$0xff]  }
 0x131   : > { %1282 = vmatprep.subr.bf16.mxu1 %v6919_v0  ;;  %v6942_v0 = vld [vmem:[%s8140_s13 + $0xf0] ss:$8 sps:$4 sm:$0xff]  }
 0x133   : > { %1090 = vmatpush1.bf16.msra.mxu0 %v6825_v31  ;;  %v6966_v31 = vld [vmem:[#allocation7 + $0xa4] ss:$8 sps:$4 sm:$0xff]  }
 0x134   : > { %1091 = vmatprep.subr.bf16.mxu0 %v6826_v32  ;;  %1283 = vmatpush1.bf16.msra.mxu1 %v6921_v3  ;;  %v6855_v32 = vld [vmem:[%s8140_s13 + $0x50] ss:$8 sps:$4 sm:$0xff]  }
 0x135   : > { %1284 = vmatprep.subr.bf16.mxu1 %v6922_v4  ;;  %v8231_v4 = vld [vmem:[#allocation16] ss:$8 sm:$0xf] }
 0x137   : > { %1092 = vmatpush1.bf16.msra.mxu0 %v6828_v35  ;;  %v6969_v35 = vld [vmem:[#allocation7 + $0xb4] ss:$8 sps:$4 sm:$0xff]  }
 0x138   : > { %1093 = vmatprep.subr.bf16.mxu0 %v6829_v36  ;;  %1285 = vmatpush1.bf16.msra.mxu1 %v6927_v9  ;;  %v6967_v36 = vld [vmem:[#allocation7 + $0xb0] ss:$8 sps:$4 sm:$0xff]  }
 0x139   : > { %1286 = vmatprep.subr.bf16.mxu1 %v6931_v10 }
 0x13b   : > { %1094 = vmatpush1.bf16.msra.mxu0 %v6831_v39  ;;  %v6859_v39 = vld [vmem:[%s8140_s13 + $0x74] ss:$8 sps:$4 sm:$0xff]  }
 0x13c   : > { %1095 = vmatprep.subr.bf16.mxu0 %v6832_v40  ;;  %1287 = vmatpush1.bf16.msra.mxu1 %v6933_v13  ;;  %v6970_v40 = vld [vmem:[#allocation7 + $0xc0] ss:$8 sps:$4 sm:$0xff]  }
 0x13d   : > { %1288 = vmatprep.subr.bf16.mxu1 %v6934_v14 }
 0x13f   : > { %1096 = vmatpush1.bf16.msra.mxu0 %v6834_v43  ;;  %v6978_v43 = vld [vmem:[#allocation7 + $0xe4] ss:$8 sps:$4 sm:$0xff]  }
 0x140   : > { %1097 = vmatprep.subr.bf16.mxu0 %v6835_v44  ;;  %1289 = vmatpush1.bf16.msra.mxu1 %v6939_v19  ;;  %v6861_v44 = vld [vmem:[%s8140_s13 + $0x70] ss:$8 sps:$4 sm:$0xff]  }
 0x141   : > { %1290 = vmatprep.subr.bf16.mxu1 %v6943_v20 }
 0x143   : > { %1098 = vmatpush1.bf16.msra.mxu0 %v6837_v47  ;;  %v6867_v47 = vld [vmem:[%s8140_s13 + $0x80] ss:$8 sps:$4 sm:$0xff]  }
 0x144   : > { %2042 = vmatprep.subr.bf16.mxu0 %v6902_v50  ;;  %1291 = vmatpush1.bf16.msra.mxu1 %v6945_v23  ;;  %v6883_v50 = vld [vmem:[%s8140_s13 + $0xa4] ss:$8 sps:$4 sm:$0xff]   ;;  %v6982_v23 = vld [vmem:[#allocation7 + $0x100] ss:$8 sps:$4 sm:$0xff]  }
 0x146   : > { %1100 = vmatmul.mubr.bf16.vlgmr.msra.gmra.mrb[0].mxu0 %v8164_v51 }
 0x147   : > { %1109 = vmatprep.mubr.bf16.mxu0 %v8167_v52  ;;  %2043 = vmatpush1.bf16.msra.mxu0 %v6900_v53  ;;  %v6894_v53 = vld [vmem:[%s8140_s13 + $0xb0] ss:$8 sps:$4 sm:$0xff]  }
 0x148   : > { %2044 = vmatprep.subr.bf16.mxu0 %v6914_v56  ;;  %1293 = vmatmul.mubr.bf16.vlgmr.msra.gmra.mrb[0].mxu1 %v8164_v51  ;;  %v6885_v51 = vld [vmem:[%s8140_s13 + $0xa0] ss:$8 sps:$4 sm:$0xff]   ;;  %v6979_v56 = vld [vmem:[#allocation7 + $0xf0] ss:$8 sps:$4 sm:$0xff]  }
 0x149   : > { %1302 = vmatprep.mubr.bf16.mxu1 %v8167_v52  ;;  %v6892_v52 = vld [vmem:[%s8140_s13 + $0xb4] ss:$8 sps:$4 sm:$0xff]  }
 0x14b   : > { %2045 = vmatpush1.bf16.msra.mxu0 %v6912_v59  ;;  %v6984_v59 = vld [vmem:[#allocation7 + $0x104] ss:$8 sps:$4 sm:$0xff]  }
 0x14c   : > { %2046 = vmatprep.subr.bf16.mxu0 %v6926_v60  ;;  %v6918_v60 = vld [vmem:[%s8140_s13 + $0xd0] ss:$8 sps:$4 sm:$0xff]  }
 0x14e   : > { %1110 = vmatmul.mubr.bf16.gmra.mrb[4].mxu0 %v8172_v61 }
 0x14f   : > { %1119 = vmatprep.mubr.bf16.mxu0 %v8175_v62  ;;  %2047 = vmatpush1.bf16.msra.mxu0 %v6924_v1  ;;  %v567_v1 = vlaneseq }
 0x150   : > { %2048 = vmatprep.subr.bf16.mxu0 %v6938_v2  ;;  %1303 = vmatmul.mubr.bf16.gmra.mrb[4].mxu1 %v8172_v61  ;;  %v6928_v61 = vld [vmem:[%s8140_s13 + $0xe4] ss:$8 sps:$4 sm:$0xff]  }
 0x151   : > { %1312 = vmatprep.mubr.bf16.mxu1 %v8175_v62  ;;  %v6930_v62 = vld [vmem:[%s8140_s13 + $0xe0] ss:$8 sps:$4 sm:$0xff]   ;;  %v8226_v2 = vshrl.u32 %v567_v1, 7 }
 0x153   : > { %2049 = vmatpush1.bf16.msra.mxu0 %v6936_v5  ;;  %v8229_v3 = vsub.s32 0, %v8226_v2  ;;  %v8234_v5 = vsub.s32 1, %v8226_v2 }
 0x154   : > { %2050 = vmatprep.subr.bf16.mxu0 %v6948_v6 }
 0x155   : > { %v8238_v6 = vrot.slane %v8231_v4, %v8229_v3 }
 0x156   : > { %1120 = vmatmul.mubr.bf16.gmra.mrb[8].mxu0 %v8180_v7 }
 0x157   : > { %1129 = vmatprep.mubr.bf16.mxu0 %v8183_v8  ;;  %2051 = vmatpush1.bf16.msra.mxu0 %v6946_v11 }
 0x158   : > { %2052 = vmatprep.subr.bf16.mxu0 %v6951_v12  ;;  %1313 = vmatmul.mubr.bf16.gmra.mrb[8].mxu1 %v8180_v7  ;;  %v8242_v7 = vrot.slane %v8231_v4, %v8234_v5 }
 0x159   : > { %1322 = vmatprep.mubr.bf16.mxu1 %v8183_v8 }
 0x15b   : > { %2053 = vmatpush1.bf16.msra.mxu0 %v6949_v15 }
 0x15c   : > { %2054 = vmatprep.subr.bf16.mxu0 %v6954_v17 }
 0x15e   : > { %1130 = vmatmul.mubr.bf16.gmra.mrb[12].mxu0 %v8188_v16 }
 0x15f   : > { %1139 = vmatprep.mubr.bf16.mxu0 %v8191_v18  ;;  %2055 = vmatpush1.bf16.msra.mxu0 %v6952_v21 }
 0x160   : > { %2056 = vmatprep.subr.bf16.mxu0 %v6957_v22  ;;  %1323 = vmatmul.mubr.bf16.gmra.mrb[12].mxu1 %v8188_v16 }
 0x161   : > { %1332 = vmatprep.mubr.bf16.mxu1 %v8191_v18 }
 0x163   : > { %2057 = vmatpush1.bf16.msra.mxu0 %v6955_v24 }
 0x164   : > { %2058 = vmatprep.subr.bf16.mxu0 %v6960_v25 }
 0x166   : > { %1140 = vmatmul.mubr.bf16.gmra.mrb[16].mxu0 %v6852_v26 }
 0x167   : > { %1149 = vmatprep.mubr.bf16.mxu0 %v6853_v27  ;;  %2059 = vmatpush1.bf16.msra.mxu0 %v6958_v28 }
 0x168   : > { %2060 = vmatprep.subr.bf16.mxu0 %v6963_v29  ;;  %1333 = vmatmul.mubr.bf16.gmra.mrb[16].mxu1 %v6852_v26  ;;  %v6987_v26 = vld [vmem:[#allocation7 + $0x114] ss:$8 sps:$4 sm:$0xff]  }
 0x169   : > { %1342 = vmatprep.mubr.bf16.mxu1 %v6853_v27 }
 0x16b   : > { %2061 = vmatpush1.bf16.msra.mxu0 %v6961_v30 }
 0x16c   : > { %2062 = vmatprep.subr.bf16.mxu0 %v6966_v31 }
 0x16e   : > { %1150 = vmatmul.mubr.bf16.gmra.mrb[20].mxu0 %v6855_v32 }
 0x16f   : > { %1159 = vmatprep.mubr.bf16.mxu0 %v6856_v33  ;;  %2063 = vmatpush1.bf16.msra.mxu0 %v6964_v34 }
 0x170   : > { %2064 = vmatprep.subr.bf16.mxu0 %v6969_v35  ;;  %1343 = vmatmul.mubr.bf16.gmra.mrb[20].mxu1 %v6855_v32  ;;  %v6985_v32 = vld [vmem:[#allocation7 + $0x110] ss:$8 sps:$4 sm:$0xff]   ;;  %v6990_v35 = vld [vmem:[#allocation7 + $0x124] ss:$8 sps:$4 sm:$0xff]  }
 0x171   : > { %1352 = vmatprep.mubr.bf16.mxu1 %v6856_v33 }
 0x173   : > { %2065 = vmatpush1.bf16.msra.mxu0 %v6967_v36 }
 0x174   : > { %2066 = vmatprep.subr.bf16.mxu0 %v6972_v37 }
 0x176   : > { %1160 = vmatmul.mubr.bf16.gmra.mrb[24].mxu0 %v6858_v38 }
 0x177   : > { %1169 = vmatprep.mubr.bf16.mxu0 %v6859_v39  ;;  %2067 = vmatpush1.bf16.msra.mxu0 %v6970_v40 }
 0x178   : > { %2068 = vmatprep.subr.bf16.mxu0 %v6975_v41  ;;  %1353 = vmatmul.mubr.bf16.gmra.mrb[24].mxu1 %v6858_v38  ;;  %v6988_v41 = vld [vmem:[#allocation7 + $0x120] ss:$8 sps:$4 sm:$0xff]  }
 0x179   : > { %1362 = vmatprep.mubr.bf16.mxu1 %v6859_v39 }
 0x17b   : > { %2069 = vmatpush1.bf16.msra.mxu0 %v6973_v42 }
 0x17c   : > { %2070 = vmatprep.subr.bf16.mxu0 %v6978_v43 }
 0x17e   : > { %1170 = vmatmul.mubr.bf16.gmra.mrb[28].mxu0 %v6861_v44 }
 0x17f   : > { %1179 = vmatprep.mubr.bf16.mxu0 %v6865_v45  ;;  %2071 = vmatpush1.bf16.msra.mxu0 %v6976_v46 }
 0x180   : > { %1363 = vmatmul.mubr.bf16.gmra.mrb[28].mxu1 %v6861_v44  ;;  %2072 = vmatprep.subr.bf16.mxu0 %v6981_v55  ;;  %v6993_v44 = vld [vmem:[#allocation7 + $0x134] ss:$8 sps:$4 sm:$0xff]  }
 0x181   : > { %1372 = vmatprep.mubr.bf16.mxu1 %v6865_v45 }
 0x183   : > { %2073 = vmatpush1.bf16.msra.mxu0 %v6979_v56 }
 0x184   : > { %2235 = vmatprep.subr.bf16.mxu0 %v6984_v59  ;;  %v6994_v59 = vld [vmem:[#allocation7 + $0x140] ss:$8 sps:$4 sm:$0xff]  }
 0x186   : > { %1180 = vmatmul.mubr.bf16.gmra.mrb[32].mxu0 %v6867_v47 }
 0x187   : > { %1189 = vmatprep.mubr.bf16.mxu0 %v6874_v48 }
 0x188   : > { %1373 = vmatmul.mubr.bf16.gmra.mrb[32].mxu1 %v6867_v47 }
 0x189   : > { %1382 = vmatprep.mubr.bf16.mxu1 %v6874_v48 }
 0x18e   : > { %1190 = vmatmul.mubr.bf16.gmra.mrb[36].mxu0 %v6876_v49 }
 0x18f   : > { %1199 = vmatprep.mubr.bf16.mxu0 %v6883_v50 }
 0x190   : > { %1383 = vmatmul.mubr.bf16.gmra.mrb[36].mxu1 %v6876_v49 }
 0x191   : > { %1392 = vmatprep.mubr.bf16.mxu1 %v6883_v50  ;;  %v6991_v50 = vld [vmem:[#allocation7 + $0x130] ss:$8 sps:$4 sm:$0xff]  }
 0x196   : > { %1200 = vmatmul.mubr.bf16.gmra.mrb[40].mxu0 %v6885_v51 }
 0x197   : > { %1209 = vmatprep.mubr.bf16.mxu0 %v6892_v52 }
 0x198   : > { %1393 = vmatmul.mubr.bf16.gmra.mrb[40].mxu1 %v6885_v51 }
 0x199   : > { %1402 = vmatprep.mubr.bf16.mxu1 %v6892_v52 }
 0x19e   : > { %1210 = vmatmul.mubr.bf16.gmra.mrb[44].mxu0 %v6894_v53 }
 0x19f   : > { %1219 = vmatprep.mubr.bf16.mxu0 %v6904_v54 }
 0x1a0   : > { %1403 = vmatmul.mubr.bf16.gmra.mrb[44].mxu1 %v6894_v53  ;;  %v6996_v53 = vld [vmem:[#allocation7 + $0x144] ss:$8 sps:$4 sm:$0xff]  }
 0x1a1   : > { %1412 = vmatprep.mubr.bf16.mxu1 %v6904_v54 }
 0x1a6   : > { %1220 = vmatmul.mubr.bf16.gmra.mrb[48].mxu0 %v6906_v57 }
 0x1a7   : > { %1229 = vmatprep.mubr.bf16.mxu0 %v6916_v58 }
 0x1a8   : > { %1413 = vmatmul.mubr.bf16.gmra.mrb[48].mxu1 %v6906_v57 }
 0x1a9   : > { %1422 = vmatprep.mubr.bf16.mxu1 %v6916_v58 }
 0x1ae   : > { %1230 = vmatmul.mubr.bf16.gmra.mrb[52].mxu0 %v6918_v60 }
 0x1af   : > { %1239 = vmatprep.mubr.bf16.mxu0 %v6928_v61 }
 0x1b0   : > { %1423 = vmatmul.mubr.bf16.gmra.mrb[52].mxu1 %v6918_v60 }
 0x1b1   : > { %1432 = vmatprep.mubr.bf16.mxu1 %v6928_v61 }
 0x1b6   : > { %1240 = vmatmul.mubr.bf16.gmra.mrb[56].mxu0 %v6930_v62 }
 0x1b7   : > { %1249 = vmatprep.mubr.bf16.mxu0 %v6940_v63 }
 0x1b8   : > { %1433 = vmatmul.mubr.bf16.gmra.mrb[56].mxu1 %v6930_v62  ;;  %v6999_v62 = vld [vmem:[#allocation7 + $0x154] ss:$8 sps:$4 sm:$0xff]  }
 0x1b9   : > { %1442 = vmatprep.mubr.bf16.mxu1 %v6940_v63  ;;  %v577_v63 = vsub.s32 2, %v8226_v2 }
 0x1be   : > { %1250 = vmatmul.mubr.bf16.gmra.mrb[60].mxu0 %v6942_v0 }
 0x1c0   : > { %1443 = vmatmul.mubr.bf16.gmra.mrb[60].mxu1 %v6942_v0 }
 0x219   : > { %v1101_v8 = vpop.f32.mrb[0].mxu0 }
 0x21a   : > { %v1102_v9 = vadd.f32 %v1101_v8, %v8238_v6  ;;  %v1103_v10 = vpop.f32.mrb[1].mxu0  ;;  %v581_v8 = vsub.s32 3, %v8226_v2 }
 0x21b   : > { %v1104_v11 = vadd.f32 %v1103_v10, %v8242_v7  ;;  %v1105_v12 = vpop.f32.mrb[2].mxu0 }
 0x21c   : > { %v1106_v13 = vadd.f32 %v1105_v12, %v8238_v6  ;;  %v1107_v14 = vpop.f32.mrb[3].mxu0  ;;  %v1453_v16 = vmax.f32 %v1102_v9, 0.0  ;;  %v6997_v12 = vld [vmem:[#allocation7 + $0x150] ss:$8 sps:$4 sm:$0xff]  }
 0x21d   : > { %v1108_v15 = vadd.f32 %v1107_v14, %v8242_v7  ;;  %v1454_v18 = vmax.f32 %v1104_v11, 0.0 }
 0x21e   : > { %v1457_v17 = vmax.f32 %v1106_v13, 0.0 }
 0x21f   : > { %v1458_v19 = vmax.f32 %v1108_v15, 0.0  ;;  %v7002_v15 = vld [vmem:[#allocation7 + $0x164] ss:$8 sps:$4 sm:$0xff]  }
 0x220   : > { %v1581_v20 = vpack.c.bf16 %v1457_v17, %v1453_v16  ;;  %v8265_v16 = vrot.slane %v8231_v4, %v577_v63 }
 0x221   : > { %v1582_v21 = vpack.c.bf16 %v1458_v19, %v1454_v18  ;;  %v1111_v22 = vpop.f32.mrb[4].mxu0  ;;  %v8270_v19 = vrot.slane %v8231_v4, %v581_v8 }
 0x222   : > { %v1112_v24 = vadd.f32 %v1111_v22, %v8238_v6  ;;  %v1113_v25 = vpop.f32.mrb[5].mxu0 }
 0x223   : > { %v1114_v27 = vadd.f32 %v1113_v25, %v8242_v7  ;;  %v1115_v28 = vpop.f32.mrb[6].mxu0  ;;  %2074 = vmatprep.mubr.bf16.mxu0 %v1582_v21 }
 0x224   : > { %v1116_v29 = vadd.f32 %v1115_v28, %v8238_v6  ;;  %v1117_v30 = vpop.f32.mrb[7].mxu0  ;;  %2075 = vmatmul.mubr.bf16.vlgmr.msra.gmra.mrb[64].mxu0 %v1581_v20  ;;  %v1461_v33 = vmax.f32 %v1112_v24, 0.0  ;;  %v1294_v24 = vpop.f32.mrb[0].mxu1 }
 0x225   : > { %v1118_v31 = vadd.f32 %v1117_v30, %v8242_v7  ;;  %2236 = vmatpush1.bf16.msra.mxu0 %v6982_v23  ;;  %v1462_v36 = vmax.f32 %v1114_v27, 0.0  ;;  %v7000_v23 = vld [vmem:[#allocation7 + $0x160] ss:$8 sps:$4 sm:$0xff]   ;;  %v7005_v27 = vld [vmem:[#allocation7 + $0x174] ss:$8 sps:$4 sm:$0xff]   ;;  %v1295_v28 = vadd.f32 %v1294_v24, %v8265_v16 }
 0x226   : > { %v1465_v34 = vmax.f32 %v1116_v29, 0.0  ;;  %2237 = vmatprep.subr.bf16.mxu0 %v6987_v26  ;;  %v1296_v29 = vpop.f32.mrb[1].mxu1 }
 0x227   : > { %v1466_v37 = vmax.f32 %v1118_v31, 0.0  ;;  %v1297_v4 = vadd.f32 %v1296_v29, %v8270_v19 }
 0x228   : > { %v1585_v38 = vpack.c.bf16 %v1465_v34, %v1461_v33 }
 0x229   : > { %v1586_v39 = vpack.c.bf16 %v1466_v37, %v1462_v36  ;;  %v1121_v40 = vpop.f32.mrb[8].mxu0  ;;  %2238 = vmatpush1.bf16.msra.mxu0 %v6985_v32  ;;  %v1298_v32 = vpop.f32.mrb[2].mxu1 }
 0x22a   : > { %v1122_v42 = vadd.f32 %v1121_v40, %v8238_v6  ;;  %v1123_v43 = vpop.f32.mrb[9].mxu0  ;;  %2239 = vmatprep.subr.bf16.mxu0 %v6990_v35  ;;  %v1455_v35 = vmax.f32 %v1295_v28, 0.0  ;;  %v1299_v36 = vadd.f32 %v1298_v32, %v8265_v16  ;;  %v1300_v37 = vpop.f32.mrb[3].mxu1  ;;  %v1456_v40 = vmax.f32 %v1297_v4, 0.0 }
 0x22b   : > { %v1124_v45 = vadd.f32 %v1123_v43, %v8242_v7  ;;  %v1125_v46 = vpop.f32.mrb[10].mxu0  ;;  %2084 = vmatprep.mubr.bf16.mxu0 %v1586_v39  ;;  %v7003_v39 = vld [vmem:[#allocation7 + $0x170] ss:$8 sps:$4 sm:$0xff]  }
 0x22c   : > { %v1126_v47 = vadd.f32 %v1125_v46, %v8238_v6  ;;  %v1127_v48 = vpop.f32.mrb[11].mxu0  ;;  %2085 = vmatmul.mubr.bf16.gmra.mrb[68].mxu0 %v1585_v38  ;;  %v1469_v51 = vmax.f32 %v1122_v42, 0.0 }
 0x22d   : > { %v1128_v49 = vadd.f32 %v1127_v48, %v8242_v7  ;;  %2240 = vmatpush1.bf16.msra.mxu0 %v6988_v41  ;;  %v1470_v54 = vmax.f32 %v1124_v45, 0.0  ;;  %v1301_v41 = vadd.f32 %v1300_v37, %v8270_v19  ;;  %v1459_v45 = vmax.f32 %v1299_v36, 0.0 }
 0x22e   : > { %v1473_v52 = vmax.f32 %v1126_v47, 0.0  ;;  %2241 = vmatprep.subr.bf16.mxu0 %v6993_v44  ;;  %v7008_v44 = vld [vmem:[#allocation7 + $0x184] ss:$8 sps:$4 sm:$0xff]  }
 0x22f   : > { %v1474_v55 = vmax.f32 %v1128_v49, 0.0  ;;  %v1460_v48 = vmax.f32 %v1301_v41, 0.0 }
 0x230   : > { %v1589_v56 = vpack.c.bf16 %v1473_v52, %v1469_v51 }
 0x231   : > { %v1590_v57 = vpack.c.bf16 %v1474_v55, %v1470_v54  ;;  %v1131_v58 = vpop.f32.mrb[12].mxu0  ;;  %2242 = vmatpush1.bf16.msra.mxu0 %v6991_v50  ;;  %v8280_v50 = vpack.c.bf16 %v1459_v45, %v1455_v35  ;;  %v1304_v54 = vpop.f32.mrb[4].mxu1  ;;  %v8282_v55 = vpack.c.bf16 %v1460_v48, %v1456_v40  ;;  %v7017_v35 = vld [vmem:[#allocation7 + $0x1b4] ss:$8 sps:$4 sm:$0xff]   ;;  %v7015_v48 = vld [vmem:[#allocation7 + $0x1b0] ss:$8 sps:$4 sm:$0xff]  }
 0x232   : > { %v1132_v60 = vadd.f32 %v1131_v58, %v8238_v6  ;;  %v1133_v61 = vpop.f32.mrb[13].mxu0  ;;  %2243 = vmatprep.subr.bf16.mxu0 %v6996_v53  ;;  %v7006_v53 = vld [vmem:[#allocation7 + $0x180] ss:$8 sps:$4 sm:$0xff]   ;;  %v7011_v58 = vld [vmem:[#allocation7 + $0x194] ss:$8 sps:$4 sm:$0xff]  }
 0x233   : > { %v1134_v0 = vadd.f32 %v1133_v61, %v8242_v7  ;;  %v1135_v1 = vpop.f32.mrb[14].mxu0  ;;  %2094 = vmatprep.mubr.bf16.mxu0 %v1590_v57 }
 0x234   : > { %v1136_v9 = vadd.f32 %v1135_v1, %v8238_v6  ;;  %v1137_v10 = vpop.f32.mrb[15].mxu0  ;;  %2095 = vmatmul.mubr.bf16.gmra.mrb[72].mxu0 %v1589_v56  ;;  %v1477_v13 = vmax.f32 %v1132_v60, 0.0  ;;  %v1306_v60 = vpop.f32.mrb[5].mxu1 }
 0x235   : > { %v1138_v11 = vadd.f32 %v1137_v10, %v8242_v7  ;;  %2244 = vmatpush1.bf16.msra.mxu0 %v6994_v59  ;;  %v1478_v17 = vmax.f32 %v1134_v0, 0.0  ;;  %v1305_v59 = vadd.f32 %v1304_v54, %v8265_v16  ;;  %v1307_v0 = vadd.f32 %v1306_v60, %v8270_v19  ;;  %v1308_v1 = vpop.f32.mrb[6].mxu1  ;;  %v7020_v54 = vld [vmem:[#allocation7 + $0x1c4] ss:$8 sps:$4 sm:$0xff]  }
 0x236   : > { %v1481_v14 = vmax.f32 %v1136_v9, 0.0  ;;  %2245 = vmatprep.subr.bf16.mxu0 %v6999_v62 }
 0x237   : > { %v1482_v18 = vmax.f32 %v1138_v11, 0.0  ;;  %v1463_v11 = vmax.f32 %v1305_v59, 0.0 }
 0x238   : > { %v1593_v20 = vpack.c.bf16 %v1481_v14, %v1477_v13  ;;  %v1310_v13 = vpop.f32.mrb[7].mxu1 }
 0x239   : > { %v1594_v21 = vpack.c.bf16 %v1482_v18, %v1478_v17  ;;  %v1141_v22 = vpop.f32.mrb[16].mxu0  ;;  %2246 = vmatpush1.bf16.msra.mxu0 %v6997_v12  ;;  %v1309_v12 = vadd.f32 %v1308_v1, %v8265_v16  ;;  %v1464_v17 = vmax.f32 %v1307_v0, 0.0  ;;  %v1311_v18 = vadd.f32 %v1310_v13, %v8270_v19  ;;  %v1314_v4 = vpop.f32.mrb[8].mxu1  ;;  %v7018_v1 = vld [vmem:[#allocation7 + $0x1c0] ss:$8 sps:$4 sm:$0xff]  }
 0x23a   : > { %v1142_v25 = vadd.f32 %v1141_v22, %v8238_v6  ;;  %v1143_v26 = vpop.f32.mrb[17].mxu0  ;;  %2247 = vmatprep.subr.bf16.mxu0 %v7002_v15  ;;  %v7009_v15 = vld [vmem:[#allocation7 + $0x190] ss:$8 sps:$4 sm:$0xff]   ;;  %v7014_v22 = vld [vmem:[#allocation7 + $0x1a4] ss:$8 sps:$4 sm:$0xff]   ;;  %v1315_v36 = vadd.f32 %v1314_v4, %v8265_v16  ;;  %v1316_v37 = vpop.f32.mrb[9].mxu1 }
 0x23b   : > { %v1144_v30 = vadd.f32 %v1143_v26, %v8242_v7  ;;  %v1145_v31 = vpop.f32.mrb[18].mxu0  ;;  %2104 = vmatprep.mubr.bf16.mxu0 %v1594_v21  ;;  %v1468_v26 = vmax.f32 %v1311_v18, 0.0  ;;  %v1317_v40 = vadd.f32 %v1316_v37, %v8270_v19  ;;  %v1318_v41 = vpop.f32.mrb[10].mxu1  ;;  %v7023_v13 = vld [vmem:[#allocation7 + $0x1d4] ss:$8 sps:$4 sm:$0xff]  }
 0x23c   : > { %v1146_v33 = vadd.f32 %v1145_v31, %v8238_v6  ;;  %v1147_v34 = vpop.f32.mrb[19].mxu0  ;;  %2105 = vmatmul.mubr.bf16.gmra.mrb[76].mxu0 %v1593_v20  ;;  %v1485_v42 = vmax.f32 %v1142_v25, 0.0  ;;  %v7012_v31 = vld [vmem:[#allocation7 + $0x1a0] ss:$8 sps:$4 sm:$0xff]   ;;  %v1319_v45 = vadd.f32 %v1318_v41, %v8265_v16 }
 0x23d   : > { %v1148_v38 = vadd.f32 %v1147_v34, %v8242_v7  ;;  %2248 = vmatpush1.bf16.msra.mxu0 %v7000_v23  ;;  %v1486_v46 = vmax.f32 %v1144_v30, 0.0  ;;  %v1467_v23 = vmax.f32 %v1309_v12, 0.0  ;;  %v8294_v32 = vpack.c.bf16 %v1468_v26, %v1464_v17 }
 0x23e   : > { %v1489_v43 = vmax.f32 %v1146_v33, 0.0  ;;  %2249 = vmatprep.subr.bf16.mxu0 %v7005_v27 }
 0x23f   : > { %v1490_v47 = vmax.f32 %v1148_v38, 0.0  ;;  %v8292_v28 = vpack.c.bf16 %v1467_v23, %v1463_v11 }
 0x240   : > { %v1597_v49 = vpack.c.bf16 %v1489_v43, %v1485_v42 }
 0x241   : > { %v1598_v51 = vpack.c.bf16 %v1490_v47, %v1486_v46  ;;  %v1151_v52 = vpop.f32.mrb[20].mxu0  ;;  %2250 = vmatpush1.bf16.msra.mxu0 %v7003_v39  ;;  %v1320_v46 = vpop.f32.mrb[11].mxu1 }
 0x242   : > { %v1152_v56 = vadd.f32 %v1151_v52, %v8238_v6  ;;  %v1153_v57 = vpop.f32.mrb[21].mxu0  ;;  %2251 = vmatprep.subr.bf16.mxu0 %v7008_v44  ;;  %v1471_v44 = vmax.f32 %v1315_v36, 0.0 }
 0x243   : > { %v1154_v61 = vadd.f32 %v1153_v57, %v8242_v7  ;;  %v1155_v62 = vpop.f32.mrb[22].mxu0  ;;  %2114 = vmatprep.mubr.bf16.mxu0 %v1598_v51  ;;  %v1321_v51 = vadd.f32 %v1320_v46, %v8270_v19 }
 0x244   : > { %v1156_v9 = vadd.f32 %v1155_v62, %v8238_v6  ;;  %v1157_v10 = vpop.f32.mrb[23].mxu0  ;;  %2115 = vmatmul.mubr.bf16.gmra.mrb[80].mxu0 %v1597_v49  ;;  %v1493_v20 = vmax.f32 %v1152_v56, 0.0  ;;  %v1472_v49 = vmax.f32 %v1317_v40, 0.0  ;;  %v1475_v56 = vmax.f32 %v1319_v45, 0.0 }
 0x245   : > { %v1158_v14 = vadd.f32 %v1157_v10, %v8242_v7  ;;  %2252 = vmatpush1.bf16.msra.mxu0 %v7006_v53  ;;  %v1494_v24 = vmax.f32 %v1154_v61, 0.0  ;;  %v1476_v59 = vmax.f32 %v1321_v51, 0.0 }
 0x246   : > { %v1497_v21 = vmax.f32 %v1156_v9, 0.0  ;;  %2253 = vmatprep.subr.bf16.mxu0 %v7011_v58  ;;  %v8304_v61 = vpack.c.bf16 %v1475_v56, %v1471_v44  ;;  %v1324_v9 = vpop.f32.mrb[12].mxu1 }
 0x247   : > { %v1498_v25 = vmax.f32 %v1158_v14, 0.0  ;;  %v8306_v10 = vpack.c.bf16 %v1476_v59, %v1472_v49  ;;  %v1325_v14 = vadd.f32 %v1324_v9, %v8265_v16 }
 0x248   : > { %v1601_v27 = vpack.c.bf16 %v1497_v21, %v1493_v20 }
 0x249   : > { %v1602_v29 = vpack.c.bf16 %v1498_v25, %v1494_v24  ;;  %v1161_v30 = vpop.f32.mrb[24].mxu0  ;;  %2254 = vmatpush1.bf16.msra.mxu0 %v7009_v15  ;;  %v1326_v15 = vpop.f32.mrb[13].mxu1  ;;  %v1479_v24 = vmax.f32 %v1325_v14, 0.0 }
 0x24a   : > { %v1162_v33 = vadd.f32 %v1161_v30, %v8238_v6  ;;  %v1163_v34 = vpop.f32.mrb[25].mxu0  ;;  %2255 = vmatprep.subr.bf16.mxu0 %v7014_v22  ;;  %v1327_v20 = vadd.f32 %v1326_v15, %v8270_v19  ;;  %v1328_v21 = vpop.f32.mrb[14].mxu1 }
 0x24b   : > { %v1164_v38 = vadd.f32 %v1163_v34, %v8242_v7  ;;  %v1165_v39 = vpop.f32.mrb[26].mxu0  ;;  %2124 = vmatprep.mubr.bf16.mxu0 %v1602_v29  ;;  %v1329_v25 = vadd.f32 %v1328_v21, %v8265_v16  ;;  %v1330_v26 = vpop.f32.mrb[15].mxu1  ;;  %v7021_v29 = vld [vmem:[#allocation7 + $0x1d0] ss:$8 sps:$4 sm:$0xff]   ;;  %v7026_v34 = vld [vmem:[#allocation7 + $0x1e4] ss:$8 sps:$4 sm:$0xff]  }
 0x24c   : > { %v1166_v42 = vadd.f32 %v1165_v39, %v8238_v6  ;;  %v1167_v43 = vpop.f32.mrb[27].mxu0  ;;  %2125 = vmatmul.mubr.bf16.gmra.mrb[84].mxu0 %v1601_v27  ;;  %v1501_v52 = vmax.f32 %v1162_v33, 0.0  ;;  %v1480_v30 = vmax.f32 %v1327_v20, 0.0  ;;  %v1334_v44 = vpop.f32.mrb[16].mxu1 }
 0x24d   : > { %v1168_v47 = vadd.f32 %v1167_v43, %v8242_v7  ;;  %2256 = vmatpush1.bf16.msra.mxu0 %v7012_v31  ;;  %v1502_v57 = vmax.f32 %v1164_v38, 0.0  ;;  %v1331_v31 = vadd.f32 %v1330_v26, %v8270_v19  ;;  %v7024_v43 = vld [vmem:[#allocation7 + $0x1e0] ss:$8 sps:$4 sm:$0xff]   ;;  %v1335_v49 = vadd.f32 %v1334_v44, %v8265_v16  ;;  %v1336_v51 = vpop.f32.mrb[17].mxu1 }
 0x24e   : > { %v1505_v53 = vmax.f32 %v1166_v42, 0.0  ;;  %2257 = vmatprep.subr.bf16.mxu0 %v7017_v35  ;;  %v1483_v35 = vmax.f32 %v1329_v25, 0.0  ;;  %v1338_v56 = vpop.f32.mrb[18].mxu1 }
 0x24f   : > { %v1506_v58 = vmax.f32 %v1168_v47, 0.0  ;;  %v1484_v38 = vmax.f32 %v1331_v31, 0.0  ;;  %v1487_v59 = vmax.f32 %v1335_v49, 0.0 }
 0x250   : > { %v1605_v60 = vpack.c.bf16 %v1505_v53, %v1501_v52  ;;  %v8316_v40 = vpack.c.bf16 %v1483_v35, %v1479_v24 }
 0x251   : > { %v1606_v62 = vpack.c.bf16 %v1506_v58, %v1502_v57  ;;  %v1171_v0 = vpop.f32.mrb[28].mxu0  ;;  %2258 = vmatpush1.bf16.msra.mxu0 %v7015_v48  ;;  %v8318_v45 = vpack.c.bf16 %v1484_v38, %v1480_v30  ;;  %v7029_v48 = vld [vmem:[#allocation7 + $0x1f4] ss:$8 sps:$4 sm:$0xff]  }
 0x252   : > { %v1172_v11 = vadd.f32 %v1171_v0, %v8238_v6  ;;  %v1173_v12 = vpop.f32.mrb[29].mxu0  ;;  %2259 = vmatprep.subr.bf16.mxu0 %v7020_v54  ;;  %v1337_v54 = vadd.f32 %v1336_v51, %v8270_v19 }
 0x253   : > { %v1174_v17 = vadd.f32 %v1173_v12, %v8242_v7  ;;  %v1175_v18 = vpop.f32.mrb[30].mxu0  ;;  %2134 = vmatprep.mubr.bf16.mxu0 %v1606_v62  ;;  %v1340_v62 = vpop.f32.mrb[19].mxu1 }
 0x254   : > { %v1176_v22 = vadd.f32 %v1175_v18, %v8238_v6  ;;  %v1177_v23 = vpop.f32.mrb[31].mxu0  ;;  %2135 = vmatmul.mubr.bf16.gmra.mrb[88].mxu0 %v1605_v60  ;;  %v1509_v4 = vmax.f32 %v1172_v11, 0.0  ;;  %v1339_v60 = vadd.f32 %v1338_v56, %v8265_v16  ;;  %v1488_v9 = vmax.f32 %v1337_v54, 0.0  ;;  %v1344_v24 = vpop.f32.mrb[20].mxu1 }
 0x255   : > { %v1178_v27 = vadd.f32 %v1177_v23, %v8242_v7  ;;  %2260 = vmatpush1.bf16.msra.mxu0 %v7018_v1  ;;  %v1510_v36 = vmax.f32 %v1174_v17, 0.0  ;;  %v7027_v1 = vld [vmem:[#allocation7 + $0x1f0] ss:$8 sps:$4 sm:$0xff]   ;;  %v1341_v11 = vadd.f32 %v1340_v62, %v8270_v19  ;;  %v1346_v30 = vpop.f32.mrb[21].mxu1 }
 0x256   : > { %v1513_v33 = vmax.f32 %v1176_v22, 0.0  ;;  %2261 = vmatprep.subr.bf16.mxu0 %v7023_v13  ;;  %v1491_v14 = vmax.f32 %v1339_v60, 0.0 }
 0x257   : > { %v1514_v37 = vmax.f32 %v1178_v27, 0.0  ;;  %v1492_v18 = vmax.f32 %v1341_v11, 0.0 }
 0x258   : > { %v1609_v39 = vpack.c.bf16 %v1513_v33, %v1509_v4  ;;  %v8328_v21 = vpack.c.bf16 %v1491_v14, %v1487_v59  ;;  %v1347_v33 = vadd.f32 %v1346_v30, %v8270_v19 }
 0x259   : > { %v1610_v41 = vpack.c.bf16 %v1514_v37, %v1510_v36  ;;  %v1181_v42 = vpop.f32.mrb[32].mxu0  ;;  %2262 = vmatpush1.bf16.msra.mxu0 %v7021_v29  ;;  %v8330_v25 = vpack.c.bf16 %v1492_v18, %v1488_v9  ;;  %v1345_v29 = vadd.f32 %v1344_v24, %v8265_v16 }
 0x25a   : > { %v1182_v46 = vadd.f32 %v1181_v42, %v8238_v6  ;;  %v1183_v47 = vpop.f32.mrb[33].mxu0  ;;  %2263 = vmatprep.subr.bf16.mxu0 %v7026_v34  ;;  %v1348_v34 = vpop.f32.mrb[22].mxu1  ;;  %v1496_v42 = vmax.f32 %v1347_v33, 0.0 }
 0x25b   : > { %v1184_v52 = vadd.f32 %v1183_v47, %v8242_v7  ;;  %v1185_v53 = vpop.f32.mrb[34].mxu0  ;;  %2144 = vmatprep.mubr.bf16.mxu0 %v1610_v41  ;;  %v1495_v37 = vmax.f32 %v1345_v29, 0.0  ;;  %v1349_v38 = vadd.f32 %v1348_v34, %v8265_v16 }
 0x25c   : > { %v1186_v57 = vadd.f32 %v1185_v53, %v8238_v6  ;;  %v1187_v58 = vpop.f32.mrb[35].mxu0  ;;  %2145 = vmatmul.mubr.bf16.gmra.mrb[92].mxu0 %v1609_v39  ;;  %v1517_v12 = vmax.f32 %v1182_v46, 0.0  ;;  %v1350_v39 = vpop.f32.mrb[23].mxu1 }
 0x25d   : > { %v1188_v0 = vadd.f32 %v1187_v58, %v8242_v7  ;;  %2264 = vmatpush1.bf16.msra.mxu0 %v7024_v43  ;;  %v1518_v15 = vmax.f32 %v1184_v52, 0.0  ;;  %v1351_v43 = vadd.f32 %v1350_v39, %v8270_v19  ;;  %v1499_v47 = vmax.f32 %v1349_v38, 0.0 }
 0x25e   : > { %v1521_v13 = vmax.f32 %v1186_v57, 0.0  ;;  %2265 = vmatprep.subr.bf16.mxu0 %v7029_v48  ;;  %v1354_v57 = vpop.f32.mrb[24].mxu1 }
 0x25f   : > { %v1522_v17 = vmax.f32 %v1188_v0, 0.0  ;;  %v1500_v51 = vmax.f32 %v1351_v43, 0.0  ;;  %v8340_v53 = vpack.c.bf16 %v1499_v47, %v1495_v37  ;;  %v1355_v62 = vadd.f32 %v1354_v57, %v8265_v16  ;;  %v1356_v0 = vpop.f32.mrb[25].mxu1 }
 0x260   : > { %v1613_v20 = vpack.c.bf16 %v1521_v13, %v1517_v12  ;;  %v1357_v11 = vadd.f32 %v1356_v0, %v8270_v19  ;;  %v1358_v12 = vpop.f32.mrb[26].mxu1 }
 0x261   : > { %v1614_v22 = vpack.c.bf16 %v1522_v17, %v1518_v15  ;;  %v1191_v23 = vpop.f32.mrb[36].mxu0  ;;  %2266 = vmatpush1.bf16.msra.mxu0 %v7027_v1  ;;  %v8342_v58 = vpack.c.bf16 %v1500_v51, %v1496_v42  ;;  %v1503_v15 = vmax.f32 %v1355_v62, 0.0  ;;  %v1359_v17 = vadd.f32 %v1358_v12, %v8265_v16  ;;  %v1360_v18 = vpop.f32.mrb[27].mxu1 }
 0x262   : > { %v1192_v26 = vadd.f32 %v1191_v23, %v8238_v6  ;;  %v1193_v27 = vpop.f32.mrb[37].mxu0  ;;  %v1361_v23 = vadd.f32 %v1360_v18, %v8270_v19 }
 0x263   : > { %v1194_v31 = vadd.f32 %v1193_v27, %v8242_v7  ;;  %v1195_v4 = vpop.f32.mrb[38].mxu0  ;;  %2154 = vmatprep.mubr.bf16.mxu0 %v1614_v22  ;;  %v1504_v22 = vmax.f32 %v1357_v11, 0.0  ;;  %v1507_v27 = vmax.f32 %v1359_v17, 0.0 }
 0x264   : > { %v1196_v35 = vadd.f32 %v1195_v4, %v8238_v6  ;;  %v1197_v36 = vpop.f32.mrb[39].mxu0  ;;  %2155 = vmatmul.mubr.bf16.gmra.mrb[96].mxu0 %v1613_v20  ;;  %v1525_v44 = vmax.f32 %v1192_v26, 0.0 }
 0x265   : > { %v1198_v41 = vadd.f32 %v1197_v36, %v8242_v7  ;;  %v1526_v48 = vmax.f32 %v1194_v31, 0.0  ;;  %v1508_v31 = vmax.f32 %v1361_v23, 0.0  ;;  %v8352_v33 = vpack.c.bf16 %v1507_v27, %v1503_v15  ;;  %v1364_v36 = vpop.f32.mrb[28].mxu1 }
 0x266   : > { %v1529_v46 = vmax.f32 %v1196_v35, 0.0  ;;  %v1366_v42 = vpop.f32.mrb[29].mxu1 }
 0x267   : > { %v1530_v49 = vmax.f32 %v1198_v41, 0.0  ;;  %v8354_v37 = vpack.c.bf16 %v1508_v31, %v1504_v22  ;;  %v1365_v41 = vadd.f32 %v1364_v36, %v8265_v16  ;;  %v1368_v47 = vpop.f32.mrb[30].mxu1 }
 0x268   : > { %v1617_v52 = vpack.c.bf16 %v1529_v46, %v1525_v44  ;;  %v1367_v46 = vadd.f32 %v1366_v42, %v8270_v19  ;;  %v7030_v42 = vld [vmem:[#allocation8 + $0x40] sm:$0xff]  }
 0x269   : > { %v1618_v54 = vpack.c.bf16 %v1530_v49, %v1526_v48  ;;  %v1201_v56 = vpop.f32.mrb[40].mxu0  ;;  %v1511_v51 = vmax.f32 %v1365_v41, 0.0  ;;  %6182 = vmatprep.subr.bf16.mxu1 %v7030_v42 }
 0x26a   : > { %v1202_v59 = vadd.f32 %v1201_v56, %v8238_v6  ;;  %v1203_v60 = vpop.f32.mrb[41].mxu0  ;;  %v1512_v57 = vmax.f32 %v1367_v46, 0.0 }
 0x26b   : > { %v1204_v1 = vadd.f32 %v1203_v60, %v8242_v7  ;;  %v1205_v9 = vpop.f32.mrb[42].mxu0  ;;  %2164 = vmatprep.mubr.bf16.mxu0 %v1618_v54  ;;  %v1370_v54 = vpop.f32.mrb[31].mxu1 }
 0x26c   : > { %v1206_v13 = vadd.f32 %v1205_v9, %v8238_v6  ;;  %v1207_v14 = vpop.f32.mrb[43].mxu0  ;;  %2165 = vmatmul.mubr.bf16.gmra.mrb[100].mxu0 %v1617_v52  ;;  %v1533_v24 = vmax.f32 %v1202_v59, 0.0  ;;  %v1369_v52 = vadd.f32 %v1368_v47, %v8265_v16  ;;  %v1371_v59 = vadd.f32 %v1370_v54, %v8270_v19  ;;  %v1374_v17 = vpop.f32.mrb[32].mxu1 }
 0x26d   : > { %v1208_v20 = vadd.f32 %v1207_v14, %v8242_v7  ;;  %v1534_v29 = vmax.f32 %v1204_v1, 0.0  ;;  %v1375_v23 = vadd.f32 %v1374_v17, %v8265_v16 }
 0x26e   : > { %v1537_v26 = vmax.f32 %v1206_v13, 0.0  ;;  %v1515_v0 = vmax.f32 %v1369_v52, 0.0  ;;  %v1516_v11 = vmax.f32 %v1371_v59, 0.0 }
 0x26f   : > { %v1538_v30 = vmax.f32 %v1208_v20, 0.0 }
 0x270   : > { %v1621_v4 = vpack.c.bf16 %v1537_v26, %v1533_v24  ;;  %v8364_v13 = vpack.c.bf16 %v1515_v0, %v1511_v51  ;;  %v8366_v18 = vpack.c.bf16 %v1516_v11, %v1512_v57  ;;  %v1376_v24 = vpop.f32.mrb[33].mxu1 }
 0x271   : > { %v1622_v34 = vpack.c.bf16 %v1538_v30, %v1534_v29  ;;  %v1211_v35 = vpop.f32.mrb[44].mxu0  ;;  %v1377_v29 = vadd.f32 %v1376_v24, %v8270_v19  ;;  %v1378_v30 = vpop.f32.mrb[34].mxu1 }
 0x272   : > { %v1212_v38 = vadd.f32 %v1211_v35, %v8238_v6  ;;  %v1213_v39 = vpop.f32.mrb[45].mxu0  ;;  %v1379_v35 = vadd.f32 %v1378_v30, %v8265_v16  ;;  %v1380_v36 = vpop.f32.mrb[35].mxu1 }
 0x273   : > { %v1214_v43 = vadd.f32 %v1213_v39, %v8242_v7  ;;  %v1215_v44 = vpop.f32.mrb[46].mxu0  ;;  %2174 = vmatprep.mubr.bf16.mxu0 %v1622_v34  ;;  %v1519_v34 = vmax.f32 %v1375_v23, 0.0  ;;  %v1520_v39 = vmax.f32 %v1377_v29, 0.0  ;;  %v1381_v41 = vadd.f32 %v1380_v36, %v8270_v19  ;;  %v1384_v59 = vpop.f32.mrb[36].mxu1 }
 0x274   : > { %v1216_v48 = vadd.f32 %v1215_v44, %v8238_v6  ;;  %v1217_v49 = vpop.f32.mrb[47].mxu0  ;;  %2175 = vmatmul.mubr.bf16.gmra.mrb[104].mxu0 %v1621_v4  ;;  %v1541_v60 = vmax.f32 %v1212_v38, 0.0  ;;  %v1523_v47 = vmax.f32 %v1379_v35, 0.0 }
 0x275   : > { %v1218_v56 = vadd.f32 %v1217_v49, %v8242_v7  ;;  %v1542_v1 = vmax.f32 %v1214_v43, 0.0  ;;  %v7031_v43 = vld [vmem:[#allocation8] sm:$0xff]   ;;  %v1524_v51 = vmax.f32 %v1381_v41, 0.0 }
 0x276   : > { %v1545_v62 = vmax.f32 %v1216_v48, 0.0  ;;  %v8376_v54 = vpack.c.bf16 %v1523_v47, %v1519_v34  ;;  %6183 = vmatpush3.bf16.msra.mxu1 %v7031_v43 }
 0x277   : > { %v1546_v9 = vmax.f32 %v1218_v56, 0.0 }
 0x278   : > { %v1625_v12 = vpack.c.bf16 %v1545_v62, %v1541_v60  ;;  %v8378_v60 = vpack.c.bf16 %v1524_v51, %v1520_v39 }
 0x279   : > { %v1626_v14 = vpack.c.bf16 %v1546_v9, %v1542_v1  ;;  %v1221_v15 = vpop.f32.mrb[48].mxu0  ;;  %v1385_v1 = vadd.f32 %v1384_v59, %v8265_v16  ;;  %v1386_v9 = vpop.f32.mrb[37].mxu1 }
 0x27a   : > { %v1222_v20 = vadd.f32 %v1221_v15, %v8238_v6  ;;  %v1223_v22 = vpop.f32.mrb[49].mxu0  ;;  %v1388_v15 = vpop.f32.mrb[38].mxu1 }
 0x27b   : > { %v1224_v26 = vadd.f32 %v1223_v22, %v8242_v7  ;;  %v1225_v27 = vpop.f32.mrb[50].mxu0  ;;  %2184 = vmatprep.mubr.bf16.mxu0 %v1626_v14  ;;  %v1387_v14 = vadd.f32 %v1386_v9, %v8270_v19  ;;  %v1527_v22 = vmax.f32 %v1385_v1, 0.0  ;;  %v1389_v23 = vadd.f32 %v1388_v15, %v8265_v16  ;;  %v1390_v24 = vpop.f32.mrb[39].mxu1  ;;  %v7032_v15 = vld [vmem:[#allocation8 + $0x48] sm:$0xff]  }
 0x27c   : > { %v1226_v31 = vadd.f32 %v1225_v27, %v8238_v6  ;;  %v1227_v4 = vpop.f32.mrb[51].mxu0  ;;  %2185 = vmatmul.mubr.bf16.gmra.mrb[108].mxu0 %v1625_v12  ;;  %v1549_v44 = vmax.f32 %v1222_v20, 0.0  ;;  %v1391_v29 = vadd.f32 %v1390_v24, %v8270_v19  ;;  %v1394_v43 = vpop.f32.mrb[40].mxu1  ;;  %6184 = vmatprep.subr.bf16.mxu1 %v7032_v15 }
 0x27d   : > { %v1228_v38 = vadd.f32 %v1227_v4, %v8242_v7  ;;  %v1550_v48 = vmax.f32 %v1224_v26, 0.0  ;;  %v1528_v27 = vmax.f32 %v1387_v14, 0.0  ;;  %v1531_v4 = vmax.f32 %v1389_v23, 0.0 }
 0x27e   : > { %v1553_v46 = vmax.f32 %v1226_v31, 0.0  ;;  %v1532_v36 = vmax.f32 %v1391_v29, 0.0 }
 0x27f   : > { %v1554_v49 = vmax.f32 %v1228_v38, 0.0  ;;  %v8388_v39 = vpack.c.bf16 %v1531_v4, %v1527_v22 }
 0x280   : > { %v1629_v52 = vpack.c.bf16 %v1553_v46, %v1549_v44  ;;  %v8390_v44 = vpack.c.bf16 %v1532_v36, %v1528_v27 }
 0x281   : > { %v1630_v56 = vpack.c.bf16 %v1554_v49, %v1550_v48  ;;  %v1231_v57 = vpop.f32.mrb[52].mxu0  ;;  %v1395_v48 = vadd.f32 %v1394_v43, %v8265_v16  ;;  %v1396_v49 = vpop.f32.mrb[41].mxu1 }
 0x282   : > { %v1232_v62 = vadd.f32 %v1231_v57, %v8238_v6  ;;  %v1233_v0 = vpop.f32.mrb[53].mxu0  ;;  %v1398_v57 = vpop.f32.mrb[42].mxu1 }
 0x283   : > { %v1234_v11 = vadd.f32 %v1233_v0, %v8242_v7  ;;  %v1235_v12 = vpop.f32.mrb[54].mxu0  ;;  %2194 = vmatprep.mubr.bf16.mxu0 %v1630_v56  ;;  %v1397_v56 = vadd.f32 %v1396_v49, %v8270_v19  ;;  %v1535_v0 = vmax.f32 %v1395_v48, 0.0  ;;  %v1399_v1 = vadd.f32 %v1398_v57, %v8265_v16  ;;  %v1400_v9 = vpop.f32.mrb[43].mxu1 }
 0x284   : > { %v1236_v17 = vadd.f32 %v1235_v12, %v8238_v6  ;;  %v1237_v20 = vpop.f32.mrb[55].mxu0  ;;  %2195 = vmatmul.mubr.bf16.gmra.mrb[112].mxu0 %v1629_v52  ;;  %v1557_v30 = vmax.f32 %v1232_v62, 0.0  ;;  %v1401_v14 = vadd.f32 %v1400_v9, %v8270_v19 }
 0x285   : > { %v1238_v26 = vadd.f32 %v1237_v20, %v8242_v7  ;;  %v1558_v34 = vmax.f32 %v1234_v11, 0.0  ;;  %v1536_v12 = vmax.f32 %v1397_v56, 0.0  ;;  %v1539_v23 = vmax.f32 %v1399_v1, 0.0 }
 0x286   : > { %v1561_v31 = vmax.f32 %v1236_v17, 0.0  ;;  %v7033_v17 = vld [vmem:[#allocation8 + $0x8] sm:$0xff]   ;;  %v1540_v27 = vmax.f32 %v1401_v14, 0.0 }
 0x287   : > { %v1562_v35 = vmax.f32 %v1238_v26, 0.0  ;;  %6185 = vmatpush3.bf16.msra.mxu1 %v7033_v17 }
 0x288   : > { %v1633_v38 = vpack.c.bf16 %v1561_v31, %v1557_v30  ;;  %v8400_v30 = vpack.c.bf16 %v1539_v23, %v1535_v0 }
 0x289   : > { %v1634_v41 = vpack.c.bf16 %v1562_v35, %v1558_v34  ;;  %v1241_v42 = vpop.f32.mrb[56].mxu0  ;;  %v1404_v34 = vpop.f32.mrb[44].mxu1  ;;  %v8402_v35 = vpack.c.bf16 %v1540_v27, %v1536_v12 }
 0x28a   : > { %v1242_v46 = vadd.f32 %v1241_v42, %v8238_v6  ;;  %v1243_v47 = vpop.f32.mrb[57].mxu0  ;;  %v1406_v42 = vpop.f32.mrb[45].mxu1 }
 0x28b   : > { %v1244_v51 = vadd.f32 %v1243_v47, %v8242_v7  ;;  %v1245_v52 = vpop.f32.mrb[58].mxu0  ;;  %2204 = vmatprep.mubr.bf16.mxu0 %v1634_v41  ;;  %v1405_v41 = vadd.f32 %v1404_v34, %v8265_v16  ;;  %v1407_v47 = vadd.f32 %v1406_v42, %v8270_v19  ;;  %v1408_v48 = vpop.f32.mrb[46].mxu1  ;;  %v7034_v34 = vld [vmem:[#allocation8 + $0x50] sm:$0xff]  }
 0x28c   : > { %v1246_v59 = vadd.f32 %v1245_v52, %v8238_v6  ;;  %v1247_v62 = vpop.f32.mrb[59].mxu0  ;;  %2205 = vmatmul.mubr.bf16.gmra.mrb[116].mxu0 %v1633_v38  ;;  %v1565_v20 = vmax.f32 %v1242_v46, 0.0  ;;  %v1409_v56 = vadd.f32 %v1408_v48, %v8265_v16  ;;  %v1410_v57 = vpop.f32.mrb[47].mxu1  ;;  %6186 = vmatprep.subr.bf16.mxu1 %v7034_v34 }
 0x28d   : > { %v1248_v11 = vadd.f32 %v1247_v62, %v8242_v7  ;;  %v1566_v24 = vmax.f32 %v1244_v51, 0.0  ;;  %v1543_v52 = vmax.f32 %v1405_v41, 0.0  ;;  %v1544_v62 = vmax.f32 %v1407_v47, 0.0  ;;  %v7037_v47 = vld [vmem:[#allocation8 + $0x18] sm:$0xff]  }
 0x28e   : > { %v1569_v22 = vmax.f32 %v1246_v59, 0.0  ;;  %v1411_v0 = vadd.f32 %v1410_v57, %v8270_v19 }
 0x28f   : > { %v1570_v26 = vmax.f32 %v1248_v11, 0.0  ;;  %v1547_v11 = vmax.f32 %v1409_v56, 0.0 }
 0x290   : > { %v1637_v29 = vpack.c.bf16 %v1569_v22, %v1565_v20  ;;  %v1548_v15 = vmax.f32 %v1411_v0, 0.0  ;;  %v1414_v22 = vpop.f32.mrb[48].mxu1 }
 0x291   : > { %v1638_v31 = vpack.c.bf16 %v1570_v26, %v1566_v24  ;;  %v1251_v4 = vpop.f32.mrb[60].mxu0  ;;  %v8412_v20 = vpack.c.bf16 %v1547_v11, %v1543_v52  ;;  %v1415_v24 = vadd.f32 %v1414_v22, %v8265_v16  ;;  %v1416_v26 = vpop.f32.mrb[49].mxu1  ;;  %v7040_v11 = vld [vmem:[#allocation8 + $0x68] sm:$0xff]  }
 0x292   : > { %v1252_v36 = vadd.f32 %v1251_v4, %v8238_v6  ;;  %v1253_v38 = vpop.f32.mrb[61].mxu0  ;;  %v8414_v23 = vpack.c.bf16 %v1548_v15, %v1544_v62  ;;  %v1418_v27 = vpop.f32.mrb[50].mxu1  ;;  %v7039_v62 = vld [vmem:[#allocation8 + $0x20] sm:$0xff]  }
 0x293   : > { %v1254_v43 = vadd.f32 %v1253_v38, %v8242_v7  ;;  %v1255_v46 = vpop.f32.mrb[62].mxu0  ;;  %2214 = vmatprep.mubr.bf16.mxu0 %v1638_v31  ;;  %v1419_v31 = vadd.f32 %v1418_v27, %v8265_v16  ;;  %v1420_v4 = vpop.f32.mrb[51].mxu1  ;;  %v7036_v38 = vld [vmem:[#allocation8 + $0x58] sm:$0xff]  }
 0x294   : > { %v1256_v49 = vadd.f32 %v1255_v46, %v8238_v6  ;;  %v1257_v51 = vpop.f32.mrb[63].mxu0  ;;  %2215 = vmatmul.mubr.bf16.gmra.mrb[120].mxu0 %v1637_v29  ;;  %v1573_v1 = vmax.f32 %v1252_v36, 0.0  ;;  %v1551_v29 = vmax.f32 %v1415_v24, 0.0  ;;  %v7035_v36 = vld [vmem:[#allocation8 + $0x10] sm:$0xff]   ;;  %v1421_v42 = vadd.f32 %v1420_v4, %v8270_v19 }
 0x295   : > { %v1258_v59 = vadd.f32 %v1257_v51, %v8242_v7  ;;  %v1574_v12 = vmax.f32 %v1254_v43, 0.0  ;;  %v1417_v7 = vadd.f32 %v1416_v26, %v8270_v19  ;;  %v1555_v43 = vmax.f32 %v1419_v31, 0.0  ;;  %6187 = vmatpush3.bf16.msra.mxu1 %v7035_v36  ;;  %v1424_v51 = vpop.f32.mrb[52].mxu1  ;;  %v7042_v24 = vld [vmem:[#allocation8 + $0x70] sm:$0xff]  }
 0x296   : > { %v1577_v9 = vmax.f32 %v1256_v49, 0.0  ;;  %v1556_v46 = vmax.f32 %v1421_v42, 0.0  ;;  %6188 = vmatprep.subr.bf16.mxu1 %v7036_v38  ;;  %v7038_v49 = vld [vmem:[#allocation8 + $0x60] sm:$0xff]   ;;  %v1425_v56 = vadd.f32 %v1424_v51, %v8265_v16  ;;  %v1426_v57 = vpop.f32.mrb[53].mxu1  ;;  %v7044_v38 = vld [vmem:[#allocation8 + $0x78] sm:$0xff]  }
 0x297   : > { %v1578_v14 = vmax.f32 %v1258_v59, 0.0  ;;  %v1552_v41 = vmax.f32 %v1417_v7, 0.0  ;;  %v8421_v48 = vpack.c.bf16 %v1555_v43, %v1551_v29  ;;  %v1428_v59 = vpop.f32.mrb[54].mxu1 }
 0x298   : > { %v1641_v17 = vpack.c.bf16 %v1577_v9, %v1573_v1  ;;  %v1559_v0 = vmax.f32 %v1425_v56, 0.0  ;;  %v1429_v1 = vadd.f32 %v1428_v59, %v8265_v16  ;;  %v1430_v9 = vpop.f32.mrb[55].mxu1 }
 0x299   : > { %v1642_v6 = vpack.c.bf16 %v1578_v14, %v1574_v12  ;;  %v8423_v52 = vpack.c.bf16 %v1556_v46, %v1552_v41  ;;  %6189 = vmatpush3.bf16.msra.mxu1 %v7037_v47  ;;  %v1431_v14 = vadd.f32 %v1430_v9, %v8270_v19  ;;  %v7045_v47 = vld [vmem:[#allocation8 + $0x38] sm:$0xff]  }
 0x29a   : > { %6190 = vmatprep.subr.bf16.mxu1 %v7038_v49  ;;  %v1563_v15 = vmax.f32 %v1429_v1, 0.0 }
 0x29b   : > { %2224 = vmatprep.mubr.bf16.mxu0 %v1642_v6  ;;  %v7041_v6 = vld [vmem:[#allocation8 + $0x28] sm:$0xff]  }
 0x29c   : > { %2225 = vmatmul.mubr.bf16.gmra.mrb[124].mxu0 %v1641_v17  ;;  %v1564_v17 = vmax.f32 %v1431_v14, 0.0  ;;  %v8431_v22 = vpack.c.bf16 %v1563_v15, %v1559_v0 }
 0x29d   : > { %2267 = vmatprep.mubr.bf16.mxu0 %v8282_v55  ;;  %v1427_v55 = vadd.f32 %v1426_v57, %v8270_v19  ;;  %6191 = vmatpush3.bf16.msra.mxu1 %v7039_v62 }
 0x29e   : > { %6192 = vmatprep.subr.bf16.mxu1 %v7040_v11 }
 0x29f   : > { %v1560_v12 = vmax.f32 %v1427_v55, 0.0 }
 0x2a1   : > { %v1636_v26 = vpack.c.bf16 %v1564_v17, %v1560_v12  ;;  %6193 = vmatpush3.bf16.msra.mxu1 %v7041_v6 }
 0x2a2   : > { %6194 = vmatprep.subr.bf16.mxu1 %v7042_v24 }
 0x2a4   : > { %2268 = vmatmul.mubr.bf16.vlgmr.msra.gmra.mrb[64].mxu0 %v8280_v50  ;;  %v1434_v50 = vpop.f32.mrb[56].mxu1 }
 0x2a5   : > { %2277 = vmatprep.mubr.bf16.mxu0 %v8294_v32  ;;  %v1435_v7 = vadd.f32 %v1434_v50, %v8265_v16  ;;  %v1436_v27 = vpop.f32.mrb[57].mxu1  ;;  %v7043_v32 = vld [vmem:[#allocation8 + $0x30] sm:$0xff]  }
 0x2a6   : > { %v1437_v29 = vadd.f32 %v1436_v27, %v8270_v19  ;;  %v1438_v31 = vpop.f32.mrb[58].mxu1  ;;  %6195 = vmatpush3.bf16.msra.mxu1 %v7043_v32 }
 0x2a7   : > { %v1567_v4 = vmax.f32 %v1435_v7, 0.0  ;;  %v1439_v34 = vadd.f32 %v1438_v31, %v8265_v16  ;;  %v1440_v36 = vpop.f32.mrb[59].mxu1  ;;  %6196 = vmatprep.subr.bf16.mxu1 %v7044_v38  ;;  %v7048_v7 = vld [vmem:[#allocation10 + $0x10] sm:$0xff]   ;;  %v7049_v38 = vld [vmem:[#allocation10 + $0x18] sm:$0xff]  }
 0x2a8   : > { %v1568_v41 = vmax.f32 %v1437_v29, 0.0  ;;  %v1441_v42 = vadd.f32 %v1440_v36, %v8270_v19  ;;  %v1444_v51 = vpop.f32.mrb[60].mxu1 }
 0x2a9   : > { %v1571_v43 = vmax.f32 %v1439_v34, 0.0  ;;  %v1446_v57 = vpop.f32.mrb[61].mxu1 }
 0x2aa   : > { %v1572_v46 = vmax.f32 %v1441_v42, 0.0  ;;  %v1447_v55 = vadd.f32 %v1446_v57, %v8270_v19  ;;  %v1448_v59 = vpop.f32.mrb[62].mxu1  ;;  %6197 = vmatpush3.bf16.msra.mxu1 %v7045_v47 }
 0x2ab   : > { %v1639_v49 = vpack.c.bf16 %v1571_v43, %v1567_v4  ;;  %v1449_v62 = vadd.f32 %v1448_v59, %v8265_v16  ;;  %v1450_v0 = vpop.f32.mrb[63].mxu1 }
 0x2ac   : > { %2278 = vmatmul.mubr.bf16.gmra.mrb[68].mxu0 %v8292_v28  ;;  %v1640_v56 = vpack.c.bf16 %v1572_v46, %v1568_v41  ;;  %v1445_v28 = vadd.f32 %v1444_v51, %v8265_v16  ;;  %v1576_v1 = vmax.f32 %v1447_v55, 0.0  ;;  %v1451_v9 = vadd.f32 %v1450_v0, %v8270_v19  ;;  %v7046_v16 = vld [vmem:[#allocation10] sm:$0xff]  }
 0x2ad   : > { %2287 = vmatprep.mubr.bf16.mxu0 %v8306_v10  ;;  %v1579_v11 = vmax.f32 %v1449_v62, 0.0  ;;  %6318 = vmatprep.subr.bf16.mxu1 %v7046_v16  ;;  %v1710_v19 = vld [vmem:[#allocation16 + $0x1] ss:$8 sm:$0x3] }
 0x2ae   : > { %v1575_v10 = vmax.f32 %v1445_v28, 0.0  ;;  %v1580_v12 = vmax.f32 %v1451_v9, 0.0 }
 0x2b0   : > { %v1643_v14 = vpack.c.bf16 %v1579_v11, %v1575_v10  ;;  %v1644_v15 = vpack.c.bf16 %v1580_v12, %v1576_v1  ;;  %v7051_v1 = vld [vmem:[#allocation10 + $0x28] sm:$0xff]  }
 0x2b4   : > { %2288 = vmatmul.mubr.bf16.gmra.mrb[72].mxu0 %v8304_v61  ;;  %v8466_v61 = vrot.slane %v1710_v19, %v8229_v3 }
 0x2b5   : > { %2297 = vmatprep.mubr.bf16.mxu0 %v8318_v45 }
 0x2bc   : > { %2298 = vmatmul.mubr.bf16.gmra.mrb[76].mxu0 %v8316_v40  ;;  %v8469_v40 = vrot.slane %v1710_v19, %v8234_v5 }
 0x2bd   : > { %2307 = vmatprep.mubr.bf16.mxu0 %v8330_v25 }
 0x2c4   : > { %2308 = vmatmul.mubr.bf16.gmra.mrb[80].mxu0 %v8328_v21 }
 0x2c5   : > { %2317 = vmatprep.mubr.bf16.mxu0 %v8342_v58 }
 0x2cc   : > { %2318 = vmatmul.mubr.bf16.gmra.mrb[84].mxu0 %v8340_v53 }
 0x2cd   : > { %2327 = vmatprep.mubr.bf16.mxu0 %v8354_v37 }
 0x2d4   : > { %2328 = vmatmul.mubr.bf16.gmra.mrb[88].mxu0 %v8352_v33 }
 0x2d5   : > { %2337 = vmatprep.mubr.bf16.mxu0 %v8366_v18 }
 0x2dc   : > { %2338 = vmatmul.mubr.bf16.gmra.mrb[92].mxu0 %v8364_v13 }
 0x2dd   : > { %2347 = vmatprep.mubr.bf16.mxu0 %v8378_v60 }
 0x2e4   : > { %2348 = vmatmul.mubr.bf16.gmra.mrb[96].mxu0 %v8376_v54 }
 0x2e5   : > { %2357 = vmatprep.mubr.bf16.mxu0 %v8390_v44 }
 0x2ec   : > { %2358 = vmatmul.mubr.bf16.gmra.mrb[100].mxu0 %v8388_v39 }
 0x2ed   : > { %2367 = vmatprep.mubr.bf16.mxu0 %v8402_v35 }
 0x2f4   : > { %2368 = vmatmul.mubr.bf16.gmra.mrb[104].mxu0 %v8400_v30 }
 0x2f5   : > { %2377 = vmatprep.mubr.bf16.mxu0 %v8414_v23 }
 0x2fc   : > { %2378 = vmatmul.mubr.bf16.gmra.mrb[108].mxu0 %v8412_v20 }
 0x2fd   : > { %2387 = vmatprep.mubr.bf16.mxu0 %v8423_v52 }
 0x304   : > { %2388 = vmatmul.mubr.bf16.gmra.mrb[112].mxu0 %v8421_v48  ;;  %v7047_v48 = vld [vmem:[#allocation10 + $0x8] sm:$0xff]  }
 0x305   : > { %2397 = vmatprep.mubr.bf16.mxu0 %v1636_v26 }
 0x30c   : > { %2398 = vmatmul.mubr.bf16.gmra.mrb[116].mxu0 %v8431_v22 }
 0x30d   : > { %2407 = vmatprep.mubr.bf16.mxu0 %v1640_v56  ;;  %v7050_v56 = vld [vmem:[#allocation10 + $0x20] sm:$0xff]  }
 0x314   : > { %2408 = vmatmul.mubr.bf16.gmra.mrb[120].mxu0 %v1639_v49 }
 0x315   : > { %2417 = vmatprep.mubr.bf16.mxu0 %v1644_v15 }
 0x31c   : > { %2418 = vmatmul.mubr.bf16.gmra.mrb[124].mxu0 %v1643_v14 }
 0x377   : > { %v2269_v45 = vpop.f32.mrb[64].mxu0 }
 0x378   : > { %v6398_v21 = vadd.f32 %v2269_v45, %v8466_v61  ;;  %v2271_v25 = vpop.f32.mrb[65].mxu0  ;;  %v7052_v45 = vld [vmem:[#allocation10 + $0x30] sm:$0xff]  }
 0x379   : > { %v6399_v53 = vadd.f32 %v2271_v25, %v8469_v40  ;;  %v2273_v58 = vpop.f32.mrb[66].mxu0 }
 0x37a   : > { %v6400_v33 = vadd.f32 %v2273_v58, %v8466_v61  ;;  %v2275_v37 = vpop.f32.mrb[67].mxu0  ;;  %v2428_v18 = vmax.f32 %v6398_v21, 0.0 }
 0x37b   : > { %v6401_v13 = vadd.f32 %v2275_v37, %v8469_v40  ;;  %v2429_v60 = vmax.f32 %v6399_v53, 0.0 }
 0x37c   : > { %v2430_v54 = vmax.f32 %v6400_v33, 0.0 }
 0x37d   : > { %v2431_v39 = vmax.f32 %v6401_v13, 0.0 }
 0x37e   : > { %v2492_v44 = vpack.c.bf16 %v2430_v54, %v2428_v18 }
 0x37f   : > { %v2493_v30 = vpack.c.bf16 %v2431_v39, %v2429_v60  ;;  %v2279_v35 = vpop.f32.mrb[68].mxu0 }
 0x380   : > { %v6402_v20 = vadd.f32 %v2279_v35, %v8466_v61  ;;  %v2281_v23 = vpop.f32.mrb[69].mxu0 }
 0x381   : > { %v6403_v52 = vadd.f32 %v2281_v23, %v8469_v40  ;;  %v2283_v17 = vpop.f32.mrb[70].mxu0  ;;  %2685 = vmatprep.mubr.bf16.mxu1 %v2493_v30 }
 0x382   : > { %v6404_v6 = vadd.f32 %v2283_v17, %v8466_v61  ;;  %v2285_v22 = vpop.f32.mrb[71].mxu0  ;;  %2686 = vmatmul.mubr.bf16.vlgmr.msra.gmra.mrb[64].mxu1 %v2492_v44  ;;  %v2432_v50 = vmax.f32 %v6402_v20, 0.0 }
 0x383   : > { %v6405_v24 = vadd.f32 %v2285_v22, %v8469_v40  ;;  %6319 = vmatpush3.bf16.msra.mxu1 %v7046_v16  ;;  %v2433_v27 = vmax.f32 %v6403_v52, 0.0 }
 0x384   : > { %v2434_v26 = vmax.f32 %v6404_v6, 0.0  ;;  %6320 = vmatprep.subr.bf16.mxu1 %v7047_v48 }
 0x385   : > { %v2435_v29 = vmax.f32 %v6405_v24, 0.0 }
 0x386   : > { %v2494_v31 = vpack.c.bf16 %v2434_v26, %v2432_v50 }
 0x387   : > { %v2495_v32 = vpack.c.bf16 %v2435_v29, %v2433_v27  ;;  %v2289_v4 = vpop.f32.mrb[72].mxu0  ;;  %6321 = vmatpush3.bf16.msra.mxu1 %v7047_v48 }
 0x388   : > { %v6406_v34 = vadd.f32 %v2289_v4, %v8466_v61  ;;  %v2291_v36 = vpop.f32.mrb[73].mxu0  ;;  %6322 = vmatprep.subr.bf16.mxu1 %v7048_v7 }
 0x389   : > { %v6407_v41 = vadd.f32 %v2291_v36, %v8469_v40  ;;  %v2293_v42 = vpop.f32.mrb[74].mxu0  ;;  %2693 = vmatprep.mubr.bf16.mxu1 %v2495_v32 }
 0x38a   : > { %v6408_v43 = vadd.f32 %v2293_v42, %v8466_v61  ;;  %v2295_v46 = vpop.f32.mrb[75].mxu0  ;;  %2694 = vmatmul.mubr.bf16.gmra.mrb[68].mxu1 %v2494_v31  ;;  %v2436_v49 = vmax.f32 %v6406_v34, 0.0 }
 0x38b   : > { %v6409_v47 = vadd.f32 %v2295_v46, %v8469_v40  ;;  %6323 = vmatpush3.bf16.msra.mxu1 %v7048_v7  ;;  %v2437_v28 = vmax.f32 %v6407_v41, 0.0 }
 0x38c   : > { %v2438_v51 = vmax.f32 %v6408_v43, 0.0  ;;  %6324 = vmatprep.subr.bf16.mxu1 %v7049_v38 }
 0x38d   : > { %v2439_v57 = vmax.f32 %v6409_v47, 0.0 }
 0x38e   : > { %v2496_v55 = vpack.c.bf16 %v2438_v51, %v2436_v49 }
 0x38f   : > { %v2497_v59 = vpack.c.bf16 %v2439_v57, %v2437_v28  ;;  %v2299_v10 = vpop.f32.mrb[76].mxu0  ;;  %6325 = vmatpush3.bf16.msra.mxu1 %v7049_v38 }
 0x390   : > { %v6410_v62 = vadd.f32 %v2299_v10, %v8466_v61  ;;  %v2301_v0 = vpop.f32.mrb[77].mxu0  ;;  %6326 = vmatprep.subr.bf16.mxu1 %v7050_v56 }
 0x391   : > { %v6411_v9 = vadd.f32 %v2301_v0, %v8469_v40  ;;  %v2303_v11 = vpop.f32.mrb[78].mxu0  ;;  %2701 = vmatprep.mubr.bf16.mxu1 %v2497_v59 }
 0x392   : > { %v6412_v12 = vadd.f32 %v2303_v11, %v8466_v61  ;;  %v2305_v14 = vpop.f32.mrb[79].mxu0  ;;  %2702 = vmatmul.mubr.bf16.gmra.mrb[72].mxu1 %v2496_v55  ;;  %v2440_v16 = vmax.f32 %v6410_v62, 0.0 }
 0x393   : > { %v6413_v15 = vadd.f32 %v2305_v14, %v8469_v40  ;;  %6327 = vmatpush3.bf16.msra.mxu1 %v7050_v56  ;;  %v2441_v21 = vmax.f32 %v6411_v9, 0.0 }
 0x394   : > { %v2442_v19 = vmax.f32 %v6412_v12, 0.0  ;;  %6328 = vmatprep.subr.bf16.mxu1 %v7051_v1 }
 0x395   : > { %v2443_v25 = vmax.f32 %v6413_v15, 0.0 }
 0x396   : > { %v2498_v53 = vpack.c.bf16 %v2442_v19, %v2440_v16 }
 0x397   : > { %v2499_v58 = vpack.c.bf16 %v2443_v25, %v2441_v21  ;;  %v2309_v33 = vpop.f32.mrb[80].mxu0  ;;  %6329 = vmatpush3.bf16.msra.mxu1 %v7051_v1 }
 0x398   : > { %v6414_v37 = vadd.f32 %v2309_v33, %v8466_v61  ;;  %v2311_v13 = vpop.f32.mrb[81].mxu0  ;;  %6330 = vmatprep.subr.bf16.mxu1 %v7052_v45 }
 0x399   : > { %v6415_v18 = vadd.f32 %v2311_v13, %v8469_v40  ;;  %v2313_v54 = vpop.f32.mrb[82].mxu0  ;;  %2709 = vmatprep.mubr.bf16.mxu1 %v2499_v58 }
 0x39a   : > { %v6416_v60 = vadd.f32 %v2313_v54, %v8466_v61  ;;  %v2315_v39 = vpop.f32.mrb[83].mxu0  ;;  %2710 = vmatmul.mubr.bf16.gmra.mrb[76].mxu1 %v2498_v53  ;;  %v2444_v30 = vmax.f32 %v6414_v37, 0.0 }
 0x39b   : > { %v6417_v44 = vadd.f32 %v2315_v39, %v8469_v40  ;;  %6331 = vmatpush3.bf16.msra.mxu1 %v7052_v45  ;;  %v2445_v20 = vmax.f32 %v6415_v18, 0.0 }
 0x39c   : > { %v2446_v35 = vmax.f32 %v6416_v60, 0.0 }
 0x39d   : > { %v2447_v23 = vmax.f32 %v6417_v44, 0.0 }
 0x39e   : > { %v2500_v48 = vpack.c.bf16 %v2446_v35, %v2444_v30 }
 0x39f   : > { %v2501_v52 = vpack.c.bf16 %v2447_v23, %v2445_v20  ;;  %v2319_v17 = vpop.f32.mrb[84].mxu0 }
 0x3a0   : > { %v6418_v6 = vadd.f32 %v2319_v17, %v8466_v61  ;;  %v2321_v22 = vpop.f32.mrb[85].mxu0 }
 0x3a1   : > { %v6419_v24 = vadd.f32 %v2321_v22, %v8469_v40  ;;  %v2323_v50 = vpop.f32.mrb[86].mxu0  ;;  %2717 = vmatprep.mubr.bf16.mxu1 %v2501_v52 }
 0x3a2   : > { %v6420_v26 = vadd.f32 %v2323_v50, %v8466_v61  ;;  %v2325_v7 = vpop.f32.mrb[87].mxu0  ;;  %2718 = vmatmul.mubr.bf16.gmra.mrb[80].mxu1 %v2500_v48  ;;  %v2448_v29 = vmax.f32 %v6418_v6, 0.0 }
 0x3a3   : > { %v6421_v27 = vadd.f32 %v2325_v7, %v8469_v40  ;;  %v2449_v32 = vmax.f32 %v6419_v24, 0.0 }
 0x3a4   : > { %v2450_v31 = vmax.f32 %v6420_v26, 0.0 }
 0x3a5   : > { %v2451_v4 = vmax.f32 %v6421_v27, 0.0 }
 0x3a6   : > { %v2502_v34 = vpack.c.bf16 %v2450_v31, %v2448_v29 }
 0x3a7   : > { %v2503_v36 = vpack.c.bf16 %v2451_v4, %v2449_v32  ;;  %v2329_v38 = vpop.f32.mrb[88].mxu0 }
 0x3a8   : > { %v6422_v41 = vadd.f32 %v2329_v38, %v8466_v61  ;;  %v2331_v42 = vpop.f32.mrb[89].mxu0 }
 0x3a9   : > { %v6423_v43 = vadd.f32 %v2331_v42, %v8469_v40  ;;  %v2333_v46 = vpop.f32.mrb[90].mxu0  ;;  %2725 = vmatprep.mubr.bf16.mxu1 %v2503_v36 }
 0x3aa   : > { %v6424_v47 = vadd.f32 %v2333_v46, %v8466_v61  ;;  %v2335_v49 = vpop.f32.mrb[91].mxu0  ;;  %2726 = vmatmul.mubr.bf16.gmra.mrb[84].mxu1 %v2502_v34  ;;  %v2452_v56 = vmax.f32 %v6422_v41, 0.0 }
 0x3ab   : > { %v6425_v51 = vadd.f32 %v2335_v49, %v8469_v40  ;;  %v2453_v57 = vmax.f32 %v6423_v43, 0.0 }
 0x3ac   : > { %v2454_v28 = vmax.f32 %v6424_v47, 0.0 }
 0x3ad   : > { %v2455_v55 = vmax.f32 %v6425_v51, 0.0 }
 0x3ae   : > { %v2504_v59 = vpack.c.bf16 %v2454_v28, %v2452_v56 }
 0x3af   : > { %v2505_v10 = vpack.c.bf16 %v2455_v55, %v2453_v57  ;;  %v2339_v62 = vpop.f32.mrb[92].mxu0 }
 0x3b0   : > { %v6426_v0 = vadd.f32 %v2339_v62, %v8466_v61  ;;  %v2341_v1 = vpop.f32.mrb[93].mxu0 }
 0x3b1   : > { %v6427_v9 = vadd.f32 %v2341_v1, %v8469_v40  ;;  %v2343_v11 = vpop.f32.mrb[94].mxu0  ;;  %2733 = vmatprep.mubr.bf16.mxu1 %v2505_v10 }
 0x3b2   : > { %v6428_v12 = vadd.f32 %v2343_v11, %v8466_v61  ;;  %v2345_v14 = vpop.f32.mrb[95].mxu0  ;;  %2734 = vmatmul.mubr.bf16.gmra.mrb[88].mxu1 %v2504_v59  ;;  %v2456_v16 = vmax.f32 %v6426_v0, 0.0 }
 0x3b3   : > { %v6429_v15 = vadd.f32 %v2345_v14, %v8469_v40  ;;  %v2457_v45 = vmax.f32 %v6427_v9, 0.0 }
 0x3b4   : > { %v2458_v19 = vmax.f32 %v6428_v12, 0.0 }
 0x3b5   : > { %v2459_v21 = vmax.f32 %v6429_v15, 0.0 }
 0x3b6   : > { %v2506_v25 = vpack.c.bf16 %v2458_v19, %v2456_v16 }
 0x3b7   : > { %v2507_v53 = vpack.c.bf16 %v2459_v21, %v2457_v45  ;;  %v2349_v58 = vpop.f32.mrb[96].mxu0 }
 0x3b8   : > { %v6430_v33 = vadd.f32 %v2349_v58, %v8466_v61  ;;  %v2351_v37 = vpop.f32.mrb[97].mxu0 }
 0x3b9   : > { %v6431_v13 = vadd.f32 %v2351_v37, %v8469_v40  ;;  %v2353_v18 = vpop.f32.mrb[98].mxu0  ;;  %2741 = vmatprep.mubr.bf16.mxu1 %v2507_v53 }
 0x3ba   : > { %v6432_v54 = vadd.f32 %v2353_v18, %v8466_v61  ;;  %v2355_v60 = vpop.f32.mrb[99].mxu0  ;;  %2742 = vmatmul.mubr.bf16.gmra.mrb[92].mxu1 %v2506_v25  ;;  %v2460_v44 = vmax.f32 %v6430_v33, 0.0 }
 0x3bb   : > { %v6433_v39 = vadd.f32 %v2355_v60, %v8469_v40  ;;  %v2461_v35 = vmax.f32 %v6431_v13, 0.0 }
 0x3bc   : > { %v2462_v30 = vmax.f32 %v6432_v54, 0.0 }
 0x3bd   : > { %v2463_v20 = vmax.f32 %v6433_v39, 0.0  ;;  %v7053_v39 = vld [vmem:[#allocation10 + $0x38] sm:$0xff]  }
 0x3be   : > { %v2508_v23 = vpack.c.bf16 %v2462_v30, %v2460_v44  ;;  %6332 = vmatprep.subr.bf16.mxu1 %v7053_v39 }
 0x3bf   : > { %v2509_v48 = vpack.c.bf16 %v2463_v20, %v2461_v35  ;;  %v2359_v52 = vpop.f32.mrb[100].mxu0  ;;  %6333 = vmatpush3.bf16.msra.mxu1 %v7053_v39 }
 0x3c0   : > { %v6434_v17 = vadd.f32 %v2359_v52, %v8466_v61  ;;  %v2361_v6 = vpop.f32.mrb[101].mxu0 }
 0x3c1   : > { %v6435_v22 = vadd.f32 %v2361_v6, %v8469_v40  ;;  %v2363_v24 = vpop.f32.mrb[102].mxu0  ;;  %2749 = vmatprep.mubr.bf16.mxu1 %v2509_v48 }
 0x3c2   : > { %v6436_v50 = vadd.f32 %v2363_v24, %v8466_v61  ;;  %v2365_v26 = vpop.f32.mrb[103].mxu0  ;;  %2750 = vmatmul.mubr.bf16.gmra.mrb[96].mxu1 %v2508_v23  ;;  %v2464_v27 = vmax.f32 %v6434_v17, 0.0 }
 0x3c3   : > { %v6437_v7 = vadd.f32 %v2365_v26, %v8469_v40  ;;  %v2465_v31 = vmax.f32 %v6435_v22, 0.0 }
 0x3c4   : > { %v2466_v29 = vmax.f32 %v6436_v50, 0.0 }
 0x3c5   : > { %v2467_v32 = vmax.f32 %v6437_v7, 0.0 }
 0x3c6   : > { %v2510_v4 = vpack.c.bf16 %v2466_v29, %v2464_v27 }
 0x3c7   : > { %v2511_v34 = vpack.c.bf16 %v2467_v32, %v2465_v31  ;;  %v2369_v36 = vpop.f32.mrb[104].mxu0 }
 0x3c8   : > { %v6438_v38 = vadd.f32 %v2369_v36, %v8466_v61  ;;  %v2371_v41 = vpop.f32.mrb[105].mxu0 }
 0x3c9   : > { %v6439_v42 = vadd.f32 %v2371_v41, %v8469_v40  ;;  %v2373_v43 = vpop.f32.mrb[106].mxu0  ;;  %2757 = vmatprep.mubr.bf16.mxu1 %v2511_v34 }
 0x3ca   : > { %v6440_v46 = vadd.f32 %v2373_v43, %v8466_v61  ;;  %v2375_v47 = vpop.f32.mrb[107].mxu0  ;;  %2758 = vmatmul.mubr.bf16.gmra.mrb[100].mxu1 %v2510_v4  ;;  %v2468_v51 = vmax.f32 %v6438_v38, 0.0 }
 0x3cb   : > { %v6441_v49 = vadd.f32 %v2375_v47, %v8469_v40  ;;  %v2469_v28 = vmax.f32 %v6439_v42, 0.0 }
 0x3cc   : > { %v2470_v56 = vmax.f32 %v6440_v46, 0.0 }
 0x3cd   : > { %v2471_v57 = vmax.f32 %v6441_v49, 0.0 }
 0x3ce   : > { %v2512_v55 = vpack.c.bf16 %v2470_v56, %v2468_v51 }
 0x3cf   : > { %v2513_v59 = vpack.c.bf16 %v2471_v57, %v2469_v28  ;;  %v2379_v10 = vpop.f32.mrb[108].mxu0 }
 0x3d0   : > { %v6442_v62 = vadd.f32 %v2379_v10, %v8466_v61  ;;  %v2381_v0 = vpop.f32.mrb[109].mxu0 }
 0x3d1   : > { %v6443_v1 = vadd.f32 %v2381_v0, %v8469_v40  ;;  %v2383_v9 = vpop.f32.mrb[110].mxu0  ;;  %2765 = vmatprep.mubr.bf16.mxu1 %v2513_v59 }
 0x3d2   : > { %v6444_v11 = vadd.f32 %v2383_v9, %v8466_v61  ;;  %v2385_v12 = vpop.f32.mrb[111].mxu0  ;;  %2766 = vmatmul.mubr.bf16.gmra.mrb[104].mxu1 %v2512_v55  ;;  %v2472_v15 = vmax.f32 %v6442_v62, 0.0 }
 0x3d3   : > { %v6445_v14 = vadd.f32 %v2385_v12, %v8469_v40  ;;  %v2473_v19 = vmax.f32 %v6443_v1, 0.0 }
 0x3d4   : > { %v2474_v16 = vmax.f32 %v6444_v11, 0.0 }
 0x3d5   : > { %v2475_v45 = vmax.f32 %v6445_v14, 0.0 }
 0x3d6   : > { %v2514_v21 = vpack.c.bf16 %v2474_v16, %v2472_v15 }
 0x3d7   : > { %v2515_v25 = vpack.c.bf16 %v2475_v45, %v2473_v19  ;;  %v2389_v53 = vpop.f32.mrb[112].mxu0 }
 0x3d8   : > { %v6446_v58 = vadd.f32 %v2389_v53, %v8466_v61  ;;  %v2391_v33 = vpop.f32.mrb[113].mxu0 }
 0x3d9   : > { %v6447_v37 = vadd.f32 %v2391_v33, %v8469_v40  ;;  %v2393_v13 = vpop.f32.mrb[114].mxu0  ;;  %2773 = vmatprep.mubr.bf16.mxu1 %v2515_v25 }
 0x3da   : > { %v6448_v18 = vadd.f32 %v2393_v13, %v8466_v61  ;;  %v2395_v54 = vpop.f32.mrb[115].mxu0  ;;  %2774 = vmatmul.mubr.bf16.gmra.mrb[108].mxu1 %v2514_v21  ;;  %v2476_v44 = vmax.f32 %v6446_v58, 0.0  ;;  %v8535_v58 = vld [vmem:[#allocation16 + $0x2] ss:$0 sm:$0xff] }
 0x3db   : > { %v6449_v60 = vadd.f32 %v2395_v54, %v8469_v40  ;;  %v2477_v35 = vmax.f32 %v6447_v37, 0.0 }
 0x3dc   : > { %v2478_v30 = vmax.f32 %v6448_v18, 0.0 }
 0x3dd   : > { %v2479_v20 = vmax.f32 %v6449_v60, 0.0  ;;  %v7056_v60 = vld [vmem:[#allocation11 + $0x4] ss:$8 sps:$4 sm:$0xff]  }
 0x3de   : > { %v2516_v23 = vpack.c.bf16 %v2478_v30, %v2476_v44  ;;  %3245 = vmatprep.subr.bf16.mxu1 %v7056_v60 }
 0x3df   : > { %v2517_v48 = vpack.c.bf16 %v2479_v20, %v2477_v35  ;;  %v2399_v52 = vpop.f32.mrb[116].mxu0 }
 0x3e0   : > { %v6450_v17 = vadd.f32 %v2399_v52, %v8466_v61  ;;  %v2401_v6 = vpop.f32.mrb[117].mxu0 }
 0x3e1   : > { %v6451_v22 = vadd.f32 %v2401_v6, %v8469_v40  ;;  %v2403_v24 = vpop.f32.mrb[118].mxu0  ;;  %2781 = vmatprep.mubr.bf16.mxu1 %v2517_v48 }
 0x3e2   : > { %v6452_v50 = vadd.f32 %v2403_v24, %v8466_v61  ;;  %v2405_v26 = vpop.f32.mrb[119].mxu0  ;;  %2782 = vmatmul.mubr.bf16.gmra.mrb[112].mxu1 %v2516_v23  ;;  %v2480_v27 = vmax.f32 %v6450_v17, 0.0 }
 0x3e3   : > { %v6453_v7 = vadd.f32 %v2405_v26, %v8469_v40  ;;  %v2481_v31 = vmax.f32 %v6451_v22, 0.0 }
 0x3e4   : > { %v2482_v29 = vmax.f32 %v6452_v50, 0.0 }
 0x3e5   : > { %v2483_v32 = vmax.f32 %v6453_v7, 0.0 }
 0x3e6   : > { %v2518_v4 = vpack.c.bf16 %v2482_v29, %v2480_v27  ;;  %v7054_v27 = vld [vmem:[#allocation11] ss:$8 sps:$4 sm:$0xff]  }
 0x3e7   : > { %v2519_v34 = vpack.c.bf16 %v2483_v32, %v2481_v31  ;;  %v2409_v36 = vpop.f32.mrb[120].mxu0 }
 0x3e8   : > { %v6454_v38 = vadd.f32 %v2409_v36, %v8466_v61  ;;  %v2411_v41 = vpop.f32.mrb[121].mxu0 }
 0x3e9   : > { %v6455_v42 = vadd.f32 %v2411_v41, %v8469_v40  ;;  %v2413_v43 = vpop.f32.mrb[122].mxu0  ;;  %2789 = vmatprep.mubr.bf16.mxu1 %v2519_v34  ;;  %v7057_v41 = vld [vmem:[#allocation11 + $0x10] ss:$8 sps:$4 sm:$0xff]  }
 0x3ea   : > { %v6456_v46 = vadd.f32 %v2413_v43, %v8466_v61  ;;  %v2415_v47 = vpop.f32.mrb[123].mxu0  ;;  %2790 = vmatmul.mubr.bf16.gmra.mrb[116].mxu1 %v2518_v4  ;;  %v2484_v51 = vmax.f32 %v6454_v38, 0.0  ;;  %v7059_v4 = vld [vmem:[#allocation11 + $0x14] ss:$8 sps:$4 sm:$0xff]   ;;  %v7062_v43 = vld [vmem:[#allocation11 + $0x24] ss:$8 sps:$4 sm:$0xff]  }
 0x3eb   : > { %v6457_v49 = vadd.f32 %v2415_v47, %v8469_v40  ;;  %v2485_v28 = vmax.f32 %v6455_v42, 0.0 }
 0x3ec   : > { %v2486_v56 = vmax.f32 %v6456_v46, 0.0 }
 0x3ed   : > { %v2487_v57 = vmax.f32 %v6457_v49, 0.0 }
 0x3ee   : > { %v2520_v55 = vpack.c.bf16 %v2486_v56, %v2484_v51  ;;  %v7060_v56 = vld [vmem:[#allocation11 + $0x20] ss:$8 sps:$4 sm:$0xff]  }
 0x3ef   : > { %v2521_v59 = vpack.c.bf16 %v2487_v57, %v2485_v28  ;;  %v2419_v10 = vpop.f32.mrb[124].mxu0 }
 0x3f0   : > { %v6458_v62 = vadd.f32 %v2419_v10, %v8466_v61  ;;  %v2421_v0 = vpop.f32.mrb[125].mxu0 }
 0x3f1   : > { %v6459_v1 = vadd.f32 %v2421_v0, %v8469_v40  ;;  %v2423_v9 = vpop.f32.mrb[126].mxu0  ;;  %2797 = vmatprep.mubr.bf16.mxu1 %v2521_v59  ;;  %v7065_v59 = vld [vmem:[#allocation11 + $0x34] ss:$8 sps:$4 sm:$0xff]  }
 0x3f2   : > { %v6460_v11 = vadd.f32 %v2423_v9, %v8466_v61  ;;  %v2425_v12 = vpop.f32.mrb[127].mxu0  ;;  %2798 = vmatmul.mubr.bf16.gmra.mrb[120].mxu1 %v2520_v55  ;;  %v2488_v15 = vmax.f32 %v6458_v62, 0.0 }
 0x3f3   : > { %v6461_v14 = vadd.f32 %v2425_v12, %v8469_v40  ;;  %v2489_v19 = vmax.f32 %v6459_v1, 0.0  ;;  %v7063_v1 = vld [vmem:[#allocation11 + $0x30] ss:$8 sps:$4 sm:$0xff]  }
 0x3f4   : > { %v2490_v16 = vmax.f32 %v6460_v11, 0.0  ;;  %v7068_v11 = vld [vmem:[#allocation11 + $0x44] ss:$8 sps:$4 sm:$0xff]  }
 0x3f5   : > { %v2491_v45 = vmax.f32 %v6461_v14, 0.0 }
 0x3f6   : > { %v2522_v21 = vpack.c.bf16 %v2490_v16, %v2488_v15 }
 0x3f7   : > { %v2523_v25 = vpack.c.bf16 %v2491_v45, %v2489_v19  ;;  %v7066_v19 = vld [vmem:[#allocation11 + $0x40] ss:$8 sps:$4 sm:$0xff]  }
 0x3f9   : > { %2805 = vmatprep.mubr.bf16.mxu1 %v2523_v25 }
 0x3fa   : > { %2806 = vmatmul.mubr.bf16.gmra.mrb[124].mxu1 %v2522_v21 }
 0x455   : > { %v6198_v53 = vpop.f32.mrb[64].mxu1 }
 0x456   : > { %v6199_v33 = vpop.f32.mrb[65].mxu1 }
 0x457   : > { %v6200_v37 = vadd.f32 %v6199_v33, %v6198_v53  ;;  %v6201_v13 = vpop.f32.mrb[66].mxu1  ;;  %v7071_v53 = vld [vmem:[#allocation11 + $0x54] ss:$8 sps:$4 sm:$0xff]  }
 0x458   : > { %v6202_v18 = vpop.f32.mrb[67].mxu1 }
 0x459   : > { %v2688_v61 = vadd.f32 %v6200_v37, %v8535_v58  ;;  %v6203_v54 = vadd.f32 %v6202_v18, %v6201_v13  ;;  %v7069_v18 = vld [vmem:[#allocation11 + $0x50] ss:$8 sps:$4 sm:$0xff]  }
 0x45b   : > { %v2691_v40 = vadd.f32 %v6203_v54, %v8535_v58  ;;  %v2814_v44 = vmax.f32 %v2688_v61, 0.0  ;;  %v7074_v54 = vld [vmem:[#allocation11 + $0x64] ss:$8 sps:$4 sm:$0xff]  }
 0x45d   : > { %v6204_v39 = vpop.f32.mrb[68].mxu1  ;;  %v2815_v30 = vmax.f32 %v2691_v40, 0.0 }
 0x45e   : > { %v6205_v35 = vpop.f32.mrb[69].mxu1 }
 0x45f   : > { %v6206_v20 = vadd.f32 %v6205_v35, %v6204_v39  ;;  %v6207_v23 = vpop.f32.mrb[70].mxu1  ;;  %v2846_v48 = vpack.c.bf16 %v2815_v30, %v2814_v44  ;;  %v7072_v30 = vld [vmem:[#allocation11 + $0x60] ss:$8 sps:$4 sm:$0xff]  }
 0x460   : > { %v6208_v52 = vpop.f32.mrb[71].mxu1 }
 0x461   : > { %v2696_v17 = vadd.f32 %v6206_v20, %v8535_v58  ;;  %v6209_v6 = vadd.f32 %v6208_v52, %v6207_v23  ;;  %6334 = vmatprep.mubr.bf16.mxu1 %v2846_v48 }
 0x463   : > { %v2699_v22 = vadd.f32 %v6209_v6, %v8535_v58  ;;  %v2816_v24 = vmax.f32 %v2696_v17, 0.0 }
 0x465   : > { %v2817_v50 = vmax.f32 %v2699_v22, 0.0  ;;  %v6210_v26 = vpop.f32.mrb[72].mxu1 }
 0x466   : > { %v6211_v7 = vpop.f32.mrb[73].mxu1 }
 0x467   : > { %v2847_v29 = vpack.c.bf16 %v2817_v50, %v2816_v24  ;;  %v6212_v31 = vadd.f32 %v6211_v7, %v6210_v26  ;;  %v6213_v32 = vpop.f32.mrb[74].mxu1 }
 0x468   : > { %v6214_v34 = vpop.f32.mrb[75].mxu1 }
 0x469   : > { %v2704_v36 = vadd.f32 %v6212_v31, %v8535_v58  ;;  %v6215_v38 = vadd.f32 %v6214_v34, %v6213_v32  ;;  %6335 = vmatmul.mubr.bf16.vlgmr.msra.gmra.mrb[128].mxu1 %v2847_v29 }
 0x46a   : > { %3246 = vmatpush1.bf16.msra.mxu1 %v7054_v27 }
 0x46b   : > { %v2707_v42 = vadd.f32 %v6215_v38, %v8535_v58  ;;  %3247 = vmatprep.subr.bf16.mxu1 %v7059_v4  ;;  %v2818_v47 = vmax.f32 %v2704_v36, 0.0 }
 0x46d   : > { %v6216_v46 = vpop.f32.mrb[76].mxu1  ;;  %v2819_v49 = vmax.f32 %v2707_v42, 0.0 }
 0x46e   : > { %v6217_v51 = vpop.f32.mrb[77].mxu1  ;;  %3248 = vmatpush1.bf16.msra.mxu1 %v7057_v41 }
 0x46f   : > { %v6218_v28 = vadd.f32 %v6217_v51, %v6216_v46  ;;  %v6219_v57 = vpop.f32.mrb[78].mxu1  ;;  %v2848_v55 = vpack.c.bf16 %v2819_v49, %v2818_v47  ;;  %3249 = vmatprep.subr.bf16.mxu1 %v7062_v43 }
 0x470   : > { %v6220_v10 = vpop.f32.mrb[79].mxu1 }
 0x471   : > { %v2712_v62 = vadd.f32 %v6218_v28, %v8535_v58  ;;  %v6221_v0 = vadd.f32 %v6220_v10, %v6219_v57  ;;  %6338 = vmatprep.mubr.bf16.mxu1 %v2848_v55 }
 0x472   : > { %3250 = vmatpush1.bf16.msra.mxu1 %v7060_v56 }
 0x473   : > { %v2715_v9 = vadd.f32 %v6221_v0, %v8535_v58  ;;  %3251 = vmatprep.subr.bf16.mxu1 %v7065_v59  ;;  %v2820_v14 = vmax.f32 %v2712_v62, 0.0 }
 0x475   : > { %v6222_v12 = vpop.f32.mrb[80].mxu1  ;;  %v2821_v15 = vmax.f32 %v2715_v9, 0.0 }
 0x476   : > { %v6223_v16 = vpop.f32.mrb[81].mxu1  ;;  %3252 = vmatpush1.bf16.msra.mxu1 %v7063_v1 }
 0x477   : > { %v6224_v45 = vadd.f32 %v6223_v16, %v6222_v12  ;;  %v6225_v21 = vpop.f32.mrb[82].mxu1  ;;  %v2849_v25 = vpack.c.bf16 %v2821_v15, %v2820_v14  ;;  %3253 = vmatprep.subr.bf16.mxu1 %v7068_v11 }
 0x478   : > { %v6226_v33 = vpop.f32.mrb[83].mxu1 }
 0x479   : > { %v2720_v37 = vadd.f32 %v6224_v45, %v8535_v58  ;;  %v6227_v13 = vadd.f32 %v6226_v33, %v6225_v21  ;;  %6339 = vmatmul.mubr.bf16.gmra.mrb[132].mxu1 %v2849_v25 }
 0x47a   : > { %3254 = vmatpush1.bf16.msra.mxu1 %v7066_v19 }
 0x47b   : > { %v2723_v61 = vadd.f32 %v6227_v13, %v8535_v58  ;;  %3255 = vmatprep.subr.bf16.mxu1 %v7071_v53  ;;  %v2822_v60 = vmax.f32 %v2720_v37, 0.0 }
 0x47d   : > { %v2823_v40 = vmax.f32 %v2723_v61, 0.0  ;;  %v6228_v39 = vpop.f32.mrb[84].mxu1 }
 0x47e   : > { %v6229_v44 = vpop.f32.mrb[85].mxu1  ;;  %3256 = vmatpush1.bf16.msra.mxu1 %v7069_v18 }
 0x47f   : > { %v6230_v35 = vadd.f32 %v6229_v44, %v6228_v39  ;;  %v6231_v20 = vpop.f32.mrb[86].mxu1  ;;  %v2850_v23 = vpack.c.bf16 %v2823_v40, %v2822_v60  ;;  %3257 = vmatprep.subr.bf16.mxu1 %v7074_v54 }
 0x480   : > { %v6232_v48 = vpop.f32.mrb[87].mxu1 }
 0x481   : > { %v2728_v52 = vadd.f32 %v6230_v35, %v8535_v58  ;;  %v6233_v17 = vadd.f32 %v6232_v48, %v6231_v20  ;;  %6342 = vmatprep.mubr.bf16.mxu1 %v2850_v23 }
 0x482   : > { %3258 = vmatpush1.bf16.msra.mxu1 %v7072_v30 }
 0x483   : > { %v2731_v6 = vadd.f32 %v6233_v17, %v8535_v58  ;;  %v2824_v22 = vmax.f32 %v2728_v52, 0.0 }
 0x485   : > { %v2825_v24 = vmax.f32 %v2731_v6, 0.0  ;;  %v6234_v50 = vpop.f32.mrb[88].mxu1 }
 0x486   : > { %v6235_v26 = vpop.f32.mrb[89].mxu1 }
 0x487   : > { %v6236_v7 = vadd.f32 %v6235_v26, %v6234_v50  ;;  %v6237_v27 = vpop.f32.mrb[90].mxu1  ;;  %v2851_v29 = vpack.c.bf16 %v2825_v24, %v2824_v22 }
 0x488   : > { %v6238_v31 = vpop.f32.mrb[91].mxu1 }
 0x489   : > { %v2736_v32 = vadd.f32 %v6236_v7, %v8535_v58  ;;  %v6239_v4 = vadd.f32 %v6238_v31, %v6237_v27  ;;  %6343 = vmatmul.mubr.bf16.gmra.mrb[136].mxu1 %v2851_v29 }
 0x48b   : > { %v2739_v34 = vadd.f32 %v6239_v4, %v8535_v58  ;;  %v2826_v36 = vmax.f32 %v2736_v32, 0.0 }
 0x48d   : > { %v2827_v38 = vmax.f32 %v2739_v34, 0.0  ;;  %v6240_v41 = vpop.f32.mrb[92].mxu1 }
 0x48e   : > { %v6241_v42 = vpop.f32.mrb[93].mxu1 }
 0x48f   : > { %v6242_v43 = vadd.f32 %v6241_v42, %v6240_v41  ;;  %v6243_v46 = vpop.f32.mrb[94].mxu1  ;;  %v2852_v47 = vpack.c.bf16 %v2827_v38, %v2826_v36 }
 0x490   : > { %v6244_v49 = vpop.f32.mrb[95].mxu1 }
 0x491   : > { %v2744_v51 = vadd.f32 %v6242_v43, %v8535_v58  ;;  %v6245_v56 = vadd.f32 %v6244_v49, %v6243_v46  ;;  %6346 = vmatprep.mubr.bf16.mxu1 %v2852_v47 }
 0x493   : > { %v2747_v28 = vadd.f32 %v6245_v56, %v8535_v58  ;;  %v2828_v57 = vmax.f32 %v2744_v51, 0.0 }
 0x495   : > { %v2829_v55 = vmax.f32 %v2747_v28, 0.0  ;;  %v6246_v59 = vpop.f32.mrb[96].mxu1 }
 0x496   : > { %v6247_v10 = vpop.f32.mrb[97].mxu1 }
 0x497   : > { %v6248_v62 = vadd.f32 %v6247_v10, %v6246_v59  ;;  %v6249_v0 = vpop.f32.mrb[98].mxu1  ;;  %v2853_v1 = vpack.c.bf16 %v2829_v55, %v2828_v57 }
 0x498   : > { %v6250_v9 = vpop.f32.mrb[99].mxu1 }
 0x499   : > { %v2752_v11 = vadd.f32 %v6248_v62, %v8535_v58  ;;  %v6251_v12 = vadd.f32 %v6250_v9, %v6249_v0  ;;  %6347 = vmatmul.mubr.bf16.gmra.mrb[140].mxu1 %v2853_v1  ;;  %v7075_v0 = vld [vmem:[#allocation11 + $0x70] ss:$8 sps:$4 sm:$0xff]   ;;  %v7077_v1 = vld [vmem:[#allocation11 + $0x74] ss:$8 sps:$4 sm:$0xff]  }
 0x49a   : > { %3259 = vmatprep.subr.bf16.mxu1 %v7077_v1 }
 0x49b   : > { %v2755_v14 = vadd.f32 %v6251_v12, %v8535_v58  ;;  %v2830_v15 = vmax.f32 %v2752_v11, 0.0  ;;  %3260 = vmatpush1.bf16.msra.mxu1 %v7075_v0  ;;  %v7093_v0 = vld [vmem:[#allocation13 + $0x8] ss:$16 sps:$4 sm:$0xff]  }
 0x49d   : > { %v2831_v16 = vmax.f32 %v2755_v14, 0.0  ;;  %v6252_v19 = vpop.f32.mrb[100].mxu1 }
 0x49e   : > { %v6253_v45 = vpop.f32.mrb[101].mxu1 }
 0x49f   : > { %v6254_v21 = vadd.f32 %v6253_v45, %v6252_v19  ;;  %v6255_v25 = vpop.f32.mrb[102].mxu1  ;;  %v2854_v53 = vpack.c.bf16 %v2831_v16, %v2830_v15 }
 0x4a0   : > { %v6256_v33 = vpop.f32.mrb[103].mxu1 }
 0x4a1   : > { %v2760_v37 = vadd.f32 %v6254_v21, %v8535_v58  ;;  %v6257_v13 = vadd.f32 %v6256_v33, %v6255_v25  ;;  %6350 = vmatprep.mubr.bf16.mxu1 %v2854_v53 }
 0x4a3   : > { %v2763_v18 = vadd.f32 %v6257_v13, %v8535_v58  ;;  %v2832_v61 = vmax.f32 %v2760_v37, 0.0 }
 0x4a5   : > { %v2833_v54 = vmax.f32 %v2763_v18, 0.0  ;;  %v6258_v60 = vpop.f32.mrb[104].mxu1 }
 0x4a6   : > { %v6259_v40 = vpop.f32.mrb[105].mxu1 }
 0x4a7   : > { %v6260_v39 = vadd.f32 %v6259_v40, %v6258_v60  ;;  %v6261_v44 = vpop.f32.mrb[106].mxu1  ;;  %v2855_v30 = vpack.c.bf16 %v2833_v54, %v2832_v61 }
 0x4a8   : > { %v6262_v35 = vpop.f32.mrb[107].mxu1 }
 0x4a9   : > { %v2768_v20 = vadd.f32 %v6260_v39, %v8535_v58  ;;  %v6263_v23 = vadd.f32 %v6262_v35, %v6261_v44  ;;  %6351 = vmatmul.mubr.bf16.gmra.mrb[144].mxu1 %v2855_v30 }
 0x4ab   : > { %v2771_v48 = vadd.f32 %v6263_v23, %v8535_v58  ;;  %v2834_v52 = vmax.f32 %v2768_v20, 0.0 }
 0x4ad   : > { %v2835_v17 = vmax.f32 %v2771_v48, 0.0  ;;  %v6264_v6 = vpop.f32.mrb[108].mxu1 }
 0x4ae   : > { %v6265_v22 = vpop.f32.mrb[109].mxu1 }
 0x4af   : > { %v6266_v24 = vadd.f32 %v6265_v22, %v6264_v6  ;;  %v6267_v50 = vpop.f32.mrb[110].mxu1  ;;  %v2856_v26 = vpack.c.bf16 %v2835_v17, %v2834_v52  ;;  %v7751_v6 = vmov 0   ;;  %v7078_v22 = vld [vmem:[#allocation13] ss:$16 sps:$4 sm:$0xff]  }
 0x4b0   : > { %v6268_v7 = vpop.f32.mrb[111].mxu1 }
 0x4b1   : > { %v2776_v27 = vadd.f32 %v6266_v24, %v8535_v58  ;;  %v6269_v29 = vadd.f32 %v6268_v7, %v6267_v50  ;;  %6354 = vmatprep.mubr.bf16.mxu1 %v2856_v26  ;;  %v7080_v24 = vld [vmem:[#allocation13 + $0x4] ss:$16 sps:$4 sm:$0xff]   ;;  %v7081_v26 = vld [vmem:[#allocation13 + $0x20] ss:$16 sps:$4 sm:$0xff]  }
 0x4b2   : > { %3941 = vmatprep.subr.bf16.mxu0 %v7080_v24  ;;  %v7083_v50 = vld [vmem:[#allocation13 + $0x24] ss:$16 sps:$4 sm:$0xff]   ;;  %v7084_v7 = vld [vmem:[#allocation13 + $0x40] ss:$16 sps:$4 sm:$0xff]  }
 0x4b3   : > { %v2779_v31 = vadd.f32 %v6269_v29, %v8535_v58  ;;  %v2836_v32 = vmax.f32 %v2776_v27, 0.0  ;;  %3942 = vmatpush1.bf16.msra.mxu0 %v7078_v22  ;;  %v7086_v27 = vld [vmem:[#allocation13 + $0x44] ss:$16 sps:$4 sm:$0xff]   ;;  %v7117_v22 = vld [vmem:[#allocation13 + $0x88] ss:$16 sps:$4 sm:$0xff]  }
 0x4b4   : > { %3943 = vmatprep.subr.bf16.mxu0 %v7083_v50  ;;  %v7089_v29 = vld [vmem:[#allocation13 + $0x64] ss:$16 sps:$4 sm:$0xff]   ;;  %v7125_v50 = vld [vmem:[#allocation13 + $0xac] ss:$16 sps:$4 sm:$0xff]  }
 0x4b5   : > { %v2837_v4 = vmax.f32 %v2779_v31, 0.0  ;;  %v6270_v34 = vpop.f32.mrb[112].mxu1  ;;  %v8570_v31 = vld [vmem:[#allocation16 + $0x3] ss:$0 sm:$0xff] }
 0x4b6   : > { %v6271_v36 = vpop.f32.mrb[113].mxu1 }
 0x4b7   : > { %v6272_v38 = vadd.f32 %v6271_v36, %v6270_v34  ;;  %v6273_v41 = vpop.f32.mrb[114].mxu1  ;;  %v2857_v42 = vpack.c.bf16 %v2837_v4, %v2836_v32  ;;  %3944 = vmatpush1.bf16.msra.mxu0 %v7081_v26  ;;  %v7126_v26 = vld [vmem:[#allocation13 + $0x140] ss:$16 sps:$4 sm:$0xff]  }
 0x4b8   : > { %v6274_v43 = vpop.f32.mrb[115].mxu1  ;;  %3945 = vmatprep.subr.bf16.mxu0 %v7086_v27  ;;  %v7123_v27 = vld [vmem:[#allocation13 + $0xa8] ss:$16 sps:$4 sm:$0xff]  }
 0x4b9   : > { %v2784_v46 = vadd.f32 %v6272_v38, %v8535_v58  ;;  %v6275_v47 = vadd.f32 %v6274_v43, %v6273_v41  ;;  %6355 = vmatmul.mubr.bf16.gmra.mrb[148].mxu1 %v2857_v42  ;;  %v7090_v41 = vld [vmem:[#allocation13 + $0x80] ss:$16 sps:$4 sm:$0xff]   ;;  %v7092_v42 = vld [vmem:[#allocation13 + $0x84] ss:$16 sps:$4 sm:$0xff]  }
 0x4bb   : > { %v2787_v49 = vadd.f32 %v6275_v47, %v8535_v58  ;;  %v2838_v51 = vmax.f32 %v2784_v46, 0.0  ;;  %3946 = vmatpush1.bf16.msra.mxu0 %v7084_v7  ;;  %v7095_v47 = vld [vmem:[#allocation13 + $0xc] ss:$16 sps:$4 sm:$0xff]   ;;  %v7134_v7 = vld [vmem:[#allocation13 + $0x164] ss:$16 sps:$4 sm:$0xff]  }
 0x4bc   : > { %3947 = vmatprep.subr.bf16.mxu0 %v7089_v29  ;;  %4134 = vmatprep.subr.bf16.mxu1 %v7095_v47  ;;  %v7131_v29 = vld [vmem:[#allocation13 + $0xcc] ss:$16 sps:$4 sm:$0xff]   ;;  %v7149_v47 = vld [vmem:[#allocation13 + $0x1a4] ss:$16 sps:$4 sm:$0xff]  }
 0x4bd   : > { %v2839_v56 = vmax.f32 %v2787_v49, 0.0  ;;  %v6276_v28 = vpop.f32.mrb[116].mxu1 }
 0x4be   : > { %v6277_v57 = vpop.f32.mrb[117].mxu1 }
 0x4bf   : > { %v6278_v55 = vadd.f32 %v6277_v57, %v6276_v28  ;;  %v6279_v59 = vpop.f32.mrb[118].mxu1  ;;  %v2858_v10 = vpack.c.bf16 %v2839_v56, %v2838_v51  ;;  %v7098_v51 = vld [vmem:[#allocation13 + $0xa4] ss:$16 sps:$4 sm:$0xff]   ;;  %v7096_v57 = vld [vmem:[#allocation13 + $0xa0] ss:$16 sps:$4 sm:$0xff]  }
 0x4c0   : > { %v6280_v62 = vpop.f32.mrb[119].mxu1 }
 0x4c1   : > { %v2792_v9 = vadd.f32 %v6278_v55, %v8535_v58  ;;  %v6281_v11 = vadd.f32 %v6280_v62, %v6279_v59  ;;  %6358 = vmatprep.mubr.bf16.mxu1 %v2858_v10  ;;  %v7104_v10 = vld [vmem:[#allocation13 + $0xc4] ss:$16 sps:$4 sm:$0xff]  }
 0x4c3   : > { %v2795_v12 = vadd.f32 %v6281_v11, %v8535_v58  ;;  %v2840_v14 = vmax.f32 %v2792_v9, 0.0  ;;  %v7101_v9 = vld [vmem:[#allocation13 + $0x2c] ss:$16 sps:$4 sm:$0xff]   ;;  %v7102_v11 = vld [vmem:[#allocation13 + $0xc0] ss:$16 sps:$4 sm:$0xff]  }
 0x4c5   : > { %v2841_v15 = vmax.f32 %v2795_v12, 0.0  ;;  %v6282_v16 = vpop.f32.mrb[120].mxu1  ;;  %v7110_v12 = vld [vmem:[#allocation13 + $0xe4] ss:$16 sps:$4 sm:$0xff]  }
 0x4c6   : > { %v6283_v19 = vpop.f32.mrb[121].mxu1 }
 0x4c7   : > { %v6284_v45 = vadd.f32 %v6283_v19, %v6282_v16  ;;  %v6285_v21 = vpop.f32.mrb[122].mxu1  ;;  %v2859_v25 = vpack.c.bf16 %v2841_v15, %v2840_v14  ;;  %v7099_v14 = vld [vmem:[#allocation13 + $0x28] ss:$16 sps:$4 sm:$0xff]   ;;  %v7107_v15 = vld [vmem:[#allocation13 + $0x4c] ss:$16 sps:$4 sm:$0xff]  }
 0x4c8   : > { %v6286_v53 = vpop.f32.mrb[123].mxu1  ;;  %v7108_v16 = vld [vmem:[#allocation13 + $0xe0] ss:$16 sps:$4 sm:$0xff]   ;;  %v7116_v19 = vld [vmem:[#allocation13 + $0x104] ss:$16 sps:$4 sm:$0xff]  }
 0x4c9   : > { %v2800_v33 = vadd.f32 %v6284_v45, %v8535_v58  ;;  %v6287_v37 = vadd.f32 %v6286_v53, %v6285_v21  ;;  %6359 = vmatmul.mubr.bf16.gmra.mrb[152].mxu1 %v2859_v25  ;;  %v7105_v45 = vld [vmem:[#allocation13 + $0x48] ss:$16 sps:$4 sm:$0xff]   ;;  %v7113_v25 = vld [vmem:[#allocation13 + $0x6c] ss:$16 sps:$4 sm:$0xff]  }
 0x4cb   : > { %v2803_v13 = vadd.f32 %v6287_v37, %v8535_v58  ;;  %v2842_v18 = vmax.f32 %v2800_v33, 0.0  ;;  %v7114_v37 = vld [vmem:[#allocation13 + $0x100] ss:$16 sps:$4 sm:$0xff]  }
 0x4cd   : > { %v2843_v61 = vmax.f32 %v2803_v13, 0.0  ;;  %v6288_v54 = vpop.f32.mrb[124].mxu1 }
 0x4ce   : > { %v6289_v60 = vpop.f32.mrb[125].mxu1 }
 0x4cf   : > { %v6290_v40 = vadd.f32 %v6289_v60, %v6288_v54  ;;  %v6291_v39 = vpop.f32.mrb[126].mxu1  ;;  %v2860_v44 = vpack.c.bf16 %v2843_v61, %v2842_v18  ;;  %v7122_v61 = vld [vmem:[#allocation13 + $0x124] ss:$16 sps:$4 sm:$0xff]  }
 0x4d0   : > { %v6292_v30 = vpop.f32.mrb[127].mxu1 }
 0x4d1   : > { %v2808_v35 = vadd.f32 %v6290_v40, %v8535_v58  ;;  %v6293_v20 = vadd.f32 %v6292_v30, %v6291_v39  ;;  %6362 = vmatprep.mubr.bf16.mxu1 %v2860_v44  ;;  %v7111_v40 = vld [vmem:[#allocation13 + $0x68] ss:$16 sps:$4 sm:$0xff]   ;;  %v7119_v44 = vld [vmem:[#allocation13 + $0x8c] ss:$16 sps:$4 sm:$0xff]  }
 0x4d3   : > { %v2811_v23 = vadd.f32 %v6293_v20, %v8535_v58  ;;  %v2844_v48 = vmax.f32 %v2808_v35, 0.0  ;;  %v7087_v58 = vld [vmem:[#allocation13 + $0x60] ss:$16 sps:$4 sm:$0xff]  }
 0x4d4   : > { %3948 = vmatpush1.bf16.msra.mxu0 %v7087_v58  ;;  %v7120_v20 = vld [vmem:[#allocation13 + $0x120] ss:$16 sps:$4 sm:$0xff]  }
 0x4d5   : > { %v2845_v52 = vmax.f32 %v2811_v23, 0.0  ;;  %3949 = vmatprep.subr.bf16.mxu0 %v7092_v42  ;;  %v7132_v58 = vld [vmem:[#allocation13 + $0x160] ss:$16 sps:$4 sm:$0xff]  }
 0x4d6   : > { %v7138_v42 = vld [vmem:[#allocation13 + $0x180] ss:$16 sps:$4 sm:$0xff]  }
 0x4d7   : > { %v2861_v17 = vpack.c.bf16 %v2845_v52, %v2844_v48  ;;  %v7128_v52 = vld [vmem:[#allocation13 + $0x144] ss:$16 sps:$4 sm:$0xff]  }
 0x4d8   : > { %3950 = vmatpush1.bf16.msra.mxu0 %v7090_v41 }
 0x4d9   : > { %6363 = vmatmul.mubr.bf16.gmra.mrb[156].mxu1 %v2861_v17  ;;  %3951 = vmatprep.subr.bf16.mxu0 %v7098_v51 }
 0x4da   : > { %3277 = vmatprep.mubr.bf16.mxu1 %v7751_v6 }
 0x4dc   : > { %3952 = vmatpush1.bf16.msra.mxu0 %v7096_v57  ;;  %v7143_v57 = vld [vmem:[#allocation13 + $0x10c] ss:$16 sps:$4 sm:$0xff]  }
 0x4dd   : > { %3953 = vmatprep.subr.bf16.mxu0 %v7104_v10  ;;  %v7147_v10 = vld [vmem:[#allocation13 + $0x1a0] ss:$16 sps:$4 sm:$0xff]  }
 0x4e0   : > { %3954 = vmatpush1.bf16.msra.mxu0 %v7102_v11  ;;  %v7141_v11 = vld [vmem:[#allocation13 + $0x108] ss:$16 sps:$4 sm:$0xff]  }
 0x4e1   : > { %3955 = vmatprep.subr.bf16.mxu0 %v7110_v12 }
 0x4e4   : > { %3956 = vmatpush1.bf16.msra.mxu0 %v7108_v16  ;;  %v7144_v16 = vld [vmem:[#allocation13 + $0x128] ss:$16 sps:$4 sm:$0xff]  }
 0x4e5   : > { %3957 = vmatprep.subr.bf16.mxu0 %v7116_v19  ;;  %v7152_v19 = vld [vmem:[#allocation13 + $0x14c] ss:$16 sps:$4 sm:$0xff]  }
 0x4e8   : > { %3958 = vmatpush1.bf16.msra.mxu0 %v7114_v37 }
 0x4e9   : > { %3959 = vmatprep.subr.bf16.mxu0 %v7122_v61 }
 0x4ec   : > { %3960 = vmatpush1.bf16.msra.mxu0 %v7120_v20 }
 0x4ed   : > { %3961 = vmatprep.subr.bf16.mxu0 %v7128_v52  ;;  %v7164_v52 = vld [vmem:[#allocation13 + $0x1ac] ss:$16 sps:$4 sm:$0xff]  }
 0x4f0   : > { %3962 = vmatpush1.bf16.msra.mxu0 %v7126_v26 }
 0x4f1   : > { %3963 = vmatprep.subr.bf16.mxu0 %v7134_v7 }
 0x4f4   : > { %3964 = vmatpush1.bf16.msra.mxu0 %v7132_v58 }
 0x53c   : > { %v6336_v32 = vpop.f32.mrb[128].mxu1 }
 0x53d   : > { %v2970_v4 = vadd.f32 %v6336_v32, %v8570_v31  ;;  %v2961_v34 = vpop.f32.mrb[129].mxu1  ;;  %v7140_v32 = vld [vmem:[#allocation13 + $0x184] ss:$16 sps:$4 sm:$0xff]  }
 0x53e   : > { %v2962_v36 = vadd.f32 %v2961_v34, %v8570_v31  ;;  %v6337_v38 = vpop.f32.mrb[130].mxu1  ;;  %3965 = vmatprep.subr.bf16.mxu0 %v7140_v32 }
 0x53f   : > { %v2973_v43 = vadd.f32 %v6337_v38, %v8570_v31  ;;  %v2964_v46 = vpop.f32.mrb[131].mxu1  ;;  %v3090_v56 = vmax.f32 %v2970_v4, 0.0  ;;  %v7129_v4 = vld [vmem:[#allocation13 + $0xc8] ss:$16 sps:$4 sm:$0xff]   ;;  %3966 = vmatpush1.bf16.msra.mxu0 %v7138_v42 }
 0x540   : > { %v2965_v49 = vadd.f32 %v2964_v46, %v8570_v31  ;;  %v3088_v55 = vmax.f32 %v2962_v36, 0.0  ;;  %v7137_v36 = vld [vmem:[#allocation13 + $0xec] ss:$16 sps:$4 sm:$0xff]   ;;  %3967 = vmatprep.subr.bf16.mxu0 %v7149_v47 }
 0x541   : > { %v3091_v28 = vmax.f32 %v2973_v43, 0.0 }
 0x542   : > { %v3089_v59 = vmax.f32 %v2965_v49, 0.0 }
 0x543   : > { %v3121_v62 = vpack.c.bf16 %v3091_v28, %v3090_v56  ;;  %v7135_v56 = vld [vmem:[#allocation13 + $0xe8] ss:$16 sps:$4 sm:$0xff]   ;;  %3968 = vmatpush1.bf16.msra.mxu0 %v7147_v10 }
 0x544   : > { %v3120_v1 = vpack.c.bf16 %v3089_v59, %v3088_v55 }
 0x546   : > { %3278 = vmatmul.mubr.bf16.vlgmr.msra.gmra.mrb[160].mxu1 %v3120_v1  ;;  %v7158_v1 = vld [vmem:[#allocation13 + $0x1c4] ss:$16 sps:$4 sm:$0xff]  }
 0x547   : > { %3287 = vmatprep.mubr.bf16.mxu1 %v7751_v6  ;;  %4135 = vmatpush1.bf16.msra.mxu1 %v7093_v0 }
 0x548   : > { %4136 = vmatprep.subr.bf16.mxu1 %v7101_v9  ;;  %3969 = vmatprep.subr.bf16.mxu0 %v7158_v1  ;;  %v7170_v1 = vld [vmem:[#allocation13 + $0x1cc] ss:$16 sps:$4 sm:$0xff]  }
 0x54b   : > { %4137 = vmatpush1.bf16.msra.mxu1 %v7099_v14  ;;  %v7146_v14 = vld [vmem:[#allocation13 + $0x12c] ss:$16 sps:$4 sm:$0xff]  }
 0x54c   : > { %v6340_v21 = vpop.f32.mrb[132].mxu1  ;;  %4138 = vmatprep.subr.bf16.mxu1 %v7107_v15  ;;  %v7156_v15 = vld [vmem:[#allocation13 + $0x1c0] ss:$16 sps:$4 sm:$0xff]  }
 0x54d   : > { %v2986_v53 = vadd.f32 %v6340_v21, %v8570_v31  ;;  %v2977_v33 = vpop.f32.mrb[133].mxu1  ;;  %3970 = vmatpush1.bf16.msra.mxu0 %v7156_v15 }
 0x54e   : > { %v2978_v13 = vadd.f32 %v2977_v33, %v8570_v31  ;;  %v6341_v18 = vpop.f32.mrb[134].mxu1  ;;  %3288 = vmatmul.mubr.bf16.gmra.mrb[164].mxu1 %v3121_v62 }
 0x54f   : > { %v2989_v54 = vadd.f32 %v6341_v18, %v8570_v31  ;;  %v2980_v60 = vpop.f32.mrb[135].mxu1  ;;  %3297 = vmatprep.mubr.bf16.mxu1 %v7751_v6  ;;  %4139 = vmatpush1.bf16.msra.mxu1 %v7105_v45  ;;  %v3094_v30 = vmax.f32 %v2986_v53, 0.0  ;;  %v7150_v45 = vld [vmem:[#allocation13 + $0x148] ss:$16 sps:$4 sm:$0xff]  }
 0x550   : > { %v2981_v39 = vadd.f32 %v2980_v60, %v8570_v31  ;;  %4140 = vmatprep.subr.bf16.mxu1 %v7113_v25  ;;  %v3092_v23 = vmax.f32 %v2978_v13, 0.0  ;;  %v7155_v25 = vld [vmem:[#allocation13 + $0x16c] ss:$16 sps:$4 sm:$0xff]  }
 0x551   : > { %v3095_v35 = vmax.f32 %v2989_v54, 0.0  ;;  %v7153_v54 = vld [vmem:[#allocation13 + $0x168] ss:$16 sps:$4 sm:$0xff]  }
 0x552   : > { %v3093_v48 = vmax.f32 %v2981_v39, 0.0 }
 0x553   : > { %v3123_v17 = vpack.c.bf16 %v3095_v35, %v3094_v30  ;;  %4141 = vmatpush1.bf16.msra.mxu1 %v7111_v40  ;;  %v7161_v40 = vld [vmem:[#allocation13 + $0x18c] ss:$16 sps:$4 sm:$0xff]  }
 0x554   : > { %v3122_v24 = vpack.c.bf16 %v3093_v48, %v3092_v23  ;;  %4142 = vmatprep.subr.bf16.mxu1 %v7119_v44  ;;  %v7159_v23 = vld [vmem:[#allocation13 + $0x188] ss:$16 sps:$4 sm:$0xff]  }
 0x556   : > { %3298 = vmatmul.mubr.bf16.gmra.mrb[168].mxu1 %v3122_v24 }
 0x557   : > { %3307 = vmatprep.mubr.bf16.mxu1 %v7751_v6  ;;  %4143 = vmatpush1.bf16.msra.mxu1 %v7117_v22 }
 0x558   : > { %4144 = vmatprep.subr.bf16.mxu1 %v7125_v50 }
 0x55b   : > { %4145 = vmatpush1.bf16.msra.mxu1 %v7123_v27 }
 0x55c   : > { %v6344_v34 = vpop.f32.mrb[136].mxu1  ;;  %4146 = vmatprep.subr.bf16.mxu1 %v7131_v29 }
 0x55d   : > { %v3002_v38 = vadd.f32 %v6344_v34, %v8570_v31  ;;  %v2993_v41 = vpop.f32.mrb[137].mxu1 }
 0x55e   : > { %v2994_v43 = vadd.f32 %v2993_v41, %v8570_v31  ;;  %v6345_v46 = vpop.f32.mrb[138].mxu1  ;;  %3308 = vmatmul.mubr.bf16.gmra.mrb[172].mxu1 %v3123_v17  ;;  %v7162_v17 = vld [vmem:[#allocation13 + $0x1a8] ss:$16 sps:$4 sm:$0xff]  }
 0x55f   : > { %v3005_v49 = vadd.f32 %v6345_v46, %v8570_v31  ;;  %v2996_v51 = vpop.f32.mrb[139].mxu1  ;;  %3317 = vmatprep.mubr.bf16.mxu1 %v7751_v6  ;;  %4147 = vmatpush1.bf16.msra.mxu1 %v7129_v4  ;;  %v3098_v55 = vmax.f32 %v3002_v38, 0.0 }
 0x560   : > { %v2997_v28 = vadd.f32 %v2996_v51, %v8570_v31  ;;  %4148 = vmatprep.subr.bf16.mxu1 %v7137_v36  ;;  %v3096_v62 = vmax.f32 %v2994_v43, 0.0 }
 0x561   : > { %v3099_v59 = vmax.f32 %v3005_v49, 0.0 }
 0x562   : > { %v3097_v0 = vmax.f32 %v2997_v28, 0.0 }
 0x563   : > { %v3125_v9 = vpack.c.bf16 %v3099_v59, %v3098_v55  ;;  %4149 = vmatpush1.bf16.msra.mxu1 %v7135_v56 }
 0x564   : > { %v3124_v12 = vpack.c.bf16 %v3097_v0, %v3096_v62  ;;  %4150 = vmatprep.subr.bf16.mxu1 %v7143_v57 }
 0x566   : > { %3318 = vmatmul.mubr.bf16.gmra.mrb[176].mxu1 %v3124_v12 }
 0x567   : > { %3327 = vmatprep.mubr.bf16.mxu1 %v7751_v6  ;;  %4151 = vmatpush1.bf16.msra.mxu1 %v7141_v11 }
 0x568   : > { %4152 = vmatprep.subr.bf16.mxu1 %v7146_v14 }
 0x56b   : > { %4153 = vmatpush1.bf16.msra.mxu1 %v7144_v16 }
 0x56c   : > { %v6348_v21 = vpop.f32.mrb[140].mxu1  ;;  %4154 = vmatprep.subr.bf16.mxu1 %v7152_v19  ;;  %v7167_v19 = vld [vmem:[#allocation13 + $0x1e4] ss:$16 sps:$4 sm:$0xff]  }
 0x56d   : > { %v3018_v53 = vadd.f32 %v6348_v21, %v8570_v31  ;;  %v3009_v33 = vpop.f32.mrb[141].mxu1  ;;  %3971 = vmatprep.subr.bf16.mxu0 %v7167_v19 }
 0x56e   : > { %v3010_v37 = vadd.f32 %v3009_v33, %v8570_v31  ;;  %v6349_v13 = vpop.f32.mrb[142].mxu1  ;;  %3328 = vmatmul.mubr.bf16.gmra.mrb[180].mxu1 %v3125_v9  ;;  %v7168_v9 = vld [vmem:[#allocation13 + $0x1c8] ss:$16 sps:$4 sm:$0xff]  }
 0x56f   : > { %v3021_v18 = vadd.f32 %v6349_v13, %v8570_v31  ;;  %v3012_v61 = vpop.f32.mrb[143].mxu1  ;;  %3337 = vmatprep.mubr.bf16.mxu1 %v7751_v6  ;;  %4155 = vmatpush1.bf16.msra.mxu1 %v7150_v45  ;;  %v3102_v39 = vmax.f32 %v3018_v53, 0.0  ;;  %v7173_v45 = vld [vmem:[#allocation13 + $0x1ec] ss:$16 sps:$4 sm:$0xff]   ;;  %v7165_v53 = vld [vmem:[#allocation13 + $0x1e0] ss:$16 sps:$4 sm:$0xff]  }
 0x570   : > { %v3013_v60 = vadd.f32 %v3012_v61, %v8570_v31  ;;  %4156 = vmatprep.subr.bf16.mxu1 %v7155_v25  ;;  %v3100_v30 = vmax.f32 %v3010_v37, 0.0  ;;  %v7171_v33 = vld [vmem:[#allocation13 + $0x1e8] ss:$16 sps:$4 sm:$0xff]   ;;  %3972 = vmatpush1.bf16.msra.mxu0 %v7165_v53 }
 0x571   : > { %v3103_v44 = vmax.f32 %v3021_v18, 0.0 }
 0x572   : > { %v3101_v35 = vmax.f32 %v3013_v60, 0.0 }
 0x573   : > { %v3127_v20 = vpack.c.bf16 %v3103_v44, %v3102_v39  ;;  %4157 = vmatpush1.bf16.msra.mxu1 %v7153_v54 }
 0x574   : > { %v3126_v48 = vpack.c.bf16 %v3101_v35, %v3100_v30  ;;  %4158 = vmatprep.subr.bf16.mxu1 %v7161_v40 }
 0x576   : > { %3338 = vmatmul.mubr.bf16.gmra.mrb[184].mxu1 %v3126_v48 }
 0x577   : > { %3347 = vmatprep.mubr.bf16.mxu1 %v7751_v6  ;;  %4159 = vmatpush1.bf16.msra.mxu1 %v7159_v23 }
 0x578   : > { %4160 = vmatprep.subr.bf16.mxu1 %v7164_v52 }
 0x57b   : > { %4161 = vmatpush1.bf16.msra.mxu1 %v7162_v17 }
 0x57c   : > { %v6352_v22 = vpop.f32.mrb[144].mxu1  ;;  %4162 = vmatprep.subr.bf16.mxu1 %v7170_v1 }
 0x57d   : > { %v3034_v24 = vadd.f32 %v6352_v22, %v8570_v31  ;;  %v3025_v50 = vpop.f32.mrb[145].mxu1 }
 0x57e   : > { %v3026_v26 = vadd.f32 %v3025_v50, %v8570_v31  ;;  %v6353_v7 = vpop.f32.mrb[146].mxu1  ;;  %3348 = vmatmul.mubr.bf16.gmra.mrb[188].mxu1 %v3127_v20 }
 0x57f   : > { %v3037_v27 = vadd.f32 %v6353_v7, %v8570_v31  ;;  %v3028_v29 = vpop.f32.mrb[147].mxu1  ;;  %3357 = vmatprep.mubr.bf16.mxu1 %v7751_v6  ;;  %v3106_v32 = vmax.f32 %v3034_v24, 0.0  ;;  %4163 = vmatpush1.bf16.msra.mxu1 %v7168_v9 }
 0x580   : > { %v3029_v58 = vadd.f32 %v3028_v29, %v8570_v31  ;;  %v3104_v34 = vmax.f32 %v3026_v26, 0.0  ;;  %4164 = vmatprep.subr.bf16.mxu1 %v7173_v45  ;;  %v3153_v29 = vld [vmem:[#allocation16 + $0x4] ss:$8 sm:$0x3] }
 0x581   : > { %v3107_v4 = vmax.f32 %v3037_v27, 0.0  ;;  %v7176_v27 = vld [vmem:[#allocation14 + $0x4] ss:$8 sps:$4 sm:$0xff]  }
 0x582   : > { %v3105_v36 = vmax.f32 %v3029_v58, 0.0  ;;  %4916 = vmatprep.subr.bf16.mxu0 %v7176_v27  ;;  %v8620_v58 = vrot.slane %v3153_v29, %v8229_v3 }
 0x583   : > { %v3129_v38 = vpack.c.bf16 %v3107_v4, %v3106_v32  ;;  %4165 = vmatpush1.bf16.msra.mxu1 %v7171_v33  ;;  %v8623_v32 = vrot.slane %v3153_v29, %v8234_v5 }
 0x584   : > { %v3128_v41 = vpack.c.bf16 %v3105_v36, %v3104_v34 }
 0x586   : > { %3358 = vmatmul.mubr.bf16.gmra.mrb[192].mxu1 %v3128_v41 }
 0x587   : > { %3367 = vmatprep.mubr.bf16.mxu1 %v7751_v6 }
 0x58c   : > { %v6356_v42 = vpop.f32.mrb[148].mxu1 }
 0x58d   : > { %v3050_v43 = vadd.f32 %v6356_v42, %v8570_v31  ;;  %v3041_v46 = vpop.f32.mrb[149].mxu1 }
 0x58e   : > { %v3042_v47 = vadd.f32 %v3041_v46, %v8570_v31  ;;  %v6357_v49 = vpop.f32.mrb[150].mxu1  ;;  %3368 = vmatmul.mubr.bf16.gmra.mrb[196].mxu1 %v3129_v38 }
 0x58f   : > { %v3053_v51 = vadd.f32 %v6357_v49, %v8570_v31  ;;  %v3044_v56 = vpop.f32.mrb[151].mxu1  ;;  %3377 = vmatprep.mubr.bf16.mxu1 %v7751_v6  ;;  %v3110_v57 = vmax.f32 %v3050_v43, 0.0 }
 0x590   : > { %v3045_v28 = vadd.f32 %v3044_v56, %v8570_v31  ;;  %v3108_v59 = vmax.f32 %v3042_v47, 0.0 }
 0x591   : > { %v3111_v55 = vmax.f32 %v3053_v51, 0.0 }
 0x592   : > { %v3109_v10 = vmax.f32 %v3045_v28, 0.0 }
 0x593   : > { %v3131_v62 = vpack.c.bf16 %v3111_v55, %v3110_v57  ;;  %v7174_v57 = vld [vmem:[#allocation14] ss:$8 sps:$4 sm:$0xff]   ;;  %v8629_v55 = vld [vmem:[#allocation14 + $0x104] ss:$8 sps:$4 sm:$0xff]  }
 0x594   : > { %v3130_v0 = vpack.c.bf16 %v3109_v10, %v3108_v59  ;;  %6366 = vmatprep.subr.bf16.mxu1 %v8629_v55 }
 0x596   : > { %3378 = vmatmul.mubr.bf16.gmra.mrb[200].mxu1 %v3130_v0  ;;  %v8632_v0 = vld [vmem:[#allocation14 + $0x100] ss:$8 sps:$4 sm:$0xff]  }
 0x597   : > { %3387 = vmatprep.mubr.bf16.mxu1 %v7751_v6 }
 0x59c   : > { %v6360_v11 = vpop.f32.mrb[152].mxu1 }
 0x59d   : > { %v3066_v12 = vadd.f32 %v6360_v11, %v8570_v31  ;;  %v3057_v14 = vpop.f32.mrb[153].mxu1  ;;  %v8635_v11 = vld [vmem:[#allocation14 + $0x114] ss:$8 sps:$4 sm:$0xff]  }
 0x59e   : > { %v3058_v15 = vadd.f32 %v3057_v14, %v8570_v31  ;;  %v6361_v16 = vpop.f32.mrb[154].mxu1  ;;  %3388 = vmatmul.mubr.bf16.gmra.mrb[204].mxu1 %v3131_v62  ;;  %v7179_v62 = vld [vmem:[#allocation14 + $0x14] ss:$8 sps:$4 sm:$0xff]  }
 0x59f   : > { %v3069_v21 = vadd.f32 %v6361_v16, %v8570_v31  ;;  %v3060_v25 = vpop.f32.mrb[155].mxu1  ;;  %3397 = vmatprep.mubr.bf16.mxu1 %v7751_v6  ;;  %v3114_v13 = vmax.f32 %v3066_v12, 0.0  ;;  %v7177_v16 = vld [vmem:[#allocation14 + $0x10] ss:$8 sps:$4 sm:$0xff]  }
 0x5a0   : > { %v3061_v37 = vadd.f32 %v3060_v25, %v8570_v31  ;;  %v3112_v61 = vmax.f32 %v3058_v15, 0.0  ;;  %v8641_v25 = vld [vmem:[#allocation14 + $0x110] ss:$8 sps:$4 sm:$0xff]  }
 0x5a1   : > { %v3115_v18 = vmax.f32 %v3069_v21, 0.0  ;;  %v7182_v21 = vld [vmem:[#allocation14 + $0x24] ss:$8 sps:$4 sm:$0xff]  }
 0x5a2   : > { %v3113_v54 = vmax.f32 %v3061_v37, 0.0 }
 0x5a3   : > { %v3133_v60 = vpack.c.bf16 %v3115_v18, %v3114_v13 }
 0x5a4   : > { %v3132_v40 = vpack.c.bf16 %v3113_v54, %v3112_v61  ;;  %v7180_v61 = vld [vmem:[#allocation14 + $0x20] ss:$8 sps:$4 sm:$0xff]   ;;  %v8644_v54 = vld [vmem:[#allocation14 + $0x124] ss:$8 sps:$4 sm:$0xff]  }
 0x5a6   : > { %3398 = vmatmul.mubr.bf16.gmra.mrb[208].mxu1 %v3132_v40 }
 0x5a7   : > { %3407 = vmatprep.mubr.bf16.mxu1 %v7751_v6 }
 0x5ac   : > { %v6364_v39 = vpop.f32.mrb[156].mxu1 }
 0x5ad   : > { %v3082_v44 = vadd.f32 %v6364_v39, %v8570_v31  ;;  %v3073_v30 = vpop.f32.mrb[157].mxu1  ;;  %v7185_v39 = vld [vmem:[#allocation14 + $0x34] ss:$8 sps:$4 sm:$0xff]  }
 0x5ae   : > { %v3074_v35 = vadd.f32 %v3073_v30, %v8570_v31  ;;  %v6365_v20 = vpop.f32.mrb[158].mxu1  ;;  %3408 = vmatmul.mubr.bf16.gmra.mrb[212].mxu1 %v3133_v60 }
 0x5af   : > { %v3085_v23 = vadd.f32 %v6365_v20, %v8570_v31  ;;  %v3076_v48 = vpop.f32.mrb[159].mxu1  ;;  %3417 = vmatprep.mubr.bf16.mxu1 %v7751_v6  ;;  %v3118_v17 = vmax.f32 %v3082_v44, 0.0  ;;  %v8648_v44 = vld [vmem:[#allocation14 + $0x120] ss:$8 sps:$4 sm:$0xff]   ;;  %v8651_v20 = vld [vmem:[#allocation14 + $0x134] ss:$8 sps:$4 sm:$0xff]  }
 0x5b0   : > { %v3077_v52 = vadd.f32 %v3076_v48, %v8570_v31  ;;  %v3116_v24 = vmax.f32 %v3074_v35, 0.0 }
 0x5b1   : > { %v3119_v22 = vmax.f32 %v3085_v23, 0.0 }
 0x5b2   : > { %v3117_v50 = vmax.f32 %v3077_v52, 0.0 }
 0x5b3   : > { %v3135_v26 = vpack.c.bf16 %v3119_v22, %v3118_v17  ;;  %v7183_v17 = vld [vmem:[#allocation14 + $0x30] ss:$8 sps:$4 sm:$0xff]  }
 0x5b4   : > { %v3134_v7 = vpack.c.bf16 %v3117_v50, %v3116_v24  ;;  %v7188_v50 = vld [vmem:[#allocation14 + $0x44] ss:$8 sps:$4 sm:$0xff]  }
 0x5b6   : > { %3418 = vmatmul.mubr.bf16.gmra.mrb[216].mxu1 %v3134_v7 }
 0x5b7   : > { %3427 = vmatprep.mubr.bf16.mxu1 %v7751_v6 }
 0x5be   : > { %3428 = vmatmul.mubr.bf16.gmra.mrb[220].mxu1 %v3135_v26  ;;  %v8657_v26 = vld [vmem:[#allocation14 + $0x130] ss:$8 sps:$4 sm:$0xff]  }
 0x619   : > { %v3279_v31 = vpop.f32.mrb[160].mxu1 }
 0x61a   : > { %v3280_v4 = vadd.f32 %v3279_v31, %v8620_v58  ;;  %v3281_v34 = vpop.f32.mrb[161].mxu1 }
 0x61b   : > { %v3282_v36 = vadd.f32 %v3281_v34, %v8623_v32  ;;  %v3283_v38 = vpop.f32.mrb[162].mxu1  ;;  %v7186_v34 = vld [vmem:[#allocation14 + $0x40] ss:$8 sps:$4 sm:$0xff]  }
 0x61c   : > { %v3284_v41 = vadd.f32 %v3283_v38, %v8620_v58  ;;  %v3285_v6 = vpop.f32.mrb[163].mxu1  ;;  %v3438_v43 = vmax.f32 %v3280_v4, 0.0 }
 0x61d   : > { %v3286_v42 = vadd.f32 %v3285_v6, %v8623_v32  ;;  %v3439_v47 = vmax.f32 %v3282_v36, 0.0  ;;  %v8660_v36 = vld [vmem:[#allocation14 + $0x144] ss:$8 sps:$4 sm:$0xff]   ;;  %v7191_v6 = vld [vmem:[#allocation14 + $0x54] ss:$8 sps:$4 sm:$0xff]  }
 0x61e   : > { %v3440_v46 = vmax.f32 %v3284_v41, 0.0 }
 0x61f   : > { %v3441_v49 = vmax.f32 %v3286_v42, 0.0  ;;  %v8664_v42 = vld [vmem:[#allocation14 + $0x140] ss:$8 sps:$4 sm:$0xff]  }
 0x620   : > { %v3502_v51 = vpack.c.bf16 %v3440_v46, %v3438_v43 }
 0x621   : > { %v3503_v56 = vpack.c.bf16 %v3441_v49, %v3439_v47  ;;  %v3289_v28 = vpop.f32.mrb[164].mxu1  ;;  %v8667_v47 = vld [vmem:[#allocation14 + $0x154] ss:$8 sps:$4 sm:$0xff]  }
 0x622   : > { %v3290_v59 = vadd.f32 %v3289_v28, %v8620_v58  ;;  %v3291_v10 = vpop.f32.mrb[165].mxu1  ;;  %v7189_v28 = vld [vmem:[#allocation14 + $0x50] ss:$8 sps:$4 sm:$0xff]  }
 0x623   : > { %v3292_v1 = vadd.f32 %v3291_v10, %v8623_v32  ;;  %v3293_v9 = vpop.f32.mrb[166].mxu1  ;;  %3973 = vmatprep.mubr.bf16.mxu0 %v3503_v56  ;;  %4166 = vmatprep.mubr.bf16.mxu1 %v3503_v56  ;;  %v7194_v10 = vld [vmem:[#allocation14 + $0x64] ss:$8 sps:$4 sm:$0xff]  }
 0x624   : > { %v3294_v12 = vadd.f32 %v3293_v9, %v8620_v58  ;;  %v3295_v14 = vpop.f32.mrb[167].mxu1  ;;  %3974 = vmatmul.mubr.bf16.vlgmr.msra.gmra.mrb[128].mxu0 %v3502_v51  ;;  %4167 = vmatmul.mubr.bf16.vlgmr.msra.gmra.mrb[224].mxu1 %v3502_v51  ;;  %v3442_v19 = vmax.f32 %v3290_v59, 0.0 }
 0x625   : > { %v3296_v15 = vadd.f32 %v3295_v14, %v8623_v32  ;;  %4917 = vmatpush1.bf16.msra.mxu0 %v7174_v57  ;;  %6382 = vmatpush1.bf16.msra.mxu1 %v8632_v0  ;;  %v3443_v53 = vmax.f32 %v3292_v1, 0.0 }
 0x626   : > { %v3444_v45 = vmax.f32 %v3294_v12, 0.0  ;;  %4918 = vmatprep.subr.bf16.mxu0 %v7179_v62  ;;  %6367 = vmatprep.subr.bf16.mxu1 %v8635_v11  ;;  %v8673_v62 = vld [vmem:[#allocation14 + $0x150] ss:$8 sps:$4 sm:$0xff]  }
 0x627   : > { %v3445_v33 = vmax.f32 %v3296_v15, 0.0 }
 0x628   : > { %v3504_v37 = vpack.c.bf16 %v3444_v45, %v3442_v19  ;;  %v8676_v19 = vld [vmem:[#allocation14 + $0x164] ss:$8 sps:$4 sm:$0xff]  }
 0x629   : > { %v3505_v13 = vpack.c.bf16 %v3445_v33, %v3443_v53  ;;  %v3299_v18 = vpop.f32.mrb[168].mxu1  ;;  %4919 = vmatpush1.bf16.msra.mxu0 %v7177_v16  ;;  %6383 = vmatpush1.bf16.msra.mxu1 %v8641_v25  ;;  %v7192_v16 = vld [vmem:[#allocation14 + $0x60] ss:$8 sps:$4 sm:$0xff]   ;;  %v7197_v53 = vld [vmem:[#allocation14 + $0x74] ss:$8 sps:$4 sm:$0xff]  }
 0x62a   : > { %v3300_v60 = vadd.f32 %v3299_v18, %v8620_v58  ;;  %v3301_v40 = vpop.f32.mrb[169].mxu1  ;;  %4920 = vmatprep.subr.bf16.mxu0 %v7182_v21  ;;  %6368 = vmatprep.subr.bf16.mxu1 %v8644_v54  ;;  %v8680_v33 = vld [vmem:[#allocation14 + $0x160] ss:$8 sps:$4 sm:$0xff]  }
 0x62b   : > { %v3302_v30 = vadd.f32 %v3301_v40, %v8623_v32  ;;  %v3303_v35 = vpop.f32.mrb[170].mxu1  ;;  %3983 = vmatprep.mubr.bf16.mxu0 %v3505_v13  ;;  %4176 = vmatprep.mubr.bf16.mxu1 %v3505_v13  ;;  %v7195_v40 = vld [vmem:[#allocation14 + $0x70] ss:$8 sps:$4 sm:$0xff]  }
 0x62c   : > { %v3304_v23 = vadd.f32 %v3303_v35, %v8620_v58  ;;  %v3305_v48 = vpop.f32.mrb[171].mxu1  ;;  %3984 = vmatmul.mubr.bf16.gmra.mrb[132].mxu0 %v3504_v37  ;;  %4177 = vmatmul.mubr.bf16.gmra.mrb[228].mxu1 %v3504_v37  ;;  %v3446_v22 = vmax.f32 %v3300_v60, 0.0  ;;  %v7200_v35 = vld [vmem:[#allocation14 + $0x84] ss:$8 sps:$4 sm:$0xff]  }
 0x62d   : > { %v3306_v52 = vadd.f32 %v3305_v48, %v8623_v32  ;;  %4921 = vmatpush1.bf16.msra.mxu0 %v7180_v61  ;;  %6384 = vmatpush1.bf16.msra.mxu1 %v8648_v44  ;;  %v3447_v7 = vmax.f32 %v3302_v30, 0.0 }
 0x62e   : > { %v3448_v24 = vmax.f32 %v3304_v23, 0.0  ;;  %4922 = vmatprep.subr.bf16.mxu0 %v7185_v39  ;;  %6369 = vmatprep.subr.bf16.mxu1 %v8651_v20 }
 0x62f   : > { %v3449_v27 = vmax.f32 %v3306_v52, 0.0 }
 0x630   : > { %v3506_v29 = vpack.c.bf16 %v3448_v24, %v3446_v22  ;;  %v7198_v24 = vld [vmem:[#allocation14 + $0x80] ss:$8 sps:$4 sm:$0xff]  }
 0x631   : > { %v3507_v31 = vpack.c.bf16 %v3449_v27, %v3447_v7  ;;  %v3309_v4 = vpop.f32.mrb[172].mxu1  ;;  %4923 = vmatpush1.bf16.msra.mxu0 %v7183_v17  ;;  %6385 = vmatpush1.bf16.msra.mxu1 %v8657_v26  ;;  %v7206_v27 = vld [vmem:[#allocation14 + $0x94] ss:$8 sps:$4 sm:$0xff]  }
 0x632   : > { %v3310_v38 = vadd.f32 %v3309_v4, %v8620_v58  ;;  %v3311_v41 = vpop.f32.mrb[173].mxu1  ;;  %4924 = vmatprep.subr.bf16.mxu0 %v7188_v50  ;;  %6370 = vmatprep.subr.bf16.mxu1 %v8660_v36 }
 0x633   : > { %v3312_v43 = vadd.f32 %v3311_v41, %v8623_v32  ;;  %v3313_v46 = vpop.f32.mrb[174].mxu1  ;;  %3993 = vmatprep.mubr.bf16.mxu0 %v3507_v31  ;;  %4186 = vmatprep.mubr.bf16.mxu1 %v3507_v31  ;;  %v7204_v41 = vld [vmem:[#allocation14 + $0x90] ss:$8 sps:$4 sm:$0xff]  }
 0x634   : > { %v3314_v49 = vadd.f32 %v3313_v46, %v8620_v58  ;;  %v3315_v51 = vpop.f32.mrb[175].mxu1  ;;  %3994 = vmatmul.mubr.bf16.gmra.mrb[136].mxu0 %v3506_v29  ;;  %4187 = vmatmul.mubr.bf16.gmra.mrb[232].mxu1 %v3506_v29  ;;  %v3450_v57 = vmax.f32 %v3310_v38, 0.0  ;;  %v7212_v46 = vld [vmem:[#allocation14 + $0xa4] ss:$8 sps:$4 sm:$0xff]  }
 0x635   : > { %v3316_v56 = vadd.f32 %v3315_v51, %v8623_v32  ;;  %4925 = vmatpush1.bf16.msra.mxu0 %v7186_v34  ;;  %6386 = vmatpush1.bf16.msra.mxu1 %v8664_v42  ;;  %v3451_v1 = vmax.f32 %v3312_v43, 0.0 }
 0x636   : > { %v3452_v59 = vmax.f32 %v3314_v49, 0.0  ;;  %4926 = vmatprep.subr.bf16.mxu0 %v7191_v6  ;;  %6371 = vmatprep.subr.bf16.mxu1 %v8667_v47 }
 0x637   : > { %v3453_v9 = vmax.f32 %v3316_v56, 0.0 }
 0x638   : > { %v3508_v12 = vpack.c.bf16 %v3452_v59, %v3450_v57  ;;  %v7210_v59 = vld [vmem:[#allocation14 + $0xa0] ss:$8 sps:$4 sm:$0xff]  }
 0x639   : > { %v3509_v14 = vpack.c.bf16 %v3453_v9, %v3451_v1  ;;  %v3319_v15 = vpop.f32.mrb[176].mxu1  ;;  %4927 = vmatpush1.bf16.msra.mxu0 %v7189_v28  ;;  %6387 = vmatpush1.bf16.msra.mxu1 %v8673_v62  ;;  %v7218_v9 = vld [vmem:[#allocation14 + $0xb4] ss:$8 sps:$4 sm:$0xff]  }
 0x63a   : > { %v3320_v45 = vadd.f32 %v3319_v15, %v8620_v58  ;;  %v3321_v21 = vpop.f32.mrb[177].mxu1  ;;  %4928 = vmatprep.subr.bf16.mxu0 %v7194_v10  ;;  %6372 = vmatprep.subr.bf16.mxu1 %v8676_v19 }
 0x63b   : > { %v3322_v37 = vadd.f32 %v3321_v21, %v8623_v32  ;;  %v3323_v13 = vpop.f32.mrb[178].mxu1  ;;  %4003 = vmatprep.mubr.bf16.mxu0 %v3509_v14  ;;  %4196 = vmatprep.mubr.bf16.mxu1 %v3509_v14  ;;  %v7216_v21 = vld [vmem:[#allocation14 + $0xb0] ss:$8 sps:$4 sm:$0xff]  }
 0x63c   : > { %v3324_v18 = vadd.f32 %v3323_v13, %v8620_v58  ;;  %v3325_v61 = vpop.f32.mrb[179].mxu1  ;;  %4004 = vmatmul.mubr.bf16.gmra.mrb[140].mxu0 %v3508_v12  ;;  %4197 = vmatmul.mubr.bf16.gmra.mrb[236].mxu1 %v3508_v12  ;;  %v3454_v39 = vmax.f32 %v3320_v45, 0.0  ;;  %v7224_v13 = vld [vmem:[#allocation14 + $0xc4] ss:$8 sps:$4 sm:$0xff]  }
 0x63d   : > { %v3326_v60 = vadd.f32 %v3325_v61, %v8623_v32  ;;  %4929 = vmatpush1.bf16.msra.mxu0 %v7192_v16  ;;  %6388 = vmatpush1.bf16.msra.mxu1 %v8680_v33  ;;  %v3455_v23 = vmax.f32 %v3322_v37, 0.0 }
 0x63e   : > { %v3456_v30 = vmax.f32 %v3324_v18, 0.0  ;;  %4930 = vmatprep.subr.bf16.mxu0 %v7197_v53 }
 0x63f   : > { %v3457_v48 = vmax.f32 %v3326_v60, 0.0 }
 0x640   : > { %v3510_v52 = vpack.c.bf16 %v3456_v30, %v3454_v39  ;;  %v7222_v30 = vld [vmem:[#allocation14 + $0xc0] ss:$8 sps:$4 sm:$0xff]  }
 0x641   : > { %v3511_v17 = vpack.c.bf16 %v3457_v48, %v3455_v23  ;;  %v3329_v22 = vpop.f32.mrb[180].mxu1  ;;  %4931 = vmatpush1.bf16.msra.mxu0 %v7195_v40  ;;  %v7230_v48 = vld [vmem:[#allocation14 + $0xd4] ss:$8 sps:$4 sm:$0xff]  }
 0x642   : > { %v3330_v50 = vadd.f32 %v3329_v22, %v8620_v58  ;;  %v3331_v7 = vpop.f32.mrb[181].mxu1  ;;  %4932 = vmatprep.subr.bf16.mxu0 %v7200_v35 }
 0x643   : > { %v3332_v29 = vadd.f32 %v3331_v7, %v8623_v32  ;;  %v3333_v31 = vpop.f32.mrb[182].mxu1  ;;  %4013 = vmatprep.mubr.bf16.mxu0 %v3511_v17  ;;  %4206 = vmatprep.mubr.bf16.mxu1 %v3511_v17  ;;  %v7228_v7 = vld [vmem:[#allocation14 + $0xd0] ss:$8 sps:$4 sm:$0xff]  }
 0x644   : > { %v3334_v4 = vadd.f32 %v3333_v31, %v8620_v58  ;;  %v3335_v34 = vpop.f32.mrb[183].mxu1  ;;  %4014 = vmatmul.mubr.bf16.gmra.mrb[144].mxu0 %v3510_v52  ;;  %4207 = vmatmul.mubr.bf16.gmra.mrb[240].mxu1 %v3510_v52  ;;  %v3458_v6 = vmax.f32 %v3330_v50, 0.0  ;;  %v7236_v31 = vld [vmem:[#allocation14 + $0xe4] ss:$8 sps:$4 sm:$0xff]  }
 0x645   : > { %v3336_v38 = vadd.f32 %v3335_v34, %v8623_v32  ;;  %4933 = vmatpush1.bf16.msra.mxu0 %v7198_v24  ;;  %v3459_v49 = vmax.f32 %v3332_v29, 0.0 }
 0x646   : > { %v3460_v43 = vmax.f32 %v3334_v4, 0.0  ;;  %4934 = vmatprep.subr.bf16.mxu0 %v7206_v27 }
 0x647   : > { %v3461_v51 = vmax.f32 %v3336_v38, 0.0 }
 0x648   : > { %v3512_v56 = vpack.c.bf16 %v3460_v43, %v3458_v6  ;;  %v7234_v43 = vld [vmem:[#allocation14 + $0xe0] ss:$8 sps:$4 sm:$0xff]  }
 0x649   : > { %v3513_v28 = vpack.c.bf16 %v3461_v51, %v3459_v49  ;;  %v3339_v57 = vpop.f32.mrb[184].mxu1  ;;  %4935 = vmatpush1.bf16.msra.mxu0 %v7204_v41 }
 0x64a   : > { %v3340_v10 = vadd.f32 %v3339_v57, %v8620_v58  ;;  %v3341_v1 = vpop.f32.mrb[185].mxu1  ;;  %4936 = vmatprep.subr.bf16.mxu0 %v7212_v46 }
 0x64b   : > { %v3342_v12 = vadd.f32 %v3341_v1, %v8623_v32  ;;  %v3343_v14 = vpop.f32.mrb[186].mxu1  ;;  %4023 = vmatprep.mubr.bf16.mxu0 %v3513_v28  ;;  %4216 = vmatprep.mubr.bf16.mxu1 %v3513_v28 }
 0x64c   : > { %v3344_v15 = vadd.f32 %v3343_v14, %v8620_v58  ;;  %v3345_v16 = vpop.f32.mrb[187].mxu1  ;;  %4024 = vmatmul.mubr.bf16.gmra.mrb[148].mxu0 %v3512_v56  ;;  %4217 = vmatmul.mubr.bf16.gmra.mrb[244].mxu1 %v3512_v56  ;;  %v3462_v53 = vmax.f32 %v3340_v10, 0.0 }
 0x64d   : > { %v3346_v45 = vadd.f32 %v3345_v16, %v8623_v32  ;;  %4937 = vmatpush1.bf16.msra.mxu0 %v7210_v59  ;;  %v3463_v18 = vmax.f32 %v3342_v12, 0.0 }
 0x64e   : > { %v3464_v37 = vmax.f32 %v3344_v15, 0.0  ;;  %4938 = vmatprep.subr.bf16.mxu0 %v7218_v9 }
 0x64f   : > { %v3465_v61 = vmax.f32 %v3346_v45, 0.0 }
 0x650   : > { %v3514_v60 = vpack.c.bf16 %v3464_v37, %v3462_v53 }
 0x651   : > { %v3515_v40 = vpack.c.bf16 %v3465_v61, %v3463_v18  ;;  %v3349_v39 = vpop.f32.mrb[188].mxu1  ;;  %4939 = vmatpush1.bf16.msra.mxu0 %v7216_v21 }
 0x652   : > { %v3350_v35 = vadd.f32 %v3349_v39, %v8620_v58  ;;  %v3351_v23 = vpop.f32.mrb[189].mxu1  ;;  %4940 = vmatprep.subr.bf16.mxu0 %v7224_v13 }
 0x653   : > { %v3352_v52 = vadd.f32 %v3351_v23, %v8623_v32  ;;  %v3353_v17 = vpop.f32.mrb[190].mxu1  ;;  %4033 = vmatprep.mubr.bf16.mxu0 %v3515_v40  ;;  %4226 = vmatprep.mubr.bf16.mxu1 %v3515_v40 }
 0x654   : > { %v3354_v22 = vadd.f32 %v3353_v17, %v8620_v58  ;;  %v3355_v24 = vpop.f32.mrb[191].mxu1  ;;  %4034 = vmatmul.mubr.bf16.gmra.mrb[152].mxu0 %v3514_v60  ;;  %4227 = vmatmul.mubr.bf16.gmra.mrb[248].mxu1 %v3514_v60  ;;  %v3466_v27 = vmax.f32 %v3350_v35, 0.0 }
 0x655   : > { %v3356_v50 = vadd.f32 %v3355_v24, %v8623_v32  ;;  %4941 = vmatpush1.bf16.msra.mxu0 %v7222_v30  ;;  %v3467_v4 = vmax.f32 %v3352_v52, 0.0 }
 0x656   : > { %v3468_v29 = vmax.f32 %v3354_v22, 0.0  ;;  %4942 = vmatprep.subr.bf16.mxu0 %v7230_v48 }
 0x657   : > { %v3469_v34 = vmax.f32 %v3356_v50, 0.0 }
 0x658   : > { %v3516_v38 = vpack.c.bf16 %v3468_v29, %v3466_v27 }
 0x659   : > { %v3517_v41 = vpack.c.bf16 %v3469_v34, %v3467_v4  ;;  %v3359_v6 = vpop.f32.mrb[192].mxu1  ;;  %4943 = vmatpush1.bf16.msra.mxu0 %v7228_v7 }
 0x65a   : > { %v3360_v46 = vadd.f32 %v3359_v6, %v8620_v58  ;;  %v3361_v49 = vpop.f32.mrb[193].mxu1  ;;  %4944 = vmatprep.subr.bf16.mxu0 %v7236_v31 }
 0x65b   : > { %v3362_v51 = vadd.f32 %v3361_v49, %v8623_v32  ;;  %v3363_v56 = vpop.f32.mrb[194].mxu1  ;;  %4043 = vmatprep.mubr.bf16.mxu0 %v3517_v41  ;;  %4236 = vmatprep.mubr.bf16.mxu1 %v3517_v41 }
 0x65c   : > { %v3364_v28 = vadd.f32 %v3363_v56, %v8620_v58  ;;  %v3365_v57 = vpop.f32.mrb[195].mxu1  ;;  %4044 = vmatmul.mubr.bf16.gmra.mrb[156].mxu0 %v3516_v38  ;;  %4237 = vmatmul.mubr.bf16.gmra.mrb[252].mxu1 %v3516_v38  ;;  %v3470_v10 = vmax.f32 %v3360_v46, 0.0 }
 0x65d   : > { %v3366_v59 = vadd.f32 %v3365_v57, %v8623_v32  ;;  %4945 = vmatpush1.bf16.msra.mxu0 %v7234_v43  ;;  %v3471_v9 = vmax.f32 %v3362_v51, 0.0 }
 0x65e   : > { %v3472_v1 = vmax.f32 %v3364_v28, 0.0 }
 0x65f   : > { %v3473_v12 = vmax.f32 %v3366_v59, 0.0 }
 0x660   : > { %v3518_v14 = vpack.c.bf16 %v3472_v1, %v3470_v10 }
 0x661   : > { %v3519_v15 = vpack.c.bf16 %v3473_v12, %v3471_v9  ;;  %v3369_v16 = vpop.f32.mrb[196].mxu1 }
 0x662   : > { %v3370_v45 = vadd.f32 %v3369_v16, %v8620_v58  ;;  %v3371_v21 = vpop.f32.mrb[197].mxu1 }
 0x663   : > { %v3372_v53 = vadd.f32 %v3371_v21, %v8623_v32  ;;  %v3373_v37 = vpop.f32.mrb[198].mxu1  ;;  %4053 = vmatprep.mubr.bf16.mxu0 %v3519_v15  ;;  %4246 = vmatprep.mubr.bf16.mxu1 %v3519_v15 }
 0x664   : > { %v3374_v13 = vadd.f32 %v3373_v37, %v8620_v58  ;;  %v3375_v18 = vpop.f32.mrb[199].mxu1  ;;  %4054 = vmatmul.mubr.bf16.gmra.mrb[160].mxu0 %v3518_v14  ;;  %4247 = vmatmul.mubr.bf16.gmra.mrb[0].mxu1 %v3518_v14  ;;  %v3474_v60 = vmax.f32 %v3370_v45, 0.0 }
 0x665   : > { %v3376_v61 = vadd.f32 %v3375_v18, %v8623_v32  ;;  %v3475_v39 = vmax.f32 %v3372_v53, 0.0  ;;  %v7242_v18 = vld [vmem:[#allocation14 + $0xf4] ss:$8 sps:$4 sm:$0xff]  }
 0x666   : > { %v3476_v40 = vmax.f32 %v3374_v13, 0.0  ;;  %4946 = vmatprep.subr.bf16.mxu0 %v7242_v18 }
 0x667   : > { %v3477_v30 = vmax.f32 %v3376_v61, 0.0  ;;  %v8718_v61 = vld [vmem:[#allocation14 + $0x174] ss:$8 sps:$4 sm:$0xff]  }
 0x668   : > { %v3520_v35 = vpack.c.bf16 %v3476_v40, %v3474_v60  ;;  %v7240_v40 = vld [vmem:[#allocation14 + $0xf0] ss:$8 sps:$4 sm:$0xff]   ;;  %6373 = vmatprep.subr.bf16.mxu1 %v8718_v61 }
 0x669   : > { %v3521_v23 = vpack.c.bf16 %v3477_v30, %v3475_v39  ;;  %v3379_v48 = vpop.f32.mrb[200].mxu1  ;;  %v8721_v39 = vld [vmem:[#allocation14 + $0x170] ss:$8 sps:$4 sm:$0xff]   ;;  %4947 = vmatpush1.bf16.msra.mxu0 %v7240_v40  ;;  %v8757_v40 = vld [vmem:[#allocation14 + $0x1c4] ss:$8 sps:$4 sm:$0xff]  }
 0x66a   : > { %v3380_v52 = vadd.f32 %v3379_v48, %v8620_v58  ;;  %v3381_v17 = vpop.f32.mrb[201].mxu1  ;;  %6389 = vmatpush1.bf16.msra.mxu1 %v8721_v39  ;;  %5109 = vmatprep.subr.bf16.mxu0 %v8629_v55  ;;  %v8734_v55 = vld [vmem:[#allocation14 + $0x194] ss:$8 sps:$4 sm:$0xff]  }
 0x66b   : > { %v3382_v22 = vadd.f32 %v3381_v17, %v8623_v32  ;;  %v3383_v24 = vpop.f32.mrb[202].mxu1  ;;  %4063 = vmatprep.mubr.bf16.mxu0 %v3521_v23  ;;  %4256 = vmatprep.mubr.bf16.mxu1 %v3521_v23  ;;  %v8726_v17 = vld [vmem:[#allocation14 + $0x184] ss:$8 sps:$4 sm:$0xff]  }
 0x66c   : > { %v3384_v50 = vadd.f32 %v3383_v24, %v8620_v58  ;;  %v3385_v7 = vpop.f32.mrb[203].mxu1  ;;  %4064 = vmatmul.mubr.bf16.gmra.mrb[164].mxu0 %v3520_v35  ;;  %4257 = vmatmul.mubr.bf16.gmra.mrb[4].mxu1 %v3520_v35  ;;  %v3478_v29 = vmax.f32 %v3380_v52, 0.0 }
 0x66d   : > { %v3386_v27 = vadd.f32 %v3385_v7, %v8623_v32  ;;  %v3479_v4 = vmax.f32 %v3382_v22, 0.0  ;;  %6374 = vmatprep.subr.bf16.mxu1 %v8726_v17 }
 0x66e   : > { %v3480_v31 = vmax.f32 %v3384_v50, 0.0  ;;  %v8728_v50 = vld [vmem:[#allocation14 + $0x180] ss:$8 sps:$4 sm:$0xff]  }
 0x66f   : > { %v3481_v34 = vmax.f32 %v3386_v27, 0.0  ;;  %6390 = vmatpush1.bf16.msra.mxu1 %v8728_v50 }
 0x670   : > { %v3522_v38 = vpack.c.bf16 %v3480_v31, %v3478_v29  ;;  %6375 = vmatprep.subr.bf16.mxu1 %v8734_v55 }
 0x671   : > { %v3523_v41 = vpack.c.bf16 %v3481_v34, %v3479_v4  ;;  %v3389_v6 = vpop.f32.mrb[204].mxu1 }
 0x672   : > { %v3390_v43 = vadd.f32 %v3389_v6, %v8620_v58  ;;  %v3391_v46 = vpop.f32.mrb[205].mxu1 }
 0x673   : > { %v3392_v49 = vadd.f32 %v3391_v46, %v8623_v32  ;;  %v3393_v51 = vpop.f32.mrb[206].mxu1  ;;  %4073 = vmatprep.mubr.bf16.mxu0 %v3523_v41  ;;  %4266 = vmatprep.mubr.bf16.mxu1 %v3523_v41  ;;  %v8738_v41 = vld [vmem:[#allocation14 + $0x190] ss:$8 sps:$4 sm:$0xff]  }
 0x674   : > { %v3394_v56 = vadd.f32 %v3393_v51, %v8620_v58  ;;  %v3395_v28 = vpop.f32.mrb[207].mxu1  ;;  %4074 = vmatmul.mubr.bf16.gmra.mrb[168].mxu0 %v3522_v38  ;;  %4267 = vmatmul.mubr.bf16.gmra.mrb[8].mxu1 %v3522_v38  ;;  %v3482_v59 = vmax.f32 %v3390_v43, 0.0 }
 0x675   : > { %v3396_v57 = vadd.f32 %v3395_v28, %v8623_v32  ;;  %v3483_v1 = vmax.f32 %v3392_v49, 0.0  ;;  %6391 = vmatpush1.bf16.msra.mxu1 %v8738_v41 }
 0x676   : > { %v3484_v10 = vmax.f32 %v3394_v56, 0.0  ;;  %v8741_v56 = vld [vmem:[#allocation14 + $0x1a4] ss:$8 sps:$4 sm:$0xff]  }
 0x677   : > { %v3485_v9 = vmax.f32 %v3396_v57, 0.0  ;;  %6376 = vmatprep.subr.bf16.mxu1 %v8741_v56 }
 0x678   : > { %v3524_v12 = vpack.c.bf16 %v3484_v10, %v3482_v59  ;;  %v8744_v59 = vld [vmem:[#allocation14 + $0x1a0] ss:$8 sps:$4 sm:$0xff]  }
 0x679   : > { %v3525_v14 = vpack.c.bf16 %v3485_v9, %v3483_v1  ;;  %v3399_v15 = vpop.f32.mrb[208].mxu1  ;;  %6392 = vmatpush1.bf16.msra.mxu1 %v8744_v59 }
 0x67a   : > { %v3400_v16 = vadd.f32 %v3399_v15, %v8620_v58  ;;  %v3401_v45 = vpop.f32.mrb[209].mxu1 }
 0x67b   : > { %v3402_v21 = vadd.f32 %v3401_v45, %v8623_v32  ;;  %v3403_v53 = vpop.f32.mrb[210].mxu1  ;;  %4083 = vmatprep.mubr.bf16.mxu0 %v3525_v14  ;;  %4276 = vmatprep.mubr.bf16.mxu1 %v3525_v14 }
 0x67c   : > { %v3404_v37 = vadd.f32 %v3403_v53, %v8620_v58  ;;  %v3405_v13 = vpop.f32.mrb[211].mxu1  ;;  %4084 = vmatmul.mubr.bf16.gmra.mrb[172].mxu0 %v3524_v12  ;;  %4277 = vmatmul.mubr.bf16.gmra.mrb[12].mxu1 %v3524_v12  ;;  %v3486_v30 = vmax.f32 %v3400_v16, 0.0  ;;  %v8750_v16 = vld [vmem:[#allocation14 + $0x1b4] ss:$8 sps:$4 sm:$0xff]  }
 0x67d   : > { %v3406_v60 = vadd.f32 %v3405_v13, %v8623_v32  ;;  %v3487_v23 = vmax.f32 %v3402_v21, 0.0  ;;  %v8754_v21 = vld [vmem:[#allocation14 + $0x1b0] ss:$8 sps:$4 sm:$0xff]   ;;  %6377 = vmatprep.subr.bf16.mxu1 %v8750_v16 }
 0x67e   : > { %v3488_v35 = vmax.f32 %v3404_v37, 0.0  ;;  %6393 = vmatpush1.bf16.msra.mxu1 %v8754_v21 }
 0x67f   : > { %v3489_v48 = vmax.f32 %v3406_v60, 0.0  ;;  %6378 = vmatprep.subr.bf16.mxu1 %v8757_v40 }
 0x680   : > { %v3526_v52 = vpack.c.bf16 %v3488_v35, %v3486_v30 }
 0x681   : > { %v3527_v22 = vpack.c.bf16 %v3489_v48, %v3487_v23  ;;  %v3409_v24 = vpop.f32.mrb[212].mxu1  ;;  %v8760_v23 = vld [vmem:[#allocation14 + $0x1c0] ss:$8 sps:$4 sm:$0xff]  }
 0x682   : > { %v3410_v7 = vadd.f32 %v3409_v24, %v8620_v58  ;;  %v3411_v27 = vpop.f32.mrb[213].mxu1  ;;  %6394 = vmatpush1.bf16.msra.mxu1 %v8760_v23 }
 0x683   : > { %v3412_v29 = vadd.f32 %v3411_v27, %v8623_v32  ;;  %v3413_v31 = vpop.f32.mrb[214].mxu1  ;;  %4093 = vmatprep.mubr.bf16.mxu0 %v3527_v22  ;;  %4286 = vmatprep.mubr.bf16.mxu1 %v3527_v22 }
 0x684   : > { %v3414_v4 = vadd.f32 %v3413_v31, %v8620_v58  ;;  %v3415_v34 = vpop.f32.mrb[215].mxu1  ;;  %4094 = vmatmul.mubr.bf16.gmra.mrb[176].mxu0 %v3526_v52  ;;  %4287 = vmatmul.mubr.bf16.gmra.mrb[16].mxu1 %v3526_v52  ;;  %v3490_v6 = vmax.f32 %v3410_v7, 0.0 }
 0x685   : > { %v3416_v38 = vadd.f32 %v3415_v34, %v8623_v32  ;;  %v3491_v46 = vmax.f32 %v3412_v29, 0.0  ;;  %v8766_v29 = vld [vmem:[#allocation14 + $0x1d4] ss:$8 sps:$4 sm:$0xff]  }
 0x686   : > { %v3492_v43 = vmax.f32 %v3414_v4, 0.0  ;;  %v8770_v4 = vld [vmem:[#allocation14 + $0x1d0] ss:$8 sps:$4 sm:$0xff]   ;;  %6379 = vmatprep.subr.bf16.mxu1 %v8766_v29 }
 0x687   : > { %v3493_v49 = vmax.f32 %v3416_v38, 0.0  ;;  %6395 = vmatpush1.bf16.msra.mxu1 %v8770_v4 }
 0x688   : > { %v3528_v51 = vpack.c.bf16 %v3492_v43, %v3490_v6 }
 0x689   : > { %v3529_v28 = vpack.c.bf16 %v3493_v49, %v3491_v46  ;;  %v3419_v57 = vpop.f32.mrb[216].mxu1  ;;  %v8773_v49 = vld [vmem:[#allocation14 + $0x1e4] ss:$8 sps:$4 sm:$0xff]  }
 0x68a   : > { %v3420_v10 = vadd.f32 %v3419_v57, %v8620_v58  ;;  %v3421_v1 = vpop.f32.mrb[217].mxu1  ;;  %6380 = vmatprep.subr.bf16.mxu1 %v8773_v49  ;;  %v3599_v57 = vld [vmem:[#allocation16 + $0x5] ss:$8 sm:$0xf] }
 0x68b   : > { %v3422_v9 = vadd.f32 %v3421_v1, %v8623_v32  ;;  %v3423_v12 = vpop.f32.mrb[218].mxu1  ;;  %4103 = vmatprep.mubr.bf16.mxu0 %v3529_v28  ;;  %4296 = vmatprep.mubr.bf16.mxu1 %v3529_v28  ;;  %v8782_v28 = vld [vmem:[#allocation14 + $0x1f0] ss:$8 sps:$4 sm:$0xff]   ;;  %v8791_v1 = vrot.slane %v3599_v57, %v577_v63 }
 0x68c   : > { %v3424_v14 = vadd.f32 %v3423_v12, %v8620_v58  ;;  %v3425_v15 = vpop.f32.mrb[219].mxu1  ;;  %4104 = vmatmul.mubr.bf16.gmra.mrb[180].mxu0 %v3528_v51  ;;  %4297 = vmatmul.mubr.bf16.gmra.mrb[20].mxu1 %v3528_v51  ;;  %v3494_v53 = vmax.f32 %v3420_v10, 0.0  ;;  %v8776_v51 = vld [vmem:[#allocation14 + $0x1e0] ss:$8 sps:$4 sm:$0xff]   ;;  %v8787_v10 = vrot.slane %v3599_v57, %v8229_v3  ;;  %v8798_v12 = vrot.slane %v3599_v57, %v581_v8 }
 0x68d   : > { %v3426_v45 = vadd.f32 %v3425_v15, %v8623_v32  ;;  %v3495_v13 = vmax.f32 %v3422_v9, 0.0  ;;  %6396 = vmatpush1.bf16.msra.mxu1 %v8776_v51  ;;  %v8794_v9 = vrot.slane %v3599_v57, %v8234_v5 }
 0x68e   : > { %v3496_v37 = vmax.f32 %v3424_v14, 0.0 }
 0x68f   : > { %v3497_v18 = vmax.f32 %v3426_v45, 0.0 }
 0x690   : > { %v3530_v60 = vpack.c.bf16 %v3496_v37, %v3494_v53 }
 0x691   : > { %v3531_v30 = vpack.c.bf16 %v3497_v18, %v3495_v13  ;;  %v3429_v35 = vpop.f32.mrb[220].mxu1 }
 0x692   : > { %v3430_v48 = vadd.f32 %v3429_v35, %v8620_v58  ;;  %v3431_v52 = vpop.f32.mrb[221].mxu1 }
 0x693   : > { %v3432_v22 = vadd.f32 %v3431_v52, %v8623_v32  ;;  %v3433_v24 = vpop.f32.mrb[222].mxu1  ;;  %4113 = vmatprep.mubr.bf16.mxu0 %v3531_v30  ;;  %4306 = vmatprep.mubr.bf16.mxu1 %v3531_v30 }
 0x694   : > { %v3434_v7 = vadd.f32 %v3433_v24, %v8620_v58  ;;  %v3435_v27 = vpop.f32.mrb[223].mxu1  ;;  %4114 = vmatmul.mubr.bf16.gmra.mrb[184].mxu0 %v3530_v60  ;;  %4307 = vmatmul.mubr.bf16.gmra.mrb[24].mxu1 %v3530_v60  ;;  %v3498_v34 = vmax.f32 %v3430_v48, 0.0 }
 0x695   : > { %v3436_v31 = vadd.f32 %v3435_v27, %v8623_v32  ;;  %v3499_v6 = vmax.f32 %v3432_v22, 0.0  ;;  %v8779_v32 = vld [vmem:[#allocation14 + $0x1f4] ss:$8 sps:$4 sm:$0xff]  }
 0x696   : > { %v3500_v38 = vmax.f32 %v3434_v7, 0.0  ;;  %6381 = vmatprep.subr.bf16.mxu1 %v8779_v32 }
 0x697   : > { %v3501_v43 = vmax.f32 %v3436_v31, 0.0  ;;  %6397 = vmatpush1.bf16.msra.mxu1 %v8782_v28 }
 0x698   : > { %v3532_v46 = vpack.c.bf16 %v3500_v38, %v3498_v34 }
 0x699   : > { %v3533_v58 = vpack.c.bf16 %v3501_v43, %v3499_v6 }
 0x69b   : > { %4123 = vmatprep.mubr.bf16.mxu0 %v3533_v58  ;;  %4316 = vmatprep.mubr.bf16.mxu1 %v3533_v58 }
 0x69c   : > { %4124 = vmatmul.mubr.bf16.gmra.mrb[188].mxu0 %v3532_v46  ;;  %4317 = vmatmul.mubr.bf16.gmra.mrb[28].mxu1 %v3532_v46 }
 0x6f7   : > { %v3975_v14 = vpop.f32.mrb[128].mxu0  ;;  %v4168_v15 = vpop.f32.mrb[224].mxu1 }
 0x6f8   : > { %v3976_v45 = vadd.f32 %v3975_v14, %v8787_v10  ;;  %v4169_v53 = vadd.f32 %v4168_v15, %v8791_v1  ;;  %v3977_v37 = vpop.f32.mrb[129].mxu0  ;;  %v4170_v13 = vpop.f32.mrb[225].mxu1 }
 0x6f9   : > { %v3978_v18 = vadd.f32 %v3977_v37, %v8794_v9  ;;  %v4171_v63 = vadd.f32 %v4170_v13, %v8798_v12  ;;  %v3979_v60 = vpop.f32.mrb[130].mxu0  ;;  %v4172_v30 = vpop.f32.mrb[226].mxu1 }
 0x6fa   : > { %v3980_v35 = vadd.f32 %v3979_v60, %v8787_v10  ;;  %v4173_v2 = vadd.f32 %v4172_v30, %v8791_v1  ;;  %v3981_v8 = vpop.f32.mrb[131].mxu0  ;;  %v4174_v48 = vpop.f32.mrb[227].mxu1  ;;  %v4327_v24 = vmax.f32 %v3976_v45, 0.0  ;;  %v4329_v7 = vmax.f32 %v4169_v53, 0.0 }
 0x6fb   : > { %v3982_v52 = vadd.f32 %v3981_v8, %v8794_v9  ;;  %v4175_v22 = vadd.f32 %v4174_v48, %v8798_v12  ;;  %v4328_v34 = vmax.f32 %v3978_v18, 0.0  ;;  %v4330_v38 = vmax.f32 %v4171_v63, 0.0 }
 0x6fc   : > { %v4331_v27 = vmax.f32 %v3980_v35, 0.0  ;;  %v4333_v31 = vmax.f32 %v4173_v2, 0.0 }
 0x6fd   : > { %v4332_v6 = vmax.f32 %v3982_v52, 0.0  ;;  %v4334_v43 = vmax.f32 %v4175_v22, 0.0 }
 0x6fe   : > { %v4455_v46 = vpack.c.bf16 %v4331_v27, %v4327_v24  ;;  %v8808_v58 = vpack.c.bf16 %v4333_v31, %v4329_v7 }
 0x6ff   : > { %v4456_v57 = vpack.c.bf16 %v4332_v6, %v4328_v34  ;;  %v8810_v14 = vpack.c.bf16 %v4334_v43, %v4330_v38  ;;  %v3985_v15 = vpop.f32.mrb[132].mxu0  ;;  %v4178_v37 = vpop.f32.mrb[228].mxu1 }
 0x700   : > { %v3986_v13 = vadd.f32 %v3985_v15, %v8787_v10  ;;  %v4179_v60 = vadd.f32 %v4178_v37, %v8791_v1  ;;  %v3987_v45 = vpop.f32.mrb[133].mxu0  ;;  %v4180_v53 = vpop.f32.mrb[229].mxu1 }
 0x701   : > { %v3988_v30 = vadd.f32 %v3987_v45, %v8794_v9  ;;  %v4181_v18 = vadd.f32 %v4180_v53, %v8798_v12  ;;  %v3989_v63 = vpop.f32.mrb[134].mxu0  ;;  %v4182_v35 = vpop.f32.mrb[230].mxu1  ;;  %4948 = vmatprep.mubr.bf16.mxu0 %v4456_v57 }
 0x702   : > { %v3990_v2 = vadd.f32 %v3989_v63, %v8787_v10  ;;  %v4183_v8 = vadd.f32 %v4182_v35, %v8791_v1  ;;  %v3991_v48 = vpop.f32.mrb[135].mxu0  ;;  %v4184_v52 = vpop.f32.mrb[231].mxu1  ;;  %4949 = vmatmul.mubr.bf16.vlgmr.msra.gmra.mrb[192].mxu0 %v4455_v46  ;;  %v4335_v7 = vmax.f32 %v3986_v13, 0.0  ;;  %v4337_v27 = vmax.f32 %v4179_v60, 0.0 }
 0x703   : > { %v3992_v22 = vadd.f32 %v3991_v48, %v8794_v9  ;;  %v4185_v24 = vadd.f32 %v4184_v52, %v8798_v12  ;;  %5110 = vmatpush1.bf16.msra.mxu0 %v8632_v0  ;;  %v4336_v38 = vmax.f32 %v3988_v30, 0.0  ;;  %v4338_v6 = vmax.f32 %v4181_v18, 0.0 }
 0x704   : > { %v4339_v31 = vmax.f32 %v3990_v2, 0.0  ;;  %v4341_v34 = vmax.f32 %v4183_v8, 0.0  ;;  %5111 = vmatprep.subr.bf16.mxu0 %v8635_v11 }
 0x705   : > { %v4340_v43 = vmax.f32 %v3992_v22, 0.0  ;;  %v4342_v57 = vmax.f32 %v4185_v24, 0.0 }
 0x706   : > { %v4459_v15 = vpack.c.bf16 %v4339_v31, %v4335_v7  ;;  %v8822_v37 = vpack.c.bf16 %v4341_v34, %v4337_v27 }
 0x707   : > { %v4460_v46 = vpack.c.bf16 %v4340_v43, %v4336_v38  ;;  %v8824_v45 = vpack.c.bf16 %v4342_v57, %v4338_v6  ;;  %v3995_v53 = vpop.f32.mrb[136].mxu0  ;;  %v4188_v63 = vpop.f32.mrb[232].mxu1  ;;  %5112 = vmatpush1.bf16.msra.mxu0 %v8641_v25 }
 0x708   : > { %v3996_v0 = vadd.f32 %v3995_v53, %v8787_v10  ;;  %v4189_v13 = vadd.f32 %v4188_v63, %v8791_v1  ;;  %v3997_v60 = vpop.f32.mrb[137].mxu0  ;;  %v4190_v11 = vpop.f32.mrb[233].mxu1  ;;  %5113 = vmatprep.subr.bf16.mxu0 %v8644_v54 }
 0x709   : > { %v3998_v30 = vadd.f32 %v3997_v60, %v8794_v9  ;;  %v4191_v18 = vadd.f32 %v4190_v11, %v8798_v12  ;;  %v3999_v35 = vpop.f32.mrb[138].mxu0  ;;  %v4192_v2 = vpop.f32.mrb[234].mxu1  ;;  %4958 = vmatprep.mubr.bf16.mxu0 %v4460_v46 }
 0x70a   : > { %v4000_v8 = vadd.f32 %v3999_v35, %v8787_v10  ;;  %v4193_v48 = vadd.f32 %v4192_v2, %v8791_v1  ;;  %v4001_v25 = vpop.f32.mrb[139].mxu0  ;;  %v4194_v52 = vpop.f32.mrb[235].mxu1  ;;  %4959 = vmatmul.mubr.bf16.gmra.mrb[196].mxu0 %v4459_v15  ;;  %v4343_v54 = vmax.f32 %v3996_v0, 0.0  ;;  %v4345_v7 = vmax.f32 %v4189_v13, 0.0 }
 0x70b   : > { %v4002_v22 = vadd.f32 %v4001_v25, %v8794_v9  ;;  %v4195_v24 = vadd.f32 %v4194_v52, %v8798_v12  ;;  %5114 = vmatpush1.bf16.msra.mxu0 %v8648_v44  ;;  %v4344_v34 = vmax.f32 %v3998_v30, 0.0  ;;  %v4346_v38 = vmax.f32 %v4191_v18, 0.0 }
 0x70c   : > { %v4347_v27 = vmax.f32 %v4000_v8, 0.0  ;;  %v4349_v31 = vmax.f32 %v4193_v48, 0.0  ;;  %5115 = vmatprep.subr.bf16.mxu0 %v8651_v20 }
 0x70d   : > { %v4348_v6 = vmax.f32 %v4002_v22, 0.0  ;;  %v4350_v43 = vmax.f32 %v4195_v24, 0.0 }
 0x70e   : > { %v4463_v57 = vpack.c.bf16 %v4347_v27, %v4343_v54  ;;  %v8838_v46 = vpack.c.bf16 %v4349_v31, %v4345_v7 }
 0x70f   : > { %v4464_v15 = vpack.c.bf16 %v4348_v6, %v4344_v34  ;;  %v8840_v53 = vpack.c.bf16 %v4350_v43, %v4346_v38  ;;  %v4005_v63 = vpop.f32.mrb[140].mxu0  ;;  %v4198_v60 = vpop.f32.mrb[236].mxu1  ;;  %5116 = vmatpush1.bf16.msra.mxu0 %v8657_v26 }
 0x710   : > { %v4006_v44 = vadd.f32 %v4005_v63, %v8787_v10  ;;  %v4199_v0 = vadd.f32 %v4198_v60, %v8791_v1  ;;  %v4007_v13 = vpop.f32.mrb[141].mxu0  ;;  %v4200_v20 = vpop.f32.mrb[237].mxu1  ;;  %5117 = vmatprep.subr.bf16.mxu0 %v8660_v36 }
 0x711   : > { %v4008_v11 = vadd.f32 %v4007_v13, %v8794_v9  ;;  %v4201_v30 = vadd.f32 %v4200_v20, %v8798_v12  ;;  %v4009_v18 = vpop.f32.mrb[142].mxu0  ;;  %v4202_v35 = vpop.f32.mrb[238].mxu1  ;;  %4968 = vmatprep.mubr.bf16.mxu0 %v4464_v15 }
 0x712   : > { %v4010_v2 = vadd.f32 %v4009_v18, %v8787_v10  ;;  %v4203_v8 = vadd.f32 %v4202_v35, %v8791_v1  ;;  %v4011_v26 = vpop.f32.mrb[143].mxu0  ;;  %v4204_v48 = vpop.f32.mrb[239].mxu1  ;;  %4969 = vmatmul.mubr.bf16.gmra.mrb[200].mxu0 %v4463_v57  ;;  %v4351_v36 = vmax.f32 %v4006_v44, 0.0  ;;  %v4353_v22 = vmax.f32 %v4199_v0, 0.0 }
 0x713   : > { %v4012_v25 = vadd.f32 %v4011_v26, %v8794_v9  ;;  %v4205_v52 = vadd.f32 %v4204_v48, %v8798_v12  ;;  %5118 = vmatpush1.bf16.msra.mxu0 %v8664_v42  ;;  %v4352_v7 = vmax.f32 %v4008_v11, 0.0  ;;  %v4354_v27 = vmax.f32 %v4201_v30, 0.0 }
 0x714   : > { %v4355_v24 = vmax.f32 %v4010_v2, 0.0  ;;  %v4357_v54 = vmax.f32 %v4203_v8, 0.0  ;;  %5119 = vmatprep.subr.bf16.mxu0 %v8667_v47 }
 0x715   : > { %v4356_v31 = vmax.f32 %v4012_v25, 0.0  ;;  %v4358_v34 = vmax.f32 %v4205_v52, 0.0 }
 0x716   : > { %v4467_v38 = vpack.c.bf16 %v4355_v24, %v4351_v36  ;;  %v8854_v6 = vpack.c.bf16 %v4357_v54, %v4353_v22 }
 0x717   : > { %v4468_v43 = vpack.c.bf16 %v4356_v31, %v4352_v7  ;;  %v8856_v57 = vpack.c.bf16 %v4358_v34, %v4354_v27  ;;  %v4015_v15 = vpop.f32.mrb[144].mxu0  ;;  %v4208_v63 = vpop.f32.mrb[240].mxu1  ;;  %5120 = vmatpush1.bf16.msra.mxu0 %v8673_v62 }
 0x718   : > { %v4016_v42 = vadd.f32 %v4015_v15, %v8787_v10  ;;  %v4209_v60 = vadd.f32 %v4208_v63, %v8791_v1  ;;  %v4017_v44 = vpop.f32.mrb[145].mxu0  ;;  %v4210_v47 = vpop.f32.mrb[241].mxu1  ;;  %5121 = vmatprep.subr.bf16.mxu0 %v8676_v19 }
 0x719   : > { %v4018_v0 = vadd.f32 %v4017_v44, %v8794_v9  ;;  %v4211_v13 = vadd.f32 %v4210_v47, %v8798_v12  ;;  %v4019_v20 = vpop.f32.mrb[146].mxu0  ;;  %v4212_v11 = vpop.f32.mrb[242].mxu1  ;;  %4978 = vmatprep.mubr.bf16.mxu0 %v4468_v43 }
 0x71a   : > { %v4020_v30 = vadd.f32 %v4019_v20, %v8787_v10  ;;  %v4213_v18 = vadd.f32 %v4212_v11, %v8791_v1  ;;  %v4021_v62 = vpop.f32.mrb[147].mxu0  ;;  %v4214_v35 = vpop.f32.mrb[243].mxu1  ;;  %4979 = vmatmul.mubr.bf16.gmra.mrb[204].mxu0 %v4467_v38  ;;  %v4359_v19 = vmax.f32 %v4016_v42, 0.0  ;;  %v4361_v26 = vmax.f32 %v4209_v60, 0.0 }
 0x71b   : > { %v4022_v2 = vadd.f32 %v4021_v62, %v8794_v9  ;;  %v4215_v8 = vadd.f32 %v4214_v35, %v8798_v12  ;;  %5122 = vmatpush1.bf16.msra.mxu0 %v8680_v33  ;;  %v4360_v52 = vmax.f32 %v4018_v0, 0.0  ;;  %v4362_v36 = vmax.f32 %v4211_v13, 0.0 }
 0x71c   : > { %v4363_v48 = vmax.f32 %v4020_v30, 0.0  ;;  %v4365_v25 = vmax.f32 %v4213_v18, 0.0  ;;  %5123 = vmatprep.subr.bf16.mxu0 %v8718_v61 }
 0x71d   : > { %v4364_v22 = vmax.f32 %v4022_v2, 0.0  ;;  %v4366_v24 = vmax.f32 %v4215_v8, 0.0 }
 0x71e   : > { %v4471_v54 = vpack.c.bf16 %v4363_v48, %v4359_v19  ;;  %v4473_v7 = vpack.c.bf16 %v4365_v25, %v4361_v26 }
 0x71f   : > { %v4472_v27 = vpack.c.bf16 %v4364_v22, %v4360_v52  ;;  %v4474_v31 = vpack.c.bf16 %v4366_v24, %v4362_v36  ;;  %v4025_v34 = vpop.f32.mrb[148].mxu0  ;;  %v4218_v38 = vpop.f32.mrb[244].mxu1  ;;  %5124 = vmatpush1.bf16.msra.mxu0 %v8721_v39 }
 0x720   : > { %v4026_v33 = vadd.f32 %v4025_v34, %v8787_v10  ;;  %v4219_v43 = vadd.f32 %v4218_v38, %v8791_v1  ;;  %v4027_v15 = vpop.f32.mrb[149].mxu0  ;;  %v4220_v63 = vpop.f32.mrb[245].mxu1  ;;  %5125 = vmatprep.subr.bf16.mxu0 %v8726_v17 }
 0x721   : > { %v4028_v61 = vadd.f32 %v4027_v15, %v8794_v9  ;;  %v4221_v42 = vadd.f32 %v4220_v63, %v8798_v12  ;;  %v4029_v60 = vpop.f32.mrb[150].mxu0  ;;  %v4222_v44 = vpop.f32.mrb[246].mxu1  ;;  %4988 = vmatprep.mubr.bf16.mxu0 %v4472_v27  ;;  %5181 = vmatprep.mubr.bf16.mxu1 %v4474_v31 }
 0x722   : > { %v4030_v47 = vadd.f32 %v4029_v60, %v8787_v10  ;;  %v4223_v39 = vadd.f32 %v4222_v44, %v8791_v1  ;;  %v4031_v0 = vpop.f32.mrb[151].mxu0  ;;  %v4224_v13 = vpop.f32.mrb[247].mxu1  ;;  %4989 = vmatmul.mubr.bf16.gmra.mrb[208].mxu0 %v4471_v54  ;;  %5182 = vmatmul.mubr.bf16.vlgmr.msra.gmra.mrb[32].mxu1 %v4473_v7  ;;  %v4367_v11 = vmax.f32 %v4026_v33, 0.0  ;;  %v4369_v30 = vmax.f32 %v4219_v43, 0.0 }
 0x723   : > { %v4032_v20 = vadd.f32 %v4031_v0, %v8794_v9  ;;  %v4225_v17 = vadd.f32 %v4224_v13, %v8798_v12  ;;  %5126 = vmatpush1.bf16.msra.mxu0 %v8728_v50  ;;  %v4368_v35 = vmax.f32 %v4028_v61, 0.0  ;;  %v4370_v2 = vmax.f32 %v4221_v42, 0.0 }
 0x724   : > { %v4371_v18 = vmax.f32 %v4030_v47, 0.0  ;;  %v4373_v62 = vmax.f32 %v4223_v39, 0.0  ;;  %5127 = vmatprep.subr.bf16.mxu0 %v8734_v55 }
 0x725   : > { %v4372_v8 = vmax.f32 %v4032_v20, 0.0  ;;  %v4374_v19 = vmax.f32 %v4225_v17, 0.0 }
 0x726   : > { %v4475_v26 = vpack.c.bf16 %v4371_v18, %v4367_v11  ;;  %v4477_v48 = vpack.c.bf16 %v4373_v62, %v4369_v30 }
 0x727   : > { %v4476_v25 = vpack.c.bf16 %v4372_v8, %v4368_v35  ;;  %v4478_v52 = vpack.c.bf16 %v4374_v19, %v4370_v2  ;;  %v4035_v36 = vpop.f32.mrb[152].mxu0  ;;  %v4228_v22 = vpop.f32.mrb[248].mxu1  ;;  %5128 = vmatpush1.bf16.msra.mxu0 %v8738_v41 }
 0x728   : > { %v4036_v50 = vadd.f32 %v4035_v36, %v8787_v10  ;;  %v4229_v24 = vadd.f32 %v4228_v22, %v8791_v1  ;;  %v4037_v54 = vpop.f32.mrb[153].mxu0  ;;  %v4230_v7 = vpop.f32.mrb[249].mxu1  ;;  %5129 = vmatprep.subr.bf16.mxu0 %v8741_v56 }
 0x729   : > { %v4038_v55 = vadd.f32 %v4037_v54, %v8794_v9  ;;  %v4231_v27 = vadd.f32 %v4230_v7, %v8798_v12  ;;  %v4039_v31 = vpop.f32.mrb[154].mxu0  ;;  %v4232_v34 = vpop.f32.mrb[250].mxu1  ;;  %4998 = vmatprep.mubr.bf16.mxu0 %v4476_v25  ;;  %5191 = vmatprep.mubr.bf16.mxu1 %v4478_v52 }
 0x72a   : > { %v4040_v38 = vadd.f32 %v4039_v31, %v8787_v10  ;;  %v4233_v41 = vadd.f32 %v4232_v34, %v8791_v1  ;;  %v4041_v33 = vpop.f32.mrb[155].mxu0  ;;  %v4234_v43 = vpop.f32.mrb[251].mxu1  ;;  %4999 = vmatmul.mubr.bf16.gmra.mrb[212].mxu0 %v4475_v26  ;;  %5192 = vmatmul.mubr.bf16.gmra.mrb[36].mxu1 %v4477_v48  ;;  %v4375_v63 = vmax.f32 %v4036_v50, 0.0  ;;  %v4377_v61 = vmax.f32 %v4229_v24, 0.0 }
 0x72b   : > { %v4042_v15 = vadd.f32 %v4041_v33, %v8794_v9  ;;  %v4235_v56 = vadd.f32 %v4234_v43, %v8798_v12  ;;  %5130 = vmatpush1.bf16.msra.mxu0 %v8744_v59  ;;  %v4376_v44 = vmax.f32 %v4038_v55, 0.0  ;;  %v4378_v47 = vmax.f32 %v4231_v27, 0.0 }
 0x72c   : > { %v4379_v42 = vmax.f32 %v4040_v38, 0.0  ;;  %v4381_v60 = vmax.f32 %v4233_v41, 0.0  ;;  %5131 = vmatprep.subr.bf16.mxu0 %v8750_v16 }
 0x72d   : > { %v4380_v39 = vmax.f32 %v4042_v15, 0.0  ;;  %v4382_v0 = vmax.f32 %v4235_v56, 0.0 }
 0x72e   : > { %v4479_v13 = vpack.c.bf16 %v4379_v42, %v4375_v63  ;;  %v4481_v20 = vpack.c.bf16 %v4381_v60, %v4377_v61 }
 0x72f   : > { %v4480_v17 = vpack.c.bf16 %v4380_v39, %v4376_v44  ;;  %v4482_v11 = vpack.c.bf16 %v4382_v0, %v4378_v47  ;;  %v4045_v30 = vpop.f32.mrb[156].mxu0  ;;  %v4238_v18 = vpop.f32.mrb[252].mxu1  ;;  %5132 = vmatpush1.bf16.msra.mxu0 %v8754_v21 }
 0x730   : > { %v4046_v59 = vadd.f32 %v4045_v30, %v8787_v10  ;;  %v4239_v62 = vadd.f32 %v4238_v18, %v8791_v1  ;;  %v4047_v35 = vpop.f32.mrb[157].mxu0  ;;  %v4240_v2 = vpop.f32.mrb[253].mxu1  ;;  %5133 = vmatprep.subr.bf16.mxu0 %v8757_v40 }
 0x731   : > { %v4048_v16 = vadd.f32 %v4047_v35, %v8794_v9  ;;  %v4241_v8 = vadd.f32 %v4240_v2, %v8798_v12  ;;  %v4049_v19 = vpop.f32.mrb[158].mxu0  ;;  %v4242_v26 = vpop.f32.mrb[254].mxu1  ;;  %5008 = vmatprep.mubr.bf16.mxu0 %v4480_v17  ;;  %5201 = vmatprep.mubr.bf16.mxu1 %v4482_v11 }
 0x732   : > { %v4050_v48 = vadd.f32 %v4049_v19, %v8787_v10  ;;  %v4243_v21 = vadd.f32 %v4242_v26, %v8791_v1  ;;  %v4051_v25 = vpop.f32.mrb[159].mxu0  ;;  %v4244_v52 = vpop.f32.mrb[255].mxu1  ;;  %5009 = vmatmul.mubr.bf16.gmra.mrb[216].mxu0 %v4479_v13  ;;  %5202 = vmatmul.mubr.bf16.gmra.mrb[40].mxu1 %v4481_v20  ;;  %v4383_v22 = vmax.f32 %v4046_v59, 0.0  ;;  %v4385_v50 = vmax.f32 %v4239_v62, 0.0 }
 0x733   : > { %v4052_v36 = vadd.f32 %v4051_v25, %v8794_v9  ;;  %v4245_v40 = vadd.f32 %v4244_v52, %v8798_v12  ;;  %5134 = vmatpush1.bf16.msra.mxu0 %v8760_v23  ;;  %v4384_v7 = vmax.f32 %v4048_v16, 0.0  ;;  %v4386_v55 = vmax.f32 %v4241_v8, 0.0 }
 0x734   : > { %v4387_v24 = vmax.f32 %v4050_v48, 0.0  ;;  %v4389_v54 = vmax.f32 %v4243_v21, 0.0  ;;  %5135 = vmatprep.subr.bf16.mxu0 %v8766_v29 }
 0x735   : > { %v4388_v27 = vmax.f32 %v4052_v36, 0.0  ;;  %v4390_v31 = vmax.f32 %v4245_v40, 0.0 }
 0x736   : > { %v4483_v34 = vpack.c.bf16 %v4387_v24, %v4383_v22  ;;  %v4485_v38 = vpack.c.bf16 %v4389_v54, %v4385_v50 }
 0x737   : > { %v4484_v41 = vpack.c.bf16 %v4388_v27, %v4384_v7  ;;  %v4486_v33 = vpack.c.bf16 %v4390_v31, %v4386_v55  ;;  %v4055_v43 = vpop.f32.mrb[160].mxu0  ;;  %v4248_v15 = vpop.f32.mrb[0].mxu1  ;;  %5136 = vmatpush1.bf16.msra.mxu0 %v8770_v4 }
 0x738   : > { %v4056_v23 = vadd.f32 %v4055_v43, %v8787_v10  ;;  %v4249_v56 = vadd.f32 %v4248_v15, %v8791_v1  ;;  %v4057_v63 = vpop.f32.mrb[161].mxu0  ;;  %v4250_v61 = vpop.f32.mrb[1].mxu1  ;;  %5137 = vmatprep.subr.bf16.mxu0 %v8773_v49 }
 0x739   : > { %v4058_v29 = vadd.f32 %v4057_v63, %v8794_v9  ;;  %v4251_v42 = vadd.f32 %v4250_v61, %v8798_v12  ;;  %v4059_v60 = vpop.f32.mrb[162].mxu0  ;;  %v4252_v44 = vpop.f32.mrb[2].mxu1  ;;  %5018 = vmatprep.mubr.bf16.mxu0 %v4484_v41  ;;  %5211 = vmatprep.mubr.bf16.mxu1 %v4486_v33 }
 0x73a   : > { %v4060_v47 = vadd.f32 %v4059_v60, %v8787_v10  ;;  %v4253_v4 = vadd.f32 %v4252_v44, %v8791_v1  ;;  %v4061_v39 = vpop.f32.mrb[163].mxu0  ;;  %v4254_v0 = vpop.f32.mrb[3].mxu1  ;;  %5019 = vmatmul.mubr.bf16.gmra.mrb[220].mxu0 %v4483_v34  ;;  %5212 = vmatmul.mubr.bf16.gmra.mrb[44].mxu1 %v4485_v38  ;;  %v4391_v20 = vmax.f32 %v4056_v23, 0.0  ;;  %v4393_v17 = vmax.f32 %v4249_v56, 0.0 }
 0x73b   : > { %v4062_v13 = vadd.f32 %v4061_v39, %v8794_v9  ;;  %v4255_v49 = vadd.f32 %v4254_v0, %v8798_v12  ;;  %5138 = vmatpush1.bf16.msra.mxu0 %v8776_v51  ;;  %v4392_v18 = vmax.f32 %v4058_v29, 0.0  ;;  %v4394_v59 = vmax.f32 %v4251_v42, 0.0 }
 0x73c   : > { %v4395_v11 = vmax.f32 %v4060_v47, 0.0  ;;  %v4397_v30 = vmax.f32 %v4253_v4, 0.0  ;;  %5139 = vmatprep.subr.bf16.mxu0 %v8779_v32 }
 0x73d   : > { %v4396_v62 = vmax.f32 %v4062_v13, 0.0  ;;  %v4398_v35 = vmax.f32 %v4255_v49, 0.0 }
 0x73e   : > { %v4487_v2 = vpack.c.bf16 %v4395_v11, %v4391_v20  ;;  %v4489_v16 = vpack.c.bf16 %v4397_v30, %v4393_v17 }
 0x73f   : > { %v4488_v8 = vpack.c.bf16 %v4396_v62, %v4392_v18  ;;  %v4490_v19 = vpack.c.bf16 %v4398_v35, %v4394_v59  ;;  %v4065_v26 = vpop.f32.mrb[164].mxu0  ;;  %v4258_v48 = vpop.f32.mrb[4].mxu1  ;;  %5140 = vmatpush1.bf16.msra.mxu0 %v8782_v28 }
 0x740   : > { %v4066_v51 = vadd.f32 %v4065_v26, %v8787_v10  ;;  %v4259_v21 = vadd.f32 %v4258_v48, %v8791_v1  ;;  %v4067_v25 = vpop.f32.mrb[165].mxu0  ;;  %v4260_v52 = vpop.f32.mrb[5].mxu1 }
 0x741   : > { %v4068_v32 = vadd.f32 %v4067_v25, %v8794_v9  ;;  %v4261_v36 = vadd.f32 %v4260_v52, %v8798_v12  ;;  %v4069_v40 = vpop.f32.mrb[166].mxu0  ;;  %v4262_v22 = vpop.f32.mrb[6].mxu1  ;;  %5028 = vmatprep.mubr.bf16.mxu0 %v4488_v8  ;;  %5221 = vmatprep.mubr.bf16.mxu1 %v4490_v19 }
 0x742   : > { %v4070_v50 = vadd.f32 %v4069_v40, %v8787_v10  ;;  %v4263_v24 = vadd.f32 %v4262_v22, %v8791_v1  ;;  %v4071_v54 = vpop.f32.mrb[167].mxu0  ;;  %v4264_v28 = vpop.f32.mrb[7].mxu1  ;;  %5029 = vmatmul.mubr.bf16.gmra.mrb[224].mxu0 %v4487_v2  ;;  %5222 = vmatmul.mubr.bf16.gmra.mrb[48].mxu1 %v4489_v16  ;;  %v4399_v27 = vmax.f32 %v4066_v51, 0.0  ;;  %v4401_v31 = vmax.f32 %v4259_v21, 0.0 }
 0x743   : > { %v4072_v7 = vadd.f32 %v4071_v54, %v8794_v9  ;;  %v4265_v55 = vadd.f32 %v4264_v28, %v8798_v12  ;;  %v4400_v41 = vmax.f32 %v4068_v32, 0.0  ;;  %v4402_v33 = vmax.f32 %v4261_v36, 0.0 }
 0x744   : > { %v4403_v34 = vmax.f32 %v4070_v50, 0.0  ;;  %v4405_v38 = vmax.f32 %v4263_v24, 0.0 }
 0x745   : > { %v4404_v43 = vmax.f32 %v4072_v7, 0.0  ;;  %v4406_v15 = vmax.f32 %v4265_v55, 0.0 }
 0x746   : > { %v4491_v23 = vpack.c.bf16 %v4403_v34, %v4399_v27  ;;  %v4493_v56 = vpack.c.bf16 %v4405_v38, %v4401_v31 }
 0x747   : > { %v4492_v63 = vpack.c.bf16 %v4404_v43, %v4400_v41  ;;  %v4494_v61 = vpack.c.bf16 %v4406_v15, %v4402_v33  ;;  %v4075_v29 = vpop.f32.mrb[168].mxu0  ;;  %v4268_v42 = vpop.f32.mrb[8].mxu1 }
 0x748   : > { %v4076_v60 = vadd.f32 %v4075_v29, %v8787_v10  ;;  %v4269_v44 = vadd.f32 %v4268_v42, %v8791_v1  ;;  %v4077_v47 = vpop.f32.mrb[169].mxu0  ;;  %v4270_v4 = vpop.f32.mrb[9].mxu1 }
 0x749   : > { %v4078_v39 = vadd.f32 %v4077_v47, %v8794_v9  ;;  %v4271_v0 = vadd.f32 %v4270_v4, %v8798_v12  ;;  %v4079_v13 = vpop.f32.mrb[170].mxu0  ;;  %v4272_v49 = vpop.f32.mrb[10].mxu1  ;;  %5038 = vmatprep.mubr.bf16.mxu0 %v4492_v63  ;;  %5231 = vmatprep.mubr.bf16.mxu1 %v4494_v61 }
 0x74a   : > { %v4080_v20 = vadd.f32 %v4079_v13, %v8787_v10  ;;  %v4273_v17 = vadd.f32 %v4272_v49, %v8791_v1  ;;  %v4081_v11 = vpop.f32.mrb[171].mxu0  ;;  %v4274_v30 = vpop.f32.mrb[11].mxu1  ;;  %5039 = vmatmul.mubr.bf16.gmra.mrb[228].mxu0 %v4491_v23  ;;  %5232 = vmatmul.mubr.bf16.gmra.mrb[52].mxu1 %v4493_v56  ;;  %v4407_v62 = vmax.f32 %v4076_v60, 0.0  ;;  %v4409_v35 = vmax.f32 %v4269_v44, 0.0 }
 0x74b   : > { %v4082_v18 = vadd.f32 %v4081_v11, %v8794_v9  ;;  %v4275_v59 = vadd.f32 %v4274_v30, %v8798_v12  ;;  %v4408_v8 = vmax.f32 %v4078_v39, 0.0  ;;  %v4410_v19 = vmax.f32 %v4271_v0, 0.0 }
 0x74c   : > { %v4411_v2 = vmax.f32 %v4080_v20, 0.0  ;;  %v4413_v16 = vmax.f32 %v4273_v17, 0.0 }
 0x74d   : > { %v4412_v26 = vmax.f32 %v4082_v18, 0.0  ;;  %v4414_v48 = vmax.f32 %v4275_v59, 0.0 }
 0x74e   : > { %v4495_v51 = vpack.c.bf16 %v4411_v2, %v4407_v62  ;;  %v4497_v21 = vpack.c.bf16 %v4413_v16, %v4409_v35 }
 0x74f   : > { %v4496_v25 = vpack.c.bf16 %v4412_v26, %v4408_v8  ;;  %v4498_v52 = vpack.c.bf16 %v4414_v48, %v4410_v19  ;;  %v4085_v32 = vpop.f32.mrb[172].mxu0  ;;  %v4278_v36 = vpop.f32.mrb[12].mxu1 }
 0x750   : > { %v4086_v40 = vadd.f32 %v4085_v32, %v8787_v10  ;;  %v4279_v22 = vadd.f32 %v4278_v36, %v8791_v1  ;;  %v4087_v50 = vpop.f32.mrb[173].mxu0  ;;  %v4280_v24 = vpop.f32.mrb[13].mxu1 }
 0x751   : > { %v4088_v54 = vadd.f32 %v4087_v50, %v8794_v9  ;;  %v4281_v28 = vadd.f32 %v4280_v24, %v8798_v12  ;;  %v4089_v7 = vpop.f32.mrb[174].mxu0  ;;  %v4282_v55 = vpop.f32.mrb[14].mxu1  ;;  %5048 = vmatprep.mubr.bf16.mxu0 %v4496_v25  ;;  %5241 = vmatprep.mubr.bf16.mxu1 %v4498_v52 }
 0x752   : > { %v4090_v27 = vadd.f32 %v4089_v7, %v8787_v10  ;;  %v4283_v31 = vadd.f32 %v4282_v55, %v8791_v1  ;;  %v4091_v34 = vpop.f32.mrb[175].mxu0  ;;  %v4284_v38 = vpop.f32.mrb[15].mxu1  ;;  %5049 = vmatmul.mubr.bf16.gmra.mrb[232].mxu0 %v4495_v51  ;;  %5242 = vmatmul.mubr.bf16.gmra.mrb[56].mxu1 %v4497_v21  ;;  %v4415_v43 = vmax.f32 %v4086_v40, 0.0  ;;  %v4417_v15 = vmax.f32 %v4279_v22, 0.0 }
 0x753   : > { %v4092_v41 = vadd.f32 %v4091_v34, %v8794_v9  ;;  %v4285_v33 = vadd.f32 %v4284_v38, %v8798_v12  ;;  %v4416_v63 = vmax.f32 %v4088_v54, 0.0  ;;  %v4418_v61 = vmax.f32 %v4281_v28, 0.0 }
 0x754   : > { %v4419_v23 = vmax.f32 %v4090_v27, 0.0  ;;  %v4421_v56 = vmax.f32 %v4283_v31, 0.0 }
 0x755   : > { %v4420_v29 = vmax.f32 %v4092_v41, 0.0  ;;  %v4422_v42 = vmax.f32 %v4285_v33, 0.0 }
 0x756   : > { %v4499_v60 = vpack.c.bf16 %v4419_v23, %v4415_v43  ;;  %v4501_v44 = vpack.c.bf16 %v4421_v56, %v4417_v15 }
 0x757   : > { %v4500_v47 = vpack.c.bf16 %v4420_v29, %v4416_v63  ;;  %v4502_v4 = vpack.c.bf16 %v4422_v42, %v4418_v61  ;;  %v4095_v39 = vpop.f32.mrb[176].mxu0  ;;  %v4288_v0 = vpop.f32.mrb[16].mxu1 }
 0x758   : > { %v4096_v13 = vadd.f32 %v4095_v39, %v8787_v10  ;;  %v4289_v49 = vadd.f32 %v4288_v0, %v8791_v1  ;;  %v4097_v20 = vpop.f32.mrb[177].mxu0  ;;  %v4290_v17 = vpop.f32.mrb[17].mxu1 }
 0x759   : > { %v4098_v11 = vadd.f32 %v4097_v20, %v8794_v9  ;;  %v4291_v30 = vadd.f32 %v4290_v17, %v8798_v12  ;;  %v4099_v18 = vpop.f32.mrb[178].mxu0  ;;  %v4292_v59 = vpop.f32.mrb[18].mxu1  ;;  %5058 = vmatprep.mubr.bf16.mxu0 %v4500_v47  ;;  %5251 = vmatprep.mubr.bf16.mxu1 %v4502_v4 }
 0x75a   : > { %v4100_v62 = vadd.f32 %v4099_v18, %v8787_v10  ;;  %v4293_v35 = vadd.f32 %v4292_v59, %v8791_v1  ;;  %v4101_v2 = vpop.f32.mrb[179].mxu0  ;;  %v4294_v16 = vpop.f32.mrb[19].mxu1  ;;  %5059 = vmatmul.mubr.bf16.gmra.mrb[236].mxu0 %v4499_v60  ;;  %5252 = vmatmul.mubr.bf16.gmra.mrb[60].mxu1 %v4501_v44  ;;  %v4423_v26 = vmax.f32 %v4096_v13, 0.0  ;;  %v4425_v48 = vmax.f32 %v4289_v49, 0.0 }
 0x75b   : > { %v4102_v8 = vadd.f32 %v4101_v2, %v8794_v9  ;;  %v4295_v19 = vadd.f32 %v4294_v16, %v8798_v12  ;;  %v4424_v25 = vmax.f32 %v4098_v11, 0.0  ;;  %v4426_v52 = vmax.f32 %v4291_v30, 0.0 }
 0x75c   : > { %v4427_v51 = vmax.f32 %v4100_v62, 0.0  ;;  %v4429_v21 = vmax.f32 %v4293_v35, 0.0 }
 0x75d   : > { %v4428_v32 = vmax.f32 %v4102_v8, 0.0  ;;  %v4430_v36 = vmax.f32 %v4295_v19, 0.0 }
 0x75e   : > { %v4503_v40 = vpack.c.bf16 %v4427_v51, %v4423_v26  ;;  %v4505_v22 = vpack.c.bf16 %v4429_v21, %v4425_v48 }
 0x75f   : > { %v4504_v50 = vpack.c.bf16 %v4428_v32, %v4424_v25  ;;  %v4506_v24 = vpack.c.bf16 %v4430_v36, %v4426_v52  ;;  %v4105_v54 = vpop.f32.mrb[180].mxu0  ;;  %v4298_v28 = vpop.f32.mrb[20].mxu1 }
 0x760   : > { %v4106_v7 = vadd.f32 %v4105_v54, %v8787_v10  ;;  %v4299_v55 = vadd.f32 %v4298_v28, %v8791_v1  ;;  %v4107_v27 = vpop.f32.mrb[181].mxu0  ;;  %v4300_v31 = vpop.f32.mrb[21].mxu1 }
 0x761   : > { %v4108_v34 = vadd.f32 %v4107_v27, %v8794_v9  ;;  %v4301_v38 = vadd.f32 %v4300_v31, %v8798_v12  ;;  %v4109_v41 = vpop.f32.mrb[182].mxu0  ;;  %v4302_v33 = vpop.f32.mrb[22].mxu1  ;;  %5068 = vmatprep.mubr.bf16.mxu0 %v4504_v50  ;;  %5261 = vmatprep.mubr.bf16.mxu1 %v4506_v24 }
 0x762   : > { %v4110_v43 = vadd.f32 %v4109_v41, %v8787_v10  ;;  %v4303_v15 = vadd.f32 %v4302_v33, %v8791_v1  ;;  %v4111_v23 = vpop.f32.mrb[183].mxu0  ;;  %v4304_v56 = vpop.f32.mrb[23].mxu1  ;;  %5069 = vmatmul.mubr.bf16.gmra.mrb[240].mxu0 %v4503_v40  ;;  %5262 = vmatmul.mubr.bf16.gmra.mrb[64].mxu1 %v4505_v22  ;;  %v4431_v29 = vmax.f32 %v4106_v7, 0.0  ;;  %v4433_v42 = vmax.f32 %v4299_v55, 0.0 }
 0x763   : > { %v4112_v63 = vadd.f32 %v4111_v23, %v8794_v9  ;;  %v4305_v61 = vadd.f32 %v4304_v56, %v8798_v12  ;;  %v4432_v47 = vmax.f32 %v4108_v34, 0.0  ;;  %v4434_v4 = vmax.f32 %v4301_v38, 0.0 }
 0x764   : > { %v4435_v60 = vmax.f32 %v4110_v43, 0.0  ;;  %v4437_v44 = vmax.f32 %v4303_v15, 0.0 }
 0x765   : > { %v4436_v39 = vmax.f32 %v4112_v63, 0.0  ;;  %v4438_v0 = vmax.f32 %v4305_v61, 0.0 }
 0x766   : > { %v4507_v13 = vpack.c.bf16 %v4435_v60, %v4431_v29  ;;  %v4509_v49 = vpack.c.bf16 %v4437_v44, %v4433_v42 }
 0x767   : > { %v4508_v20 = vpack.c.bf16 %v4436_v39, %v4432_v47  ;;  %v4510_v17 = vpack.c.bf16 %v4438_v0, %v4434_v4  ;;  %v4115_v11 = vpop.f32.mrb[184].mxu0  ;;  %v4308_v30 = vpop.f32.mrb[24].mxu1 }
 0x768   : > { %v4116_v18 = vadd.f32 %v4115_v11, %v8787_v10  ;;  %v4309_v59 = vadd.f32 %v4308_v30, %v8791_v1  ;;  %v4117_v62 = vpop.f32.mrb[185].mxu0  ;;  %v4310_v35 = vpop.f32.mrb[25].mxu1 }
 0x769   : > { %v4118_v2 = vadd.f32 %v4117_v62, %v8794_v9  ;;  %v4311_v16 = vadd.f32 %v4310_v35, %v8798_v12  ;;  %v4119_v8 = vpop.f32.mrb[186].mxu0  ;;  %v4312_v19 = vpop.f32.mrb[26].mxu1  ;;  %5078 = vmatprep.mubr.bf16.mxu0 %v4508_v20  ;;  %5271 = vmatprep.mubr.bf16.mxu1 %v4510_v17 }
 0x76a   : > { %v4120_v26 = vadd.f32 %v4119_v8, %v8787_v10  ;;  %v4313_v48 = vadd.f32 %v4312_v19, %v8791_v1  ;;  %v4121_v51 = vpop.f32.mrb[187].mxu0  ;;  %v4314_v21 = vpop.f32.mrb[27].mxu1  ;;  %5079 = vmatmul.mubr.bf16.gmra.mrb[244].mxu0 %v4507_v13  ;;  %5272 = vmatmul.mubr.bf16.gmra.mrb[68].mxu1 %v4509_v49  ;;  %v4439_v32 = vmax.f32 %v4116_v18, 0.0  ;;  %v4441_v36 = vmax.f32 %v4309_v59, 0.0 }
 0x76b   : > { %v4122_v25 = vadd.f32 %v4121_v51, %v8794_v9  ;;  %v4315_v52 = vadd.f32 %v4314_v21, %v8798_v12  ;;  %v4440_v50 = vmax.f32 %v4118_v2, 0.0  ;;  %v4442_v24 = vmax.f32 %v4311_v16, 0.0 }
 0x76c   : > { %v4443_v40 = vmax.f32 %v4120_v26, 0.0  ;;  %v4445_v22 = vmax.f32 %v4313_v48, 0.0 }
 0x76d   : > { %v4444_v54 = vmax.f32 %v4122_v25, 0.0  ;;  %v4446_v28 = vmax.f32 %v4315_v52, 0.0 }
 0x76e   : > { %v4511_v7 = vpack.c.bf16 %v4443_v40, %v4439_v32  ;;  %v4513_v55 = vpack.c.bf16 %v4445_v22, %v4441_v36 }
 0x76f   : > { %v4512_v27 = vpack.c.bf16 %v4444_v54, %v4440_v50  ;;  %v4514_v31 = vpack.c.bf16 %v4446_v28, %v4442_v24  ;;  %v4125_v34 = vpop.f32.mrb[188].mxu0  ;;  %v4318_v38 = vpop.f32.mrb[28].mxu1 }
 0x770   : > { %v4126_v41 = vadd.f32 %v4125_v34, %v8787_v10  ;;  %v4319_v33 = vadd.f32 %v4318_v38, %v8791_v1  ;;  %v4127_v43 = vpop.f32.mrb[189].mxu0  ;;  %v4320_v15 = vpop.f32.mrb[29].mxu1 }
 0x771   : > { %v4128_v23 = vadd.f32 %v4127_v43, %v8794_v9  ;;  %v4321_v56 = vadd.f32 %v4320_v15, %v8798_v12  ;;  %v4129_v63 = vpop.f32.mrb[190].mxu0  ;;  %v4322_v61 = vpop.f32.mrb[30].mxu1  ;;  %5088 = vmatprep.mubr.bf16.mxu0 %v4512_v27  ;;  %5281 = vmatprep.mubr.bf16.mxu1 %v4514_v31 }
 0x772   : > { %v4130_v29 = vadd.f32 %v4129_v63, %v8787_v10  ;;  %v4323_v42 = vadd.f32 %v4322_v61, %v8791_v1  ;;  %v4131_v60 = vpop.f32.mrb[191].mxu0  ;;  %v4324_v44 = vpop.f32.mrb[31].mxu1  ;;  %5089 = vmatmul.mubr.bf16.gmra.mrb[248].mxu0 %v4511_v7  ;;  %5282 = vmatmul.mubr.bf16.gmra.mrb[72].mxu1 %v4513_v55  ;;  %v4447_v39 = vmax.f32 %v4126_v41, 0.0  ;;  %v4449_v0 = vmax.f32 %v4319_v33, 0.0 }
 0x773   : > { %v4132_v47 = vadd.f32 %v4131_v60, %v8794_v9  ;;  %v4325_v4 = vadd.f32 %v4324_v44, %v8798_v12  ;;  %v4448_v20 = vmax.f32 %v4128_v23, 0.0  ;;  %v4450_v17 = vmax.f32 %v4321_v56, 0.0  ;;  %v4584_v9 = vld [vmem:[#allocation16 + $0x6] ss:$8 sm:$0x3] }
 0x774   : > { %v4451_v13 = vmax.f32 %v4130_v29, 0.0  ;;  %v4453_v49 = vmax.f32 %v4323_v42, 0.0  ;;  %v8984_v12 = vrot.slane %v4584_v9, %v8229_v3 }
 0x775   : > { %v4452_v11 = vmax.f32 %v4132_v47, 0.0  ;;  %v4454_v30 = vmax.f32 %v4325_v4, 0.0 }
 0x776   : > { %v4515_v18 = vpack.c.bf16 %v4451_v13, %v4447_v39  ;;  %v4517_v10 = vpack.c.bf16 %v4453_v49, %v4449_v0 }
 0x777   : > { %v4516_v59 = vpack.c.bf16 %v4452_v11, %v4448_v20  ;;  %v4518_v1 = vpack.c.bf16 %v4454_v30, %v4450_v17 }
 0x779   : > { %5098 = vmatprep.mubr.bf16.mxu0 %v4516_v59  ;;  %5291 = vmatprep.mubr.bf16.mxu1 %v4518_v1 }
 0x77a   : > { %5099 = vmatmul.mubr.bf16.gmra.mrb[252].mxu0 %v4515_v18  ;;  %5292 = vmatmul.mubr.bf16.gmra.mrb[76].mxu1 %v4517_v10 }
 0x77b   : > { %5141 = vmatprep.mubr.bf16.mxu0 %v8810_v14  ;;  %v8987_v14 = vrot.slane %v4584_v9, %v8234_v5 }
 0x782   : > { %5142 = vmatmul.mubr.bf16.vlgmr.msra.gmra.mrb[192].mxu0 %v8808_v58 }
 0x783   : > { %5151 = vmatprep.mubr.bf16.mxu0 %v8824_v45 }
 0x78a   : > { %5152 = vmatmul.mubr.bf16.gmra.mrb[196].mxu0 %v8822_v37 }
 0x78b   : > { %5161 = vmatprep.mubr.bf16.mxu0 %v8840_v53 }
 0x792   : > { %5162 = vmatmul.mubr.bf16.gmra.mrb[200].mxu0 %v8838_v46 }
 0x793   : > { %5171 = vmatprep.mubr.bf16.mxu0 %v8856_v57 }
 0x79a   : > { %5172 = vmatmul.mubr.bf16.gmra.mrb[204].mxu0 %v8854_v6 }
 0x7f5   : > { %v4990_v58 = vpop.f32.mrb[208].mxu0  ;;  %v5183_v62 = vpop.f32.mrb[32].mxu1 }
 0x7f6   : > { %v4991_v45 = vadd.f32 %v4990_v58, %v8984_v12  ;;  %v4992_v37 = vpop.f32.mrb[209].mxu0  ;;  %v5185_v35 = vpop.f32.mrb[33].mxu1 }
 0x7f7   : > { %v4993_v53 = vadd.f32 %v4992_v37, %v8987_v14  ;;  %v4994_v46 = vpop.f32.mrb[210].mxu0  ;;  %v5187_v2 = vpop.f32.mrb[34].mxu1 }
 0x7f8   : > { %v5184_v57 = vadd.f32 %v5183_v62, %v4991_v45  ;;  %v4995_v6 = vadd.f32 %v4994_v46, %v8984_v12  ;;  %v4996_v16 = vpop.f32.mrb[211].mxu0  ;;  %v5189_v8 = vpop.f32.mrb[35].mxu1 }
 0x7f9   : > { %v5186_v3 = vadd.f32 %v5185_v35, %v4993_v53  ;;  %v4997_v19 = vadd.f32 %v4996_v16, %v8987_v14 }
 0x7fa   : > { %7270 = vtanh.f32 %v5184_v57  ;;  %v5188_v5 = vadd.f32 %v5187_v2, %v4995_v6 }
 0x7fb   : > { %7272 = vtanh.f32 %v5186_v3  ;;  %v5190_v26 = vadd.f32 %v5189_v8, %v4997_v19 }
 0x7fc   : > { %7274 = vtanh.f32 %v5188_v5 }
 0x7fd   : > { %7276 = vtanh.f32 %v5190_v26  ;;  %v5000_v48 = vpop.f32.mrb[212].mxu0  ;;  %v5193_v51 = vpop.f32.mrb[36].mxu1 }
 0x7fe   : > { %v5001_v21 = vadd.f32 %v5000_v48, %v8984_v12  ;;  %v5002_v25 = vpop.f32.mrb[213].mxu0  ;;  %v5195_v52 = vpop.f32.mrb[37].mxu1 }
 0x7ff   : > { %v5003_v32 = vadd.f32 %v5002_v25, %v8987_v14  ;;  %v5004_v36 = vpop.f32.mrb[214].mxu0  ;;  %v5197_v40 = vpop.f32.mrb[38].mxu1 }
 0x800   : > { %v5194_v22 = vadd.f32 %v5193_v51, %v5001_v21  ;;  %v5005_v50 = vadd.f32 %v5004_v36, %v8984_v12  ;;  %v5006_v24 = vpop.f32.mrb[215].mxu0  ;;  %v5199_v54 = vpop.f32.mrb[39].mxu1 }
 0x801   : > { %v5196_v28 = vadd.f32 %v5195_v52, %v5003_v32  ;;  %v5007_v7 = vadd.f32 %v5006_v24, %v8987_v14 }
 0x802   : > { %7278 = vtanh.f32 %v5194_v22  ;;  %v5198_v55 = vadd.f32 %v5197_v40, %v5005_v50 }
 0x803   : > { %7280 = vtanh.f32 %v5196_v28  ;;  %v5200_v27 = vadd.f32 %v5199_v54, %v5007_v7 }
 0x804   : > { %v7271_v31 = vpop.eup %7270  ;;  %7282 = vtanh.f32 %v5198_v55 }
 0x805   : > { %v7273_v34 = vpop.eup %7272  ;;  %7284 = vtanh.f32 %v5200_v27  ;;  %v5010_v38 = vpop.f32.mrb[216].mxu0 }
 0x806   : > { %v5203_v41 = vpop.f32.mrb[40].mxu1  ;;  %v7275_v33 = vpop.eup %7274  ;;  %v6156_v43 = vpack.c.bf16 %v7273_v34, %v7271_v31  ;;  %v5011_v15 = vadd.f32 %v5010_v38, %v8984_v12 }
 0x807   : > { %v5012_v23 = vpop.f32.mrb[217].mxu0  ;;  %v5205_v56 = vpop.f32.mrb[41].mxu1 }
 0x808   : > { %v7277_v63 = vpop.eup %7276  ;;  %v5013_v61 = vadd.f32 %v5012_v23, %v8987_v14  ;;  %v5014_v29 = vpop.f32.mrb[218].mxu0  ;;  %5566 = vst [vmem:[%s9001_s16 + $0x40] sm:$0xff] %v6156_v43  ;;  %v5204_v44 = vadd.f32 %v5203_v41, %v5011_v15 }
 0x809   : > { %v5207_v42 = vpop.f32.mrb[42].mxu1  ;;  %v6157_v60 = vpack.c.bf16 %v7277_v63, %v7275_v33  ;;  %v5015_v47 = vadd.f32 %v5014_v29, %v8984_v12  ;;  %v5016_v4 = vpop.f32.mrb[219].mxu0 }
 0x80a   : > { %v5209_v39 = vpop.f32.mrb[43].mxu1  ;;  %v5206_v0 = vadd.f32 %v5205_v56, %v5013_v61  ;;  %v5017_v13 = vadd.f32 %v5016_v4, %v8987_v14  ;;  %7286 = vtanh.f32 %v5204_v44 }
 0x80b   : > { %5567 = vst [vmem:[%s9001_s16 + $0x48] sm:$0xff] %v6157_v60  ;;  %v5208_v49 = vadd.f32 %v5207_v42, %v5015_v47 }
 0x80c   : > { %7288 = vtanh.f32 %v5206_v0  ;;  %v5210_v20 = vadd.f32 %v5209_v39, %v5017_v13  ;;  %v7279_v17 = vpop.eup %7278 }
 0x80d   : > { %7290 = vtanh.f32 %v5208_v49  ;;  %v7281_v11 = vpop.eup %7280  ;;  %v5020_v30 = vpop.f32.mrb[220].mxu0 }
 0x80e   : > { %7292 = vtanh.f32 %v5210_v20  ;;  %v5213_v18 = vpop.f32.mrb[44].mxu1  ;;  %v7283_v10 = vpop.eup %7282  ;;  %v6158_v59 = vpack.c.bf16 %v7281_v11, %v7279_v17  ;;  %v5021_v1 = vadd.f32 %v5020_v30, %v8984_v12 }
 0x80f   : > { %v5022_v9 = vpop.f32.mrb[221].mxu0  ;;  %v5215_v58 = vpop.f32.mrb[45].mxu1 }
 0x810   : > { %v7285_v62 = vpop.eup %7284  ;;  %v5023_v45 = vadd.f32 %v5022_v9, %v8987_v14  ;;  %v5024_v37 = vpop.f32.mrb[222].mxu0  ;;  %5568 = vst [vmem:[%s9001_s16 + $0x50] sm:$0xff] %v6158_v59  ;;  %v5214_v46 = vadd.f32 %v5213_v18, %v5021_v1 }
 0x811   : > { %v5217_v35 = vpop.f32.mrb[46].mxu1  ;;  %v6159_v53 = vpack.c.bf16 %v7285_v62, %v7283_v10  ;;  %v5025_v2 = vadd.f32 %v5024_v37, %v8984_v12  ;;  %v5026_v57 = vpop.f32.mrb[223].mxu0 }
 0x812   : > { %v5219_v6 = vpop.f32.mrb[47].mxu1  ;;  %v5216_v16 = vadd.f32 %v5215_v58, %v5023_v45  ;;  %v5027_v8 = vadd.f32 %v5026_v57, %v8987_v14  ;;  %7294 = vtanh.f32 %v5214_v46 }
 0x813   : > { %5569 = vst [vmem:[%s9001_s16 + $0x58] sm:$0xff] %v6159_v53  ;;  %v5218_v3 = vadd.f32 %v5217_v35, %v5025_v2 }
 0x814   : > { %7296 = vtanh.f32 %v5216_v16  ;;  %v5220_v19 = vadd.f32 %v5219_v6, %v5027_v8  ;;  %v7287_v5 = vpop.eup %7286 }
 0x815   : > { %7298 = vtanh.f32 %v5218_v3  ;;  %v5030_v48 = vpop.f32.mrb[224].mxu0  ;;  %v5223_v51 = vpop.f32.mrb[48].mxu1 }
 0x816   : > { %v7289_v26 = vpop.eup %7288  ;;  %7300 = vtanh.f32 %v5220_v19  ;;  %v5031_v52 = vadd.f32 %v5030_v48, %v8984_v12  ;;  %v5032_v32 = vpop.f32.mrb[225].mxu0 }
 0x817   : > { %v7291_v21 = vpop.eup %7290  ;;  %v6160_v25 = vpack.c.bf16 %v7289_v26, %v7287_v5  ;;  %v5225_v36 = vpop.f32.mrb[49].mxu1  ;;  %v5033_v22 = vadd.f32 %v5032_v32, %v8987_v14 }
 0x818   : > { %v7293_v40 = vpop.eup %7292  ;;  %v5034_v50 = vpop.f32.mrb[226].mxu0  ;;  %v5224_v28 = vadd.f32 %v5223_v51, %v5031_v52 }
 0x819   : > { %v5227_v24 = vpop.f32.mrb[50].mxu1  ;;  %5570 = vst [vmem:[%s9001_s16 + $0x60] sm:$0xff] %v6160_v25  ;;  %v6161_v54 = vpack.c.bf16 %v7293_v40, %v7291_v21  ;;  %v5035_v7 = vadd.f32 %v5034_v50, %v8984_v12  ;;  %v5036_v55 = vpop.f32.mrb[227].mxu0  ;;  %v5226_v31 = vadd.f32 %v5225_v36, %v5033_v22 }
 0x81a   : > { %v5229_v27 = vpop.f32.mrb[51].mxu1  ;;  %v5037_v34 = vadd.f32 %v5036_v55, %v8987_v14  ;;  %7302 = vtanh.f32 %v5224_v28 }
 0x81b   : > { %5571 = vst [vmem:[%s9001_s16 + $0x68] sm:$0xff] %v6161_v54  ;;  %v5228_v38 = vadd.f32 %v5227_v24, %v5035_v7  ;;  %7304 = vtanh.f32 %v5226_v31 }
 0x81c   : > { %v5230_v41 = vadd.f32 %v5229_v27, %v5037_v34  ;;  %v7295_v33 = vpop.eup %7294 }
 0x81d   : > { %7306 = vtanh.f32 %v5228_v38  ;;  %v5040_v15 = vpop.f32.mrb[228].mxu0  ;;  %v5233_v23 = vpop.f32.mrb[52].mxu1 }
 0x81e   : > { %v7297_v43 = vpop.eup %7296  ;;  %7308 = vtanh.f32 %v5230_v41  ;;  %v5041_v61 = vadd.f32 %v5040_v15, %v8984_v12  ;;  %v5042_v29 = vpop.f32.mrb[229].mxu0 }
 0x81f   : > { %v7299_v56 = vpop.eup %7298  ;;  %v6162_v63 = vpack.c.bf16 %v7297_v43, %v7295_v33  ;;  %v5235_v42 = vpop.f32.mrb[53].mxu1  ;;  %v5043_v44 = vadd.f32 %v5042_v29, %v8987_v14 }
 0x820   : > { %v7301_v60 = vpop.eup %7300  ;;  %v5044_v47 = vpop.f32.mrb[230].mxu0  ;;  %v5234_v0 = vadd.f32 %v5233_v23, %v5041_v61 }
 0x821   : > { %v5237_v4 = vpop.f32.mrb[54].mxu1  ;;  %5572 = vst [vmem:[%s9001_s16 + $0x70] sm:$0xff] %v6162_v63  ;;  %v6163_v39 = vpack.c.bf16 %v7301_v60, %v7299_v56  ;;  %v5045_v13 = vadd.f32 %v5044_v47, %v8984_v12  ;;  %v5046_v49 = vpop.f32.mrb[231].mxu0  ;;  %v5236_v17 = vadd.f32 %v5235_v42, %v5043_v44 }
 0x822   : > { %v5239_v20 = vpop.f32.mrb[55].mxu1  ;;  %v5047_v11 = vadd.f32 %v5046_v49, %v8987_v14  ;;  %7310 = vtanh.f32 %v5234_v0 }
 0x823   : > { %5573 = vst [vmem:[%s9001_s16 + $0x78] sm:$0xff] %v6163_v39  ;;  %v5238_v30 = vadd.f32 %v5237_v4, %v5045_v13  ;;  %7312 = vtanh.f32 %v5236_v17 }
 0x824   : > { %v5240_v18 = vadd.f32 %v5239_v20, %v5047_v11  ;;  %v7303_v10 = vpop.eup %7302 }
 0x825   : > { %7314 = vtanh.f32 %v5238_v30  ;;  %v7305_v59 = vpop.eup %7304  ;;  %v5050_v1 = vpop.f32.mrb[232].mxu0 }
 0x826   : > { %7316 = vtanh.f32 %v5240_v18  ;;  %v5243_v9 = vpop.f32.mrb[56].mxu1  ;;  %v6164_v62 = vpack.c.bf16 %v7305_v59, %v7303_v10  ;;  %v5051_v45 = vadd.f32 %v5050_v1, %v8984_v12  ;;  %v5052_v37 = vpop.f32.mrb[233].mxu0 }
 0x827   : > { %v7307_v58 = vpop.eup %7306  ;;  %v5245_v35 = vpop.f32.mrb[57].mxu1  ;;  %v5053_v46 = vadd.f32 %v5052_v37, %v8987_v14 }
 0x828   : > { %v7309_v53 = vpop.eup %7308  ;;  %v5054_v2 = vpop.f32.mrb[234].mxu0  ;;  %5574 = vst [vmem:[%s9001_s16 + $0x80] sm:$0xff] %v6164_v62  ;;  %v5244_v16 = vadd.f32 %v5243_v9, %v5051_v45 }
 0x829   : > { %v5247_v57 = vpop.f32.mrb[58].mxu1  ;;  %v6165_v6 = vpack.c.bf16 %v7309_v53, %v7307_v58  ;;  %v5055_v8 = vadd.f32 %v5054_v2, %v8984_v12  ;;  %v5056_v3 = vpop.f32.mrb[235].mxu0  ;;  %v5246_v5 = vadd.f32 %v5245_v35, %v5053_v46 }
 0x82a   : > { %v5249_v19 = vpop.f32.mrb[59].mxu1  ;;  %v5057_v26 = vadd.f32 %v5056_v3, %v8987_v14  ;;  %7318 = vtanh.f32 %v5244_v16 }
 0x82b   : > { %5575 = vst [vmem:[%s9001_s16 + $0x88] sm:$0xff] %v6165_v6  ;;  %v5248_v48 = vadd.f32 %v5247_v57, %v5055_v8  ;;  %7320 = vtanh.f32 %v5246_v5 }
 0x82c   : > { %v5250_v51 = vadd.f32 %v5249_v19, %v5057_v26  ;;  %v7311_v21 = vpop.eup %7310 }
 0x82d   : > { %7322 = vtanh.f32 %v5248_v48  ;;  %v7313_v25 = vpop.eup %7312  ;;  %v5060_v52 = vpop.f32.mrb[236].mxu0 }
 0x82e   : > { %7324 = vtanh.f32 %v5250_v51  ;;  %v5253_v32 = vpop.f32.mrb[60].mxu1  ;;  %v6166_v40 = vpack.c.bf16 %v7313_v25, %v7311_v21  ;;  %v5061_v22 = vadd.f32 %v5060_v52, %v8984_v12  ;;  %v5062_v50 = vpop.f32.mrb[237].mxu0 }
 0x82f   : > { %v7315_v36 = vpop.eup %7314  ;;  %v5255_v24 = vpop.f32.mrb[61].mxu1  ;;  %v5063_v28 = vadd.f32 %v5062_v50, %v8987_v14 }
 0x830   : > { %v7317_v54 = vpop.eup %7316  ;;  %v5064_v7 = vpop.f32.mrb[238].mxu0  ;;  %5576 = vst [vmem:[%s9001_s16 + $0x90] sm:$0xff] %v6166_v40  ;;  %v5254_v31 = vadd.f32 %v5253_v32, %v5061_v22 }
 0x831   : > { %v5257_v55 = vpop.f32.mrb[62].mxu1  ;;  %v6167_v27 = vpack.c.bf16 %v7317_v54, %v7315_v36  ;;  %v5065_v34 = vadd.f32 %v5064_v7, %v8984_v12  ;;  %v5066_v38 = vpop.f32.mrb[239].mxu0  ;;  %v5256_v33 = vadd.f32 %v5255_v24, %v5063_v28 }
 0x832   : > { %v5259_v41 = vpop.f32.mrb[63].mxu1  ;;  %v5067_v43 = vadd.f32 %v5066_v38, %v8987_v14  ;;  %7326 = vtanh.f32 %v5254_v31 }
 0x833   : > { %5577 = vst [vmem:[%s9001_s16 + $0x98] sm:$0xff] %v6167_v27  ;;  %v5258_v15 = vadd.f32 %v5257_v55, %v5065_v34  ;;  %7328 = vtanh.f32 %v5256_v33 }
 0x834   : > { %v5260_v23 = vadd.f32 %v5259_v41, %v5067_v43  ;;  %v7319_v56 = vpop.eup %7318 }
 0x835   : > { %7330 = vtanh.f32 %v5258_v15  ;;  %v7321_v63 = vpop.eup %7320  ;;  %v5070_v61 = vpop.f32.mrb[240].mxu0 }
 0x836   : > { %7332 = vtanh.f32 %v5260_v23  ;;  %v5263_v29 = vpop.f32.mrb[64].mxu1  ;;  %v6168_v60 = vpack.c.bf16 %v7321_v63, %v7319_v56  ;;  %v5071_v44 = vadd.f32 %v5070_v61, %v8984_v12  ;;  %v5072_v47 = vpop.f32.mrb[241].mxu0 }
 0x837   : > { %v7323_v42 = vpop.eup %7322  ;;  %v5265_v4 = vpop.f32.mrb[65].mxu1  ;;  %v5073_v0 = vadd.f32 %v5072_v47, %v8987_v14 }
 0x838   : > { %v7325_v39 = vpop.eup %7324  ;;  %v5074_v13 = vpop.f32.mrb[242].mxu0  ;;  %5578 = vst [vmem:[%s9001_s16 + $0xa0] sm:$0xff] %v6168_v60  ;;  %v5264_v17 = vadd.f32 %v5263_v29, %v5071_v44 }
 0x839   : > { %v5267_v49 = vpop.f32.mrb[66].mxu1  ;;  %v6169_v20 = vpack.c.bf16 %v7325_v39, %v7323_v42  ;;  %v5075_v11 = vadd.f32 %v5074_v13, %v8984_v12  ;;  %v5076_v30 = vpop.f32.mrb[243].mxu0  ;;  %v5266_v10 = vadd.f32 %v5265_v4, %v5073_v0 }
 0x83a   : > { %v5269_v18 = vpop.f32.mrb[67].mxu1  ;;  %v5077_v59 = vadd.f32 %v5076_v30, %v8987_v14  ;;  %7334 = vtanh.f32 %v5264_v17 }
 0x83b   : > { %5579 = vst [vmem:[%s9001_s16 + $0xa8] sm:$0xff] %v6169_v20  ;;  %v5268_v1 = vadd.f32 %v5267_v49, %v5075_v11  ;;  %7336 = vtanh.f32 %v5266_v10 }
 0x83c   : > { %v5270_v9 = vadd.f32 %v5269_v18, %v5077_v59  ;;  %v7327_v58 = vpop.eup %7326 }
 0x83d   : > { %7338 = vtanh.f32 %v5268_v1  ;;  %v7329_v62 = vpop.eup %7328  ;;  %v5080_v45 = vpop.f32.mrb[244].mxu0 }
 0x83e   : > { %7340 = vtanh.f32 %v5270_v9  ;;  %v5273_v37 = vpop.f32.mrb[68].mxu1  ;;  %v6170_v53 = vpack.c.bf16 %v7329_v62, %v7327_v58  ;;  %v5081_v46 = vadd.f32 %v5080_v45, %v8984_v12  ;;  %v5082_v2 = vpop.f32.mrb[245].mxu0 }
 0x83f   : > { %v7331_v35 = vpop.eup %7330  ;;  %v5275_v57 = vpop.f32.mrb[69].mxu1  ;;  %v5083_v16 = vadd.f32 %v5082_v2, %v8987_v14 }
 0x840   : > { %v7333_v6 = vpop.eup %7332  ;;  %v5084_v8 = vpop.f32.mrb[246].mxu0  ;;  %5580 = vst [vmem:[%s9001_s16 + $0xb0] sm:$0xff] %v6170_v53  ;;  %v5274_v5 = vadd.f32 %v5273_v37, %v5081_v46 }
 0x841   : > { %v5277_v3 = vpop.f32.mrb[70].mxu1  ;;  %v6171_v19 = vpack.c.bf16 %v7333_v6, %v7331_v35  ;;  %v5085_v26 = vadd.f32 %v5084_v8, %v8984_v12  ;;  %v5086_v48 = vpop.f32.mrb[247].mxu0  ;;  %v5276_v21 = vadd.f32 %v5275_v57, %v5083_v16 }
 0x842   : > { %v5279_v51 = vpop.f32.mrb[71].mxu1  ;;  %v5087_v25 = vadd.f32 %v5086_v48, %v8987_v14  ;;  %7342 = vtanh.f32 %v5274_v5 }
 0x843   : > { %5581 = vst [vmem:[%s9001_s16 + $0xb8] sm:$0xff] %v6171_v19  ;;  %v5278_v52 = vadd.f32 %v5277_v3, %v5085_v26  ;;  %7344 = vtanh.f32 %v5276_v21 }
 0x844   : > { %v5280_v32 = vadd.f32 %v5279_v51, %v5087_v25  ;;  %v7335_v36 = vpop.eup %7334 }
 0x845   : > { %7346 = vtanh.f32 %v5278_v52  ;;  %v7337_v40 = vpop.eup %7336  ;;  %v5090_v22 = vpop.f32.mrb[248].mxu0 }
 0x846   : > { %7348 = vtanh.f32 %v5280_v32  ;;  %v5283_v50 = vpop.f32.mrb[72].mxu1  ;;  %v6172_v54 = vpack.c.bf16 %v7337_v40, %v7335_v36  ;;  %v5091_v28 = vadd.f32 %v5090_v22, %v8984_v12  ;;  %v5092_v7 = vpop.f32.mrb[249].mxu0 }
 0x847   : > { %v7339_v24 = vpop.eup %7338  ;;  %v5285_v55 = vpop.f32.mrb[73].mxu1  ;;  %v5093_v31 = vadd.f32 %v5092_v7, %v8987_v14 }
 0x848   : > { %v7341_v27 = vpop.eup %7340  ;;  %v5094_v34 = vpop.f32.mrb[250].mxu0  ;;  %5582 = vst [vmem:[%s9001_s16 + $0xc0] sm:$0xff] %v6172_v54  ;;  %v5284_v33 = vadd.f32 %v5283_v50, %v5091_v28 }
 0x849   : > { %v5287_v38 = vpop.f32.mrb[74].mxu1  ;;  %v6173_v41 = vpack.c.bf16 %v7341_v27, %v7339_v24  ;;  %v5095_v43 = vadd.f32 %v5094_v34, %v8984_v12  ;;  %v5096_v15 = vpop.f32.mrb[251].mxu0  ;;  %v5286_v56 = vadd.f32 %v5285_v55, %v5093_v31 }
 0x84a   : > { %v5289_v23 = vpop.f32.mrb[75].mxu1  ;;  %v5097_v63 = vadd.f32 %v5096_v15, %v8987_v14  ;;  %7350 = vtanh.f32 %v5284_v33 }
 0x84b   : > { %5583 = vst [vmem:[%s9001_s16 + $0xc8] sm:$0xff] %v6173_v41  ;;  %v5288_v61 = vadd.f32 %v5287_v38, %v5095_v43  ;;  %7352 = vtanh.f32 %v5286_v56 }
 0x84c   : > { %v5290_v29 = vadd.f32 %v5289_v23, %v5097_v63  ;;  %v7343_v42 = vpop.eup %7342 }
 0x84d   : > { %7354 = vtanh.f32 %v5288_v61  ;;  %v7345_v60 = vpop.eup %7344  ;;  %v5100_v44 = vpop.f32.mrb[252].mxu0 }
 0x84e   : > { %7356 = vtanh.f32 %v5290_v29  ;;  %v5293_v47 = vpop.f32.mrb[76].mxu1  ;;  %v6174_v39 = vpack.c.bf16 %v7345_v60, %v7343_v42  ;;  %v5101_v0 = vadd.f32 %v5100_v44, %v8984_v12  ;;  %v5102_v13 = vpop.f32.mrb[253].mxu0 }
 0x84f   : > { %v7347_v4 = vpop.eup %7346  ;;  %v5295_v49 = vpop.f32.mrb[77].mxu1  ;;  %v5103_v17 = vadd.f32 %v5102_v13, %v8987_v14 }
 0x850   : > { %v7349_v20 = vpop.eup %7348  ;;  %v5104_v11 = vpop.f32.mrb[254].mxu0  ;;  %5584 = vst [vmem:[%s9001_s16 + $0xd0] sm:$0xff] %v6174_v39  ;;  %v5294_v10 = vadd.f32 %v5293_v47, %v5101_v0 }
 0x851   : > { %v5297_v30 = vpop.f32.mrb[78].mxu1  ;;  %v6175_v18 = vpack.c.bf16 %v7349_v20, %v7347_v4  ;;  %v5105_v59 = vadd.f32 %v5104_v11, %v8984_v12  ;;  %v5106_v1 = vpop.f32.mrb[255].mxu0  ;;  %v5296_v58 = vadd.f32 %v5295_v49, %v5103_v17 }
 0x852   : > { %v5299_v9 = vpop.f32.mrb[79].mxu1  ;;  %v5107_v62 = vadd.f32 %v5106_v1, %v8987_v14  ;;  %7358 = vtanh.f32 %v5294_v10 }
 0x853   : > { %5585 = vst [vmem:[%s9001_s16 + $0xd8] sm:$0xff] %v6175_v18  ;;  %v5298_v45 = vadd.f32 %v5297_v30, %v5105_v59  ;;  %7360 = vtanh.f32 %v5296_v58 }
 0x854   : > { %v5300_v37 = vadd.f32 %v5299_v9, %v5107_v62  ;;  %v7351_v35 = vpop.eup %7350 }
 0x855   : > { %7362 = vtanh.f32 %v5298_v45  ;;  %v7353_v53 = vpop.eup %7352  ;;  %v5143_v46 = vpop.f32.mrb[192].mxu0 }
 0x856   : > { %7364 = vtanh.f32 %v5300_v37  ;;  %v6176_v57 = vpack.c.bf16 %v7353_v53, %v7351_v35  ;;  %v6462_v6 = vadd.f32 %v5143_v46, %v8984_v12  ;;  %v5145_v16 = vpop.f32.mrb[193].mxu0 }
 0x857   : > { %v7355_v2 = vpop.eup %7354  ;;  %v6463_v3 = vadd.f32 %v5145_v16, %v8987_v14  ;;  %v5147_v19 = vpop.f32.mrb[194].mxu0 }
 0x858   : > { %v7357_v8 = vpop.eup %7356  ;;  %5586 = vst [vmem:[%s9001_s16 + $0xe0] sm:$0xff] %v6176_v57  ;;  %7366 = vtanh.f32 %v6462_v6  ;;  %v6464_v26 = vadd.f32 %v5147_v19, %v8984_v12  ;;  %v5149_v48 = vpop.f32.mrb[195].mxu0 }
 0x859   : > { %v6177_v5 = vpack.c.bf16 %v7357_v8, %v7355_v2  ;;  %7368 = vtanh.f32 %v6463_v3  ;;  %v6465_v51 = vadd.f32 %v5149_v48, %v8987_v14 }
 0x85a   : > { %7370 = vtanh.f32 %v6464_v26 }
 0x85b   : > { %5587 = vst [vmem:[%s9001_s16 + $0xe8] sm:$0xff] %v6177_v5  ;;  %7372 = vtanh.f32 %v6465_v51 }
 0x85c   : > { %v7359_v21 = vpop.eup %7358 }
 0x85d   : > { %v7361_v25 = vpop.eup %7360  ;;  %v5153_v52 = vpop.f32.mrb[196].mxu0 }
 0x85e   : > { %v6178_v36 = vpack.c.bf16 %v7361_v25, %v7359_v21  ;;  %v6466_v40 = vadd.f32 %v5153_v52, %v8984_v12  ;;  %v5155_v22 = vpop.f32.mrb[197].mxu0 }
 0x85f   : > { %v7363_v32 = vpop.eup %7362  ;;  %v6467_v24 = vadd.f32 %v5155_v22, %v8987_v14  ;;  %v5157_v54 = vpop.f32.mrb[198].mxu0 }
 0x860   : > { %v7365_v50 = vpop.eup %7364  ;;  %5588 = vst [vmem:[%s9001_s16 + $0xf0] sm:$0xff] %v6178_v36  ;;  %7374 = vtanh.f32 %v6466_v40  ;;  %v6468_v7 = vadd.f32 %v5157_v54, %v8984_v12  ;;  %v5159_v55 = vpop.f32.mrb[199].mxu0 }
 0x861   : > { %v6179_v28 = vpack.c.bf16 %v7365_v50, %v7363_v32  ;;  %7376 = vtanh.f32 %v6467_v24  ;;  %v6469_v27 = vadd.f32 %v5159_v55, %v8987_v14 }
 0x862   : > { %v7367_v31 = vpop.eup %7366  ;;  %7378 = vtanh.f32 %v6468_v7 }
 0x863   : > { %5589 = vst [vmem:[%s9001_s16 + $0xf8] sm:$0xff] %v6179_v28  ;;  %v7369_v34 = vpop.eup %7368  ;;  %7380 = vtanh.f32 %v6469_v27 }
 0x864   : > { %v7371_v38 = vpop.eup %7370  ;;  %v6148_v41 = vpack.c.bf16 %v7369_v34, %v7367_v31 }
 0x865   : > { %v7373_v33 = vpop.eup %7372  ;;  %v5163_v43 = vpop.f32.mrb[200].mxu0 }
 0x866   : > { %5558 = vst [vmem:[%s9001_s16] sm:$0xff] %v6148_v41  ;;  %v6149_v15 = vpack.c.bf16 %v7373_v33, %v7371_v38  ;;  %v6470_v23 = vadd.f32 %v5163_v43, %v8984_v12  ;;  %v5165_v56 = vpop.f32.mrb[201].mxu0 }
 0x867   : > { %v6471_v63 = vadd.f32 %v5165_v56, %v8987_v14  ;;  %v5167_v61 = vpop.f32.mrb[202].mxu0 }
 0x868   : > { %5559 = vst [vmem:[%s9001_s16 + $0x8] sm:$0xff] %v6149_v15  ;;  %7382 = vtanh.f32 %v6470_v23  ;;  %v6472_v29 = vadd.f32 %v5167_v61, %v8984_v12  ;;  %v5169_v42 = vpop.f32.mrb[203].mxu0 }
 0x869   : > { %7384 = vtanh.f32 %v6471_v63  ;;  %v6473_v60 = vadd.f32 %v5169_v42, %v8987_v14 }
 0x86a   : > { %v7375_v44 = vpop.eup %7374  ;;  %7386 = vtanh.f32 %v6472_v29 }
 0x86b   : > { %v7377_v47 = vpop.eup %7376  ;;  %7388 = vtanh.f32 %v6473_v60 }
 0x86c   : > { %v7379_v4 = vpop.eup %7378  ;;  %v6150_v39 = vpack.c.bf16 %v7377_v47, %v7375_v44 }
 0x86d   : > { %v7381_v0 = vpop.eup %7380  ;;  %v5173_v13 = vpop.f32.mrb[204].mxu0 }
 0x86e   : > { %5560 = vst [vmem:[%s9001_s16 + $0x10] sm:$0xff] %v6150_v39  ;;  %v6151_v49 = vpack.c.bf16 %v7381_v0, %v7379_v4  ;;  %v6474_v20 = vadd.f32 %v5173_v13, %v8984_v12  ;;  %v5175_v17 = vpop.f32.mrb[205].mxu0 }
 0x86f   : > { %v6475_v11 = vadd.f32 %v5175_v17, %v8987_v14  ;;  %v5177_v30 = vpop.f32.mrb[206].mxu0 }
 0x870   : > { %5561 = vst [vmem:[%s9001_s16 + $0x18] sm:$0xff] %v6151_v49  ;;  %7390 = vtanh.f32 %v6474_v20  ;;  %v6476_v18 = vadd.f32 %v5177_v30, %v8984_v12  ;;  %v5179_v10 = vpop.f32.mrb[207].mxu0 }
 0x871   : > { %7392 = vtanh.f32 %v6475_v11  ;;  %v6477_v59 = vadd.f32 %v5179_v10, %v8987_v14 }
 0x872   : > { %v7383_v1 = vpop.eup %7382  ;;  %7394 = vtanh.f32 %v6476_v18 }
 0x873   : > { %v7385_v9 = vpop.eup %7384  ;;  %7396 = vtanh.f32 %v6477_v59 }
 0x874   : > { %v7387_v58 = vpop.eup %7386  ;;  %v6152_v62 = vpack.c.bf16 %v7385_v9, %v7383_v1 }
 0x875   : > { %v7389_v45 = vpop.eup %7388 }
 0x876   : > { %5562 = vst [vmem:[%s9001_s16 + $0x20] sm:$0xff] %v6152_v62  ;;  %v6153_v37 = vpack.c.bf16 %v7389_v45, %v7387_v58 }
 0x878   : > { %5563 = vst [vmem:[%s9001_s16 + $0x28] sm:$0xff] %v6153_v37 }
 0x87a   : > { %v7391_v12 = vpop.eup %7390 }
 0x87b   : > { %v7393_v35 = vpop.eup %7392 }
 0x87c   : > { %v7395_v53 = vpop.eup %7394  ;;  %v6154_v14 = vpack.c.bf16 %v7393_v35, %v7391_v12 }
 0x87d   : > { %v7397_v46 = vpop.eup %7396 }
 0x87e   : > { %5564 = vst [vmem:[%s9001_s16 + $0x30] sm:$0xff] %v6154_v14  ;;  %v6155_v2 = vpack.c.bf16 %v7397_v46, %v7395_v53 }
 0x880   : > { %5565 = vst [vmem:[%s9001_s16 + $0x38] sm:$0xff] %v6155_v2 }
 0x881   : > { %7665 = shalt.err (!%p7662_p9)
}
 0x882   : > { %s7666_s26 = scalar_lea.hbm %s9092_s23, 4096  ;;  %s7670_s24 = scalar_lea.hbm %s9149_s9, 8192 }
 0x883   : > { %p7667_p4 = scmp.ne.s32.totalorder %s9092_s23, %s7666_s26  ;;  %p7671_p2 = scmp.lt.u32.totalorder %s9092_s23, %s9149_s9 }
 0x884   : > { %p7672_p6 = scmp.lt.u32.totalorder %s7670_s24, %s7666_s26  ;;  %p7674_p10 = scmp.lt.u32.totalorder %s7666_s26, %s9092_s23 }
 0x885   : > { %p7668_p3 = pnand %p7667_p4, %p9185_p1 }
 0x886   : > { %p7673_p5 = por %p7672_p6, %p7671_p2 }
 0x887   : > { %p7669_p0 = pneg %p7668_p3 }
 0x888   : > { %p7675_p11 = por %p7674_p10, %p7673_p5 }
 0x88a   : > { %p7676_p12 = pnand %p7675_p11, %p7669_p0 }
 0x88c   : > { %7679 = shalt.err (!%p7676_p12)
}
 0x88d   : > { %s7753_s15 = smov 128   ;;  %s7754_s14 = smov 8  }
 0x88e   : > { %6688 = dma.vmem_to_hbm [thread:$0]  (%p9185_p1), %s9094_s29, 4096, %s9092_s23, %s5591_s18, %s7753_s15, %s7753_s15, %s7754_s14  }
 0x88f PF: > { %s5620_s21 = sand.u32 1, %s7722_s30   ;;  %p9186_p13 = scmp.ne.s32.totalorder %s9172_s27, 0 }
 0x890   : > { %p9187_p8 = scmp.ge.s32.totalorder %s7734_s12, 2  ;;  %s5621_s22 = scalar_lea.sflag [#allocation4], %s5620_s21 }
 0x892   : > { %p6720_p7 = pnand %p9187_p8, %p9186_p13 }
 0x894   : > { %7717 = dma.done.wait (!%p6720_p7), %s5621_s22, 4096  }
 0x895   : > { %7719 = vsyncadd (!%p6720_p7), %s5621_s22, 4294963200  ;;  %p26_p9 = scmp.ge.s32.totalorder %s8052_s25, 4   ;;  %s9188_s30 = smov %s7726_s10 }
 0x896   : > { %s9189_s10 = smov %s7730_s11  ;;  %s9190_s11 = smov %s8063_s28 }
 0x897   : > { %s9191_s12 = smov %s8052_s25  ;;  %28 = sbr.rel (!%p26_p9) target bundleno = 11 (0xb), region = 137 }
 0x89e   :  { %5626 = vsyncpa [#allocation3], 1 }
 0x89f   :  { %5628 = vsyncpa [#allocation3 + $0x1], 1 }
 0x8a0   :  { %5629 = vsyncpa [#allocation6], 1 }
 0x8a1   :  { %5630 = vsyncpa [#allocation9], 1 }
 0x8a2   :  { %5631 = vsyncpa [#allocation12], 1 }
 0x8a3   :  { %5632 = vsyncpa [#allocation15], 1 }
 0x8a4   :  { %5633 = vsyncpa [#allocation4], 1 }
 0x8a5   :  { %5635 = vsyncpa [#allocation4 + $0x1], 1 }

</bundles_post_ra>
